<compile_context>
chip_gen: v7x
topology: tpu7x:2x2x1
jax: 0.10.0
libtpu: 0.0.40
codegen_flags: <defaults>
</compile_context>

<pallas_src>
import jax
import jax.numpy as jnp
import numpy as np
from jax import lax
from jax.experimental import pallas as pl
from jax.experimental.pallas import tpu as pltpu


def basic_block_kernel(xpad_ref, w1_ref, w2_ref, s1_ref, b1_ref, s2_ref, b2_ref,
                       out_ref, slab_ref, hpad_ref):
    # xpad_ref : (1, H+4, Wp, Cp) bf16  padded image (2 zero rows top/bottom,
    #                                   1 zero col left, >=1 zero col right)
    # w1_ref   : (3, 3*Cp, Cp)    bf16  rows of w[dy] are (dx, cin) flattened
    # w2_ref   : (3, 3*Cp, Cp)    bf16
    # s*/b*    : (1, Cp)          f32   folded BN scale / bias
    # out_ref  : (1, TH, W, Cp)   bf16  one row-block of the output
    # slab_ref : ((TH+4)*W, 3*Cp) bf16  dx-shifted im2col slab (conv1 & conv2)
    # hpad_ref : (TH+2, W+2, Cp)  bf16  conv1 output with zero edge columns
    TH = out_ref.shape[1]
    W = out_ref.shape[2]
    Cp = out_ref.shape[3]
    TH2 = TH + 2                 # conv1 output rows incl. 1-row halo for conv2
    RIN = TH + 4                 # input rows feeding this block's conv1
    M1 = TH2 * W
    M2 = TH * W

    r = pl.program_id(1)
    r0 = r * TH
    if TH % 8 == 0:
        r0 = pl.multiple_of(r0, 8)

    # ---------- conv1: 3 dx-shifted slab column groups, 3 per-dy matmuls ----
    for dx in range(3):
        piece = xpad_ref[0, pl.ds(r0, RIN), dx:dx + W, :]        # (RIN, W, Cp)
        slab_ref[:, dx * Cp:(dx + 1) * Cp] = piece.reshape(RIN * W, Cp)

    acc1 = jnp.dot(slab_ref[0:M1, :], w1_ref[0],
                   preferred_element_type=jnp.float32)           # (M1, Cp) f32
    for dy in (1, 2):
        acc1 += jnp.dot(slab_ref[dy * W:dy * W + M1, :], w1_ref[dy],
                        preferred_element_type=jnp.float32)

    # ---------- bn1 + relu, stage into the width-padded scratch -------------
    h = jnp.maximum(acc1 * s1_ref[...] + b1_ref[...], 0.0).astype(jnp.bfloat16)
    hpad_ref[:, 1:1 + W, :] = h.reshape(TH2, W, Cp)
    # zero edge columns (tiny stores; done every step so it is safe under
    # megacore sharding of the batch axis)
    hpad_ref[:, 0:1, :] = jnp.zeros((TH2, 1, Cp), jnp.bfloat16)
    hpad_ref[:, 1 + W:2 + W, :] = jnp.zeros((TH2, 1, Cp), jnp.bfloat16)

    # conv2's zero row padding at the image borders: zero only the halo row
    @pl.when(r == 0)
    def _():
        hpad_ref[0, :, :] = jnp.zeros((W + 2, Cp), jnp.bfloat16)

    @pl.when(r == pl.num_programs(1) - 1)
    def _():
        hpad_ref[TH2 - 1, :, :] = jnp.zeros((W + 2, Cp), jnp.bfloat16)

    # ---------- conv2: rebuild slab (first M1 rows), 3 per-dy matmuls --------
    for dx in range(3):
        piece = hpad_ref[:, dx:dx + W, :]                        # (TH2, W, Cp)
        slab_ref[0:M1, dx * Cp:(dx + 1) * Cp] = piece.reshape(M1, Cp)

    acc2 = jnp.dot(slab_ref[0:M2, :], w2_ref[0],
                   preferred_element_type=jnp.float32)           # (M2, Cp) f32
    for dy in (1, 2):
        acc2 += jnp.dot(slab_ref[dy * W:dy * W + M2, :], w2_ref[dy],
                        preferred_element_type=jnp.float32)

    # ---------- bn2 + residual add + relu ------------------------------------
    res = xpad_ref[0, pl.ds(r0 + 2, TH), 1:1 + W, :].reshape(M2, Cp)
    out = acc2 * s2_ref[...] + b2_ref[...] + res.astype(jnp.float32)
    out = jnp.maximum(out, 0.0)
    out_ref[0, :, :, :] = out.reshape(TH, W, Cp).astype(out_ref.dtype)


def _pick_block_rows(H, block_rows):
    """Largest divisor of H that is <= block_rows (never falls back to TH=H
    unless H itself is small)."""
    th = min(int(block_rows), int(H))
    while H % th != 0:
        th -= 1
    return th


def _pick_vmem_limit_bytes():
    """~3/4 of physical VMEM, capped at 100 MiB (≈96 MiB on v5e/v6e 128 MiB,
    ≈48 MiB on v7x 64 MiB)."""
    cap = None
    try:
        info = pltpu.get_tpu_info()
        cap = int(getattr(info, "vmem_capacity_bytes", 0)) or None
    except Exception:
        cap = None
    if cap is None:
        cap = 64 * 1024 * 1024            # conservative: v7x per-core VMEM
    return int(min(100 * 1024 * 1024, cap * 3 // 4))


def basic_block_forward(x_nchw, w1, w2, bn1, bn2, eps=1e-5, block_rows=16):
    """x_nchw: (N, C, H, W). w1, w2: (Cout, Cin, 3, 3).
    bn1/bn2: dicts with gamma, beta, mean, var of shape (Cout,).
    Returns bf16 NCHW output (match PyTorch layout; inference-mode BN)."""
    N, Cin, H, W = map(int, x_nchw.shape)
    Cout = int(w1.shape[0])
    assert Cin == Cout, "downsample=None requires inplanes == planes (stride=1)"

    Cp = ((Cout + 127) // 128) * 128            # lane-dense channel padding
    TH = _pick_block_rows(H, block_rows)
    R = H // TH
    Wp = ((W + 2 + 7) // 8) * 8                 # padded width, multiple of 8

    # NCHW -> NHWC; pad 2 rows top/bottom, 1 zero col left + zeros to Wp on
    # the right, channels to Cp; cast to bf16.
    x_nhwc = jnp.transpose(x_nchw, (0, 2, 3, 1))
    x_pad = jnp.pad(x_nhwc, ((0, 0), (2, 2), (1, Wp - W - 1), (0, Cp - Cin)))
    x_pad = x_pad.astype(jnp.bfloat16)
    # TODO(synk): when chaining BasicBlocks, keep activations in this padded
    # NHWC bf16 layout between blocks to skip the transpose/pad relayout passes.

    def prep_w(w):
        # OIHW -> HWIO, pad channels, split dy out and flatten (dx, cin) rows.
        w_hwio = jnp.transpose(w, (2, 3, 1, 0))
        w_hwio = jnp.pad(w_hwio, ((0, 0), (0, 0), (0, Cp - Cin), (0, Cp - Cout)))
        return w_hwio.reshape(3, 3 * Cp, Cp).astype(jnp.bfloat16)

    w1r = prep_w(w1)
    w2r = prep_w(w2)

    def fold(bn):
        scale = bn["gamma"] / jnp.sqrt(bn["var"] + eps)
        bias = bn["beta"] - bn["mean"] * scale
        scale = jnp.pad(scale, (0, Cp - Cout), constant_values=1.0)
        bias = jnp.pad(bias, (0, Cp - Cout))
        return (scale.reshape(1, Cp).astype(jnp.float32),
                bias.reshape(1, Cp).astype(jnp.float32))

    s1, b1 = fold(bn1)
    s2, b2 = fold(bn2)

    Hp4 = H + 4
    # conv1 rows include the recomputed halo (TH2 per block), conv2 rows = H.
    flops = 2 * 9 * Cp * Cp * N * W * ((H + 2 * R) + H)
    bytes_accessed = (N * Hp4 * Wp * Cp * 2      # bf16 input
                      + 2 * 3 * 3 * Cp * Cp * 2  # bf16 weights
                      + 4 * Cp * 4               # f32 BN params
                      + N * H * W * Cp * 2)      # bf16 output

    out_nhwc = pl.pallas_call(
        basic_block_kernel,
        out_shape=jax.ShapeDtypeStruct((N, H, W, Cp), jnp.bfloat16),
        grid_spec=pltpu.PrefetchScalarGridSpec(
            num_scalar_prefetch=0,
            grid=(N, R),
            in_specs=[
                pl.BlockSpec((1, Hp4, Wp, Cp), lambda n, r: (n, 0, 0, 0)),
                pl.BlockSpec((3, 3 * Cp, Cp), lambda n, r: (0, 0, 0)),
                pl.BlockSpec((3, 3 * Cp, Cp), lambda n, r: (0, 0, 0)),
                pl.BlockSpec((1, Cp), lambda n, r: (0, 0)),
                pl.BlockSpec((1, Cp), lambda n, r: (0, 0)),
                pl.BlockSpec((1, Cp), lambda n, r: (0, 0)),
                pl.BlockSpec((1, Cp), lambda n, r: (0, 0)),
            ],
            out_specs=pl.BlockSpec((1, TH, W, Cp), lambda n, r: (n, r, 0, 0)),
            scratch_shapes=[
                pltpu.VMEM(((TH + 4) * W, 3 * Cp), jnp.bfloat16),   # im2col slab
                pltpu.VMEM((TH + 2, W + 2, Cp), jnp.bfloat16),      # padded conv1 out
            ],
        ),
        compiler_params=pltpu.CompilerParams(
            # batch axis parallel (megacore shards n, so the per-image input
            # block is not duplicated per core); row-block axis sequential.
            dimension_semantics=("parallel", "arbitrary"),
            vmem_limit_bytes=_pick_vmem_limit_bytes()),
        cost_estimate=pl.CostEstimate(flops=flops, transcendentals=0,
                                      bytes_accessed=bytes_accessed),
    )(x_pad, w1r, w2r, s1, b1, s2, b2)

    # drop channel padding, NHWC -> NCHW (match PyTorch output layout)
    out = out_nhwc[:, :, :, :Cout]
    return jnp.transpose(out, (0, 3, 1, 2))


def reference_forward(x_nchw, w1, w2, bn1, bn2, eps=1e-5):
    """Pure-JAX f32 reference (lax conv) for validation."""
    x = jnp.transpose(x_nchw, (0, 2, 3, 1))
    w1_hwio = jnp.transpose(w1, (2, 3, 1, 0))
    w2_hwio = jnp.transpose(w2, (2, 3, 1, 0))
    dn = ("NHWC", "HWIO", "NHWC")

    def bn(y, p):
        scale = p["gamma"] / jnp.sqrt(p["var"] + eps)
        bias = p["beta"] - p["mean"] * scale
        return y * scale + bias

    out = lax.conv_general_dilated(x, w1_hwio, (1, 1), "SAME",
                                   dimension_numbers=dn)
    out = jax.nn.relu(bn(out, bn1))
    out = lax.conv_general_dilated(out, w2_hwio, (1, 1), "SAME",
                                   dimension_numbers=dn)
    out = bn(out, bn2) + x
    out = jax.nn.relu(out)
    return jnp.transpose(out, (0, 3, 1, 2))


if __name__ == "__main__":
    # Small shapes consistent with BasicBlock(inplanes=4, planes=4, stride=1).
    N, C, H, W = 2, 4, 16, 16
    key = jax.random.PRNGKey(0)
    k = jax.random.split(key, 9)

    x = jax.random.normal(k[0], (N, C, H, W), dtype=jnp.float32)
    w1 = 0.1 * jax.random.normal(k[1], (C, C, 3, 3), dtype=jnp.float32)
    w2 = 0.1 * jax.random.normal(k[2], (C, C, 3, 3), dtype=jnp.float32)
    bn1 = dict(gamma=1.0 + 0.1 * jax.random.normal(k[3], (C,), dtype=jnp.float32),
               beta=0.1 * jax.random.normal(k[4], (C,), dtype=jnp.float32),
               mean=0.1 * jax.random.normal(k[5], (C,), dtype=jnp.float32),
               var=jnp.abs(jax.random.normal(k[6], (C,), dtype=jnp.float32)) + 0.5)
    bn2 = dict(gamma=1.0 + 0.1 * jax.random.normal(k[7], (C,), dtype=jnp.float32),
               beta=0.1 * jax.random.normal(k[8], (C,), dtype=jnp.float32),
               mean=jnp.zeros((C,), jnp.float32),
               var=jnp.ones((C,), jnp.float32))

    ref = jax.block_until_ready(reference_forward(x, w1, w2, bn1, bn2))

    # Multi row-block path (exercises the inter-block halo recompute + pl.when
    # border zeroing) and the single-block path.
    out_a = jax.block_until_ready(
        basic_block_forward(x, w1, w2, bn1, bn2, block_rows=8))
    out_b = jax.block_until_ready(
        basic_block_forward(x, w1, w2, bn1, bn2, block_rows=16))

    # bf16 activations/weights/output (f32 MXU accumulation) -> looser tol.
    for out in (out_a, out_b):
        np.testing.assert_allclose(np.asarray(out.astype(jnp.float32)),
                                   np.asarray(ref), rtol=5e-2, atol=5e-2)
    print("KERNEL_OK")
</pallas_src>

<mosaic_0001>
module attributes {stable_mosaic.version = 11 : i64} {
  func.func @basic_block_kernel(%arg0: i32, %arg1: i32, %arg2: memref<1x20x24x128xbf16, #tpu.memory_space<vmem>>, %arg3: memref<3x384x128xbf16, #tpu.memory_space<vmem>>, %arg4: memref<3x384x128xbf16, #tpu.memory_space<vmem>>, %arg5: memref<1x128xf32, #tpu.memory_space<vmem>>, %arg6: memref<1x128xf32, #tpu.memory_space<vmem>>, %arg7: memref<1x128xf32, #tpu.memory_space<vmem>>, %arg8: memref<1x128xf32, #tpu.memory_space<vmem>>, %arg9: memref<1x8x16x128xbf16, #tpu.memory_space<vmem>>, %arg10: memref<192x384xbf16, #tpu.memory_space<vmem>>, %arg11: memref<10x18x128xbf16, #tpu.memory_space<vmem>>) attributes {dimension_semantics = [#tpu.dimension_semantics<parallel>, #tpu.dimension_semantics<arbitrary>], iteration_bounds = array<i64: 2, 2>, scalar_prefetch = 0 : i64, scratch_operands = 2 : i64, tpu.core_type = #tpu.core_type<tc>, window_params = [{transform_indices = @transform_0, window_bounds = array<i64: 1, 20, 24, 128>}, {pipeline_mode = #tpu.pipeline_mode<synchronous>, transform_indices = @transform_1, window_bounds = array<i64: 3, 384, 128>}, {pipeline_mode = #tpu.pipeline_mode<synchronous>, transform_indices = @transform_2, window_bounds = array<i64: 3, 384, 128>}, {pipeline_mode = #tpu.pipeline_mode<synchronous>, transform_indices = @transform_3, window_bounds = array<i64: 1, 128>}, {pipeline_mode = #tpu.pipeline_mode<synchronous>, transform_indices = @transform_4, window_bounds = array<i64: 1, 128>}, {pipeline_mode = #tpu.pipeline_mode<synchronous>, transform_indices = @transform_5, window_bounds = array<i64: 1, 128>}, {pipeline_mode = #tpu.pipeline_mode<synchronous>, transform_indices = @transform_6, window_bounds = array<i64: 1, 128>}, {transform_indices = @transform_7, window_bounds = array<i64: 1, 8, 16, 128>}]} {
    %c8_i32 = arith.constant 8 : i32
    %0 = arith.muli %arg1, %c8_i32 : i32
    %1 = tpu.assume_multiple %0, 8 : i32
    %c0 = arith.constant 0 : index
    %2 = arith.index_cast %1 : i32 to index
    %c0_0 = arith.constant 0 : index
    %c0_1 = arith.constant 0 : index
    %3 = vector.load %arg2[%c0, %2, %c0_0, %c0_1] : memref<1x20x24x128xbf16, #tpu.memory_space<vmem>>, vector<1x12x16x128xbf16>
    %4 = vector.shape_cast %3 : vector<1x12x16x128xbf16> to vector<12x16x128xbf16>
    %5 = vector.shape_cast %4 : vector<12x16x128xbf16> to vector<192x128xbf16>
    %c0_2 = arith.constant 0 : index
    %c0_3 = arith.constant 0 : index
    %6 = vector.load %arg10[%c0_2, %c0_3] : memref<192x384xbf16, #tpu.memory_space<vmem>>, vector<192x128xbf16>
    tpu.vector_store %arg10[%c0_2, %c0_3], %5 {strides = array<i32>} : memref<192x384xbf16, #tpu.memory_space<vmem>>, vector<192x128xbf16>,
    %c0_4 = arith.constant 0 : index
    %7 = arith.index_cast %1 : i32 to index
    %c1 = arith.constant 1 : index
    %c0_5 = arith.constant 0 : index
    %8 = vector.load %arg2[%c0_4, %7, %c1, %c0_5] : memref<1x20x24x128xbf16, #tpu.memory_space<vmem>>, vector<1x12x16x128xbf16>
    %9 = vector.shape_cast %8 : vector<1x12x16x128xbf16> to vector<12x16x128xbf16>
    %10 = vector.shape_cast %9 : vector<12x16x128xbf16> to vector<192x128xbf16>
    %c0_6 = arith.constant 0 : index
    %c128 = arith.constant 128 : index
    %11 = vector.load %arg10[%c0_6, %c128] : memref<192x384xbf16, #tpu.memory_space<vmem>>, vector<192x128xbf16>
    tpu.vector_store %arg10[%c0_6, %c128], %10 {strides = array<i32>} : memref<192x384xbf16, #tpu.memory_space<vmem>>, vector<192x128xbf16>,
    %c0_7 = arith.constant 0 : index
    %12 = arith.index_cast %1 : i32 to index
    %c2 = arith.constant 2 : index
    %c0_8 = arith.constant 0 : index
    %13 = vector.load %arg2[%c0_7, %12, %c2, %c0_8] : memref<1x20x24x128xbf16, #tpu.memory_space<vmem>>, vector<1x12x16x128xbf16>
    %14 = vector.shape_cast %13 : vector<1x12x16x128xbf16> to vector<12x16x128xbf16>
    %15 = vector.shape_cast %14 : vector<12x16x128xbf16> to vector<192x128xbf16>
    %c0_9 = arith.constant 0 : index
    %c256 = arith.constant 256 : index
    %16 = vector.load %arg10[%c0_9, %c256] : memref<192x384xbf16, #tpu.memory_space<vmem>>, vector<192x128xbf16>
    tpu.vector_store %arg10[%c0_9, %c256], %15 {strides = array<i32>} : memref<192x384xbf16, #tpu.memory_space<vmem>>, vector<192x128xbf16>,
    %c0_10 = arith.constant 0 : index
    %c0_11 = arith.constant 0 : index
    %17 = vector.load %arg10[%c0_10, %c0_11] : memref<192x384xbf16, #tpu.memory_space<vmem>>, vector<160x384xbf16>
    %c0_12 = arith.constant 0 : index
    %c0_13 = arith.constant 0 : index
    %c0_14 = arith.constant 0 : index
    %18 = vector.load %arg3[%c0_12, %c0_13, %c0_14] : memref<3x384x128xbf16, #tpu.memory_space<vmem>>, vector<1x384x128xbf16>
    %19 = vector.shape_cast %18 : vector<1x384x128xbf16> to vector<384x128xbf16>
    %cst = arith.constant dense<0.000000e+00> : vector<160x128xf32>
    %20 = tpu.matmul %17, %19, %cst {dimension_numbers = #tpu.dot_dimension_numbers<[1], [0], [0], [1], [0, 0, 1, 1], [], []>} : vector<160x384xbf16>, vector<384x128xbf16>, vector<160x128xf32> -> vector<160x128xf32>
    %c16 = arith.constant 16 : index
    %c0_15 = arith.constant 0 : index
    %21 = vector.load %arg10[%c16, %c0_15] : memref<192x384xbf16, #tpu.memory_space<vmem>>, vector<160x384xbf16>
    %c1_16 = arith.constant 1 : index
    %c0_17 = arith.constant 0 : index
    %c0_18 = arith.constant 0 : index
    %22 = vector.load %arg3[%c1_16, %c0_17, %c0_18] : memref<3x384x128xbf16, #tpu.memory_space<vmem>>, vector<1x384x128xbf16>
    %23 = vector.shape_cast %22 : vector<1x384x128xbf16> to vector<384x128xbf16>
    %cst_19 = arith.constant dense<0.000000e+00> : vector<160x128xf32>
    %24 = tpu.matmul %21, %23, %cst_19 {dimension_numbers = #tpu.dot_dimension_numbers<[1], [0], [0], [1], [0, 0, 1, 1], [], []>} : vector<160x384xbf16>, vector<384x128xbf16>, vector<160x128xf32> -> vector<160x128xf32>
    %25 = arith.addf %20, %24 : vector<160x128xf32>
    %c32 = arith.constant 32 : index
    %c0_20 = arith.constant 0 : index
    %26 = vector.load %arg10[%c32, %c0_20] : memref<192x384xbf16, #tpu.memory_space<vmem>>, vector<160x384xbf16>
    %c2_21 = arith.constant 2 : index
    %c0_22 = arith.constant 0 : index
    %c0_23 = arith.constant 0 : index
    %27 = vector.load %arg3[%c2_21, %c0_22, %c0_23] : memref<3x384x128xbf16, #tpu.memory_space<vmem>>, vector<1x384x128xbf16>
    %28 = vector.shape_cast %27 : vector<1x384x128xbf16> to vector<384x128xbf16>
    %cst_24 = arith.constant dense<0.000000e+00> : vector<160x128xf32>
    %29 = tpu.matmul %26, %28, %cst_24 {dimension_numbers = #tpu.dot_dimension_numbers<[1], [0], [0], [1], [0, 0, 1, 1], [], []>} : vector<160x384xbf16>, vector<384x128xbf16>, vector<160x128xf32> -> vector<160x128xf32>
    %30 = arith.addf %25, %29 : vector<160x128xf32>
    %c0_25 = arith.constant 0 : index
    %c0_26 = arith.constant 0 : index
    %31 = vector.load %arg5[%c0_25, %c0_26] : memref<1x128xf32, #tpu.memory_space<vmem>>, vector<1x128xf32>
    %32 = vector.broadcast %31 : vector<1x128xf32> to vector<160x128xf32>
    %33 = arith.mulf %30, %32 : vector<160x128xf32>
    %c0_27 = arith.constant 0 : index
    %c0_28 = arith.constant 0 : index
    %34 = vector.load %arg6[%c0_27, %c0_28] : memref<1x128xf32, #tpu.memory_space<vmem>>, vector<1x128xf32>
    %35 = vector.broadcast %34 : vector<1x128xf32> to vector<160x128xf32>
    %36 = arith.addf %33, %35 : vector<160x128xf32>
    %cst_29 = arith.constant 0.000000e+00 : f32
    %37 = vector.broadcast %cst_29 : f32 to vector<160x128xf32>
    %38 = arith.maximumf %36, %37 : vector<160x128xf32>
    %39 = arith.truncf %38 : vector<160x128xf32> to vector<160x128xbf16>
    %40 = vector.shape_cast %39 : vector<160x128xbf16> to vector<10x16x128xbf16>
    %c0_30 = arith.constant 0 : index
    %c1_31 = arith.constant 1 : index
    %c0_32 = arith.constant 0 : index
    %41 = vector.load %arg11[%c0_30, %c1_31, %c0_32] : memref<10x18x128xbf16, #tpu.memory_space<vmem>>, vector<10x16x128xbf16>
    tpu.vector_store %arg11[%c0_30, %c1_31, %c0_32], %40 {strides = array<i32>} : memref<10x18x128xbf16, #tpu.memory_space<vmem>>, vector<10x16x128xbf16>,
    %cst_33 = arith.constant 0.000000e+00 : bf16
    %42 = vector.broadcast %cst_33 : bf16 to vector<10x1x128xbf16>
    %c0_34 = arith.constant 0 : index
    %c0_35 = arith.constant 0 : index
    %c0_36 = arith.constant 0 : index
    %43 = vector.load %arg11[%c0_34, %c0_35, %c0_36] : memref<10x18x128xbf16, #tpu.memory_space<vmem>>, vector<10x1x128xbf16>
    tpu.vector_store %arg11[%c0_34, %c0_35, %c0_36], %42 {strides = array<i32>} : memref<10x18x128xbf16, #tpu.memory_space<vmem>>, vector<10x1x128xbf16>,
    %cst_37 = arith.constant 0.000000e+00 : bf16
    %44 = vector.broadcast %cst_37 : bf16 to vector<10x1x128xbf16>
    %c0_38 = arith.constant 0 : index
    %c17 = arith.constant 17 : index
    %c0_39 = arith.constant 0 : index
    %45 = vector.load %arg11[%c0_38, %c17, %c0_39] : memref<10x18x128xbf16, #tpu.memory_space<vmem>>, vector<10x1x128xbf16>
    tpu.vector_store %arg11[%c0_38, %c17, %c0_39], %44 {strides = array<i32>} : memref<10x18x128xbf16, #tpu.memory_space<vmem>>, vector<10x1x128xbf16>,
    %c0_i32 = arith.constant 0 : i32
    %46 = arith.cmpi eq, %arg1, %c0_i32 : i32
    %47 = arith.extui %46 : i1 to i32
    %c0_i32_40 = arith.constant 0 : i32
    %48 = arith.cmpi ne, %47, %c0_i32_40 : i32
    scf.if %48 {
      %cst_87 = arith.constant 0.000000e+00 : bf16
      %95 = vector.broadcast %cst_87 : bf16 to vector<18x128xbf16>
      %c0_88 = arith.constant 0 : index
      %c0_89 = arith.constant 0 : index
      %c0_90 = arith.constant 0 : index
      %96 = vector.load %arg11[%c0_88, %c0_89, %c0_90] : memref<10x18x128xbf16, #tpu.memory_space<vmem>>, vector<1x18x128xbf16>
      %97 = vector.shape_cast %96 : vector<1x18x128xbf16> to vector<18x128xbf16>
      %98 = vector.shape_cast %95 : vector<18x128xbf16> to vector<1x18x128xbf16>
      tpu.vector_store %arg11[%c0_88, %c0_89, %c0_90], %98 {strides = array<i32>} : memref<10x18x128xbf16, #tpu.memory_space<vmem>>, vector<1x18x128xbf16>,
    } else {
    }
    %c1_i32 = arith.constant 1 : i32
    %49 = arith.cmpi eq, %arg1, %c1_i32 : i32
    %50 = arith.extui %49 : i1 to i32
    %c0_i32_41 = arith.constant 0 : i32
    %51 = arith.cmpi ne, %50, %c0_i32_41 : i32
    scf.if %51 {
      %cst_87 = arith.constant 0.000000e+00 : bf16
      %95 = vector.broadcast %cst_87 : bf16 to vector<18x128xbf16>
      %c9 = arith.constant 9 : index
      %c0_88 = arith.constant 0 : index
      %c0_89 = arith.constant 0 : index
      %96 = vector.load %arg11[%c9, %c0_88, %c0_89] : memref<10x18x128xbf16, #tpu.memory_space<vmem>>, vector<1x18x128xbf16>
      %97 = vector.shape_cast %96 : vector<1x18x128xbf16> to vector<18x128xbf16>
      %98 = vector.shape_cast %95 : vector<18x128xbf16> to vector<1x18x128xbf16>
      tpu.vector_store %arg11[%c9, %c0_88, %c0_89], %98 {strides = array<i32>} : memref<10x18x128xbf16, #tpu.memory_space<vmem>>, vector<1x18x128xbf16>,
    } else {
    }
    %c0_42 = arith.constant 0 : index
    %c0_43 = arith.constant 0 : index
    %c0_44 = arith.constant 0 : index
    %52 = vector.load %arg11[%c0_42, %c0_43, %c0_44] : memref<10x18x128xbf16, #tpu.memory_space<vmem>>, vector<10x16x128xbf16>
    %53 = vector.shape_cast %52 : vector<10x16x128xbf16> to vector<160x128xbf16>
    %c0_45 = arith.constant 0 : index
    %c0_46 = arith.constant 0 : index
    %54 = vector.load %arg10[%c0_45, %c0_46] : memref<192x384xbf16, #tpu.memory_space<vmem>>, vector<160x128xbf16>
    tpu.vector_store %arg10[%c0_45, %c0_46], %53 {strides = array<i32>} : memref<192x384xbf16, #tpu.memory_space<vmem>>, vector<160x128xbf16>,
    %c0_47 = arith.constant 0 : index
    %c1_48 = arith.constant 1 : index
    %c0_49 = arith.constant 0 : index
    %55 = vector.load %arg11[%c0_47, %c1_48, %c0_49] : memref<10x18x128xbf16, #tpu.memory_space<vmem>>, vector<10x16x128xbf16>
    %56 = vector.shape_cast %55 : vector<10x16x128xbf16> to vector<160x128xbf16>
    %c0_50 = arith.constant 0 : index
    %c128_51 = arith.constant 128 : index
    %57 = vector.load %arg10[%c0_50, %c128_51] : memref<192x384xbf16, #tpu.memory_space<vmem>>, vector<160x128xbf16>
    tpu.vector_store %arg10[%c0_50, %c128_51], %56 {strides = array<i32>} : memref<192x384xbf16, #tpu.memory_space<vmem>>, vector<160x128xbf16>,
    %c0_52 = arith.constant 0 : index
    %c2_53 = arith.constant 2 : index
    %c0_54 = arith.constant 0 : index
    %58 = vector.load %arg11[%c0_52, %c2_53, %c0_54] : memref<10x18x128xbf16, #tpu.memory_space<vmem>>, vector<10x16x128xbf16>
    %59 = vector.shape_cast %58 : vector<10x16x128xbf16> to vector<160x128xbf16>
    %c0_55 = arith.constant 0 : index
    %c256_56 = arith.constant 256 : index
    %60 = vector.load %arg10[%c0_55, %c256_56] : memref<192x384xbf16, #tpu.memory_space<vmem>>, vector<160x128xbf16>
    tpu.vector_store %arg10[%c0_55, %c256_56], %59 {strides = array<i32>} : memref<192x384xbf16, #tpu.memory_space<vmem>>, vector<160x128xbf16>,
    %c0_57 = arith.constant 0 : index
    %c0_58 = arith.constant 0 : index
    %61 = vector.load %arg10[%c0_57, %c0_58] : memref<192x384xbf16, #tpu.memory_space<vmem>>, vector<128x384xbf16>
    %c0_59 = arith.constant 0 : index
    %c0_60 = arith.constant 0 : index
    %c0_61 = arith.constant 0 : index
    %62 = vector.load %arg4[%c0_59, %c0_60, %c0_61] : memref<3x384x128xbf16, #tpu.memory_space<vmem>>, vector<1x384x128xbf16>
    %63 = vector.shape_cast %62 : vector<1x384x128xbf16> to vector<384x128xbf16>
    %cst_62 = arith.constant dense<0.000000e+00> : vector<128x128xf32>
    %64 = tpu.matmul %61, %63, %cst_62 {dimension_numbers = #tpu.dot_dimension_numbers<[1], [0], [0], [1], [0, 0, 1, 1], [], []>} : vector<128x384xbf16>, vector<384x128xbf16>, vector<128x128xf32> -> vector<128x128xf32>
    %c16_63 = arith.constant 16 : index
    %c0_64 = arith.constant 0 : index
    %65 = vector.load %arg10[%c16_63, %c0_64] : memref<192x384xbf16, #tpu.memory_space<vmem>>, vector<128x384xbf16>
    %c1_65 = arith.constant 1 : index
    %c0_66 = arith.constant 0 : index
    %c0_67 = arith.constant 0 : index
    %66 = vector.load %arg4[%c1_65, %c0_66, %c0_67] : memref<3x384x128xbf16, #tpu.memory_space<vmem>>, vector<1x384x128xbf16>
    %67 = vector.shape_cast %66 : vector<1x384x128xbf16> to vector<384x128xbf16>
    %cst_68 = arith.constant dense<0.000000e+00> : vector<128x128xf32>
    %68 = tpu.matmul %65, %67, %cst_68 {dimension_numbers = #tpu.dot_dimension_numbers<[1], [0], [0], [1], [0, 0, 1, 1], [], []>} : vector<128x384xbf16>, vector<384x128xbf16>, vector<128x128xf32> -> vector<128x128xf32>
    %69 = arith.addf %64, %68 : vector<128x128xf32>
    %c32_69 = arith.constant 32 : index
    %c0_70 = arith.constant 0 : index
    %70 = vector.load %arg10[%c32_69, %c0_70] : memref<192x384xbf16, #tpu.memory_space<vmem>>, vector<128x384xbf16>
    %c2_71 = arith.constant 2 : index
    %c0_72 = arith.constant 0 : index
    %c0_73 = arith.constant 0 : index
    %71 = vector.load %arg4[%c2_71, %c0_72, %c0_73] : memref<3x384x128xbf16, #tpu.memory_space<vmem>>, vector<1x384x128xbf16>
    %72 = vector.shape_cast %71 : vector<1x384x128xbf16> to vector<384x128xbf16>
    %cst_74 = arith.constant dense<0.000000e+00> : vector<128x128xf32>
    %73 = tpu.matmul %70, %72, %cst_74 {dimension_numbers = #tpu.dot_dimension_numbers<[1], [0], [0], [1], [0, 0, 1, 1], [], []>} : vector<128x384xbf16>, vector<384x128xbf16>, vector<128x128xf32> -> vector<128x128xf32>
    %74 = arith.addf %69, %73 : vector<128x128xf32>
    %c2_i32 = arith.constant 2 : i32
    %75 = arith.addi %1, %c2_i32 : i32
    %c0_75 = arith.constant 0 : index
    %76 = arith.index_cast %75 : i32 to index
    %c1_76 = arith.constant 1 : index
    %c0_77 = arith.constant 0 : index
    %77 = vector.load %arg2[%c0_75, %76, %c1_76, %c0_77] : memref<1x20x24x128xbf16, #tpu.memory_space<vmem>>, vector<1x8x16x128xbf16>
    %78 = vector.shape_cast %77 : vector<1x8x16x128xbf16> to vector<8x16x128xbf16>
    %79 = vector.shape_cast %78 : vector<8x16x128xbf16> to vector<128x128xbf16>
    %c0_78 = arith.constant 0 : index
    %c0_79 = arith.constant 0 : index
    %80 = vector.load %arg7[%c0_78, %c0_79] : memref<1x128xf32, #tpu.memory_space<vmem>>, vector<1x128xf32>
    %81 = vector.broadcast %80 : vector<1x128xf32> to vector<128x128xf32>
    %82 = arith.mulf %74, %81 : vector<128x128xf32>
    %c0_80 = arith.constant 0 : index
    %c0_81 = arith.constant 0 : index
    %83 = vector.load %arg8[%c0_80, %c0_81] : memref<1x128xf32, #tpu.memory_space<vmem>>, vector<1x128xf32>
    %84 = vector.broadcast %83 : vector<1x128xf32> to vector<128x128xf32>
    %85 = arith.addf %82, %84 : vector<128x128xf32>
    %86 = arith.extf %79 : vector<128x128xbf16> to vector<128x128xf32>
    %87 = arith.addf %85, %86 : vector<128x128xf32>
    %cst_82 = arith.constant 0.000000e+00 : f32
    %88 = vector.broadcast %cst_82 : f32 to vector<128x128xf32>
    %89 = arith.maximumf %87, %88 : vector<128x128xf32>
    %90 = vector.shape_cast %89 : vector<128x128xf32> to vector<8x16x128xf32>
    %91 = arith.truncf %90 : vector<8x16x128xf32> to vector<8x16x128xbf16>
    %c0_83 = arith.constant 0 : index
    %c0_84 = arith.constant 0 : index
    %c0_85 = arith.constant 0 : index
    %c0_86 = arith.constant 0 : index
    %92 = vector.load %arg9[%c0_83, %c0_84, %c0_85, %c0_86] : memref<1x8x16x128xbf16, #tpu.memory_space<vmem>>, vector<1x8x16x128xbf16>
    %93 = vector.shape_cast %92 : vector<1x8x16x128xbf16> to vector<8x16x128xbf16>
    %94 = vector.shape_cast %91 : vector<8x16x128xbf16> to vector<1x8x16x128xbf16>
    tpu.vector_store %arg9[%c0_83, %c0_84, %c0_85, %c0_86], %94 {strides = array<i32>} : memref<1x8x16x128xbf16, #tpu.memory_space<vmem>>, vector<1x8x16x128xbf16>,
    return
  }
  func.func @transform_0(%arg0: i32, %arg1: i32) -> (i32, i32, i32, i32) {
    %c0_i32 = arith.constant 0 : i32
    %c0_i32_0 = arith.constant 0 : i32
    %c0_i32_1 = arith.constant 0 : i32
    %c0_i32_2 = arith.constant 0 : i32
    return %arg0, %c0_i32, %c0_i32_0, %c0_i32_1 : i32, i32, i32, i32
  }
  func.func @transform_1(%arg0: i32, %arg1: i32) -> (i32, i32, i32) {
    %c0_i32 = arith.constant 0 : i32
    %c0_i32_0 = arith.constant 0 : i32
    %c0_i32_1 = arith.constant 0 : i32
    %c0_i32_2 = arith.constant 0 : i32
    return %c0_i32, %c0_i32_0, %c0_i32_1 : i32, i32, i32
  }
  func.func @transform_2(%arg0: i32, %arg1: i32) -> (i32, i32, i32) {
    %c0_i32 = arith.constant 0 : i32
    %c0_i32_0 = arith.constant 0 : i32
    %c0_i32_1 = arith.constant 0 : i32
    %c0_i32_2 = arith.constant 0 : i32
    return %c0_i32, %c0_i32_0, %c0_i32_1 : i32, i32, i32
  }
  func.func @transform_3(%arg0: i32, %arg1: i32) -> (i32, i32) {
    %c0_i32 = arith.constant 0 : i32
    %c0_i32_0 = arith.constant 0 : i32
    %c0_i32_1 = arith.constant 0 : i32
    return %c0_i32, %c0_i32_0 : i32, i32
  }
  func.func @transform_4(%arg0: i32, %arg1: i32) -> (i32, i32) {
    %c0_i32 = arith.constant 0 : i32
    %c0_i32_0 = arith.constant 0 : i32
    %c0_i32_1 = arith.constant 0 : i32
    return %c0_i32, %c0_i32_0 : i32, i32
  }
  func.func @transform_5(%arg0: i32, %arg1: i32) -> (i32, i32) {
    %c0_i32 = arith.constant 0 : i32
    %c0_i32_0 = arith.constant 0 : i32
    %c0_i32_1 = arith.constant 0 : i32
    return %c0_i32, %c0_i32_0 : i32, i32
  }
  func.func @transform_6(%arg0: i32, %arg1: i32) -> (i32, i32) {
    %c0_i32 = arith.constant 0 : i32
    %c0_i32_0 = arith.constant 0 : i32
    %c0_i32_1 = arith.constant 0 : i32
    return %c0_i32, %c0_i32_0 : i32, i32
  }
  func.func @transform_7(%arg0: i32, %arg1: i32) -> (i32, i32, i32, i32) {
    %c0_i32 = arith.constant 0 : i32
    %c0_i32_0 = arith.constant 0 : i32
    %c0_i32_1 = arith.constant 0 : i32
    return %arg0, %arg1, %c0_i32, %c0_i32_0 : i32, i32, i32, i32
  }
}

</mosaic_0001>

<bundles_post_ra>
// kernel: tpu_custom_call.1
= control target key start
LH: loop header
LB: loop body
LE: loop exit
PB: predicated region body
PF: predicated region fallthrough
CT: control target
= control target key end

     0   :  { %s8694_s0 = inlined_call_operand.hbm [shape: bf16[2,20,24,128], index: 0, kind: input, shape index: {}]   ;;  %s8695_s1 = inlined_call_operand.hbm [shape: bf16[3,384,128], index: 1, kind: input, shape index: {}]   ;;  %s8696_s2 = inlined_call_operand.hbm [shape: bf16[3,384,128], index: 2, kind: input, shape index: {}]   ;;  %s8697_s3 = inlined_call_operand.vmem [shape: f32[1,128], index: 3, kind: input, shape index: {}]   ;;  %s8698_s4 = inlined_call_operand.vmem [shape: f32[1,128], index: 4, kind: input, shape index: {}]   ;;  %s8699_s5 = inlined_call_operand.vmem [shape: f32[1,128], index: 5, kind: input, shape index: {}]   ;;  %s8700_s6 = inlined_call_operand.vmem [shape: f32[1,128], index: 6, kind: input, shape index: {}]   ;;  %s8701_s7 = inlined_call_operand.hbm [shape: bf16[2,16,16,128], index: 7, kind: output, shape index: {}]  }
   0x1   :  { %8716 = sst [smem:[#allocation20_spill]] %s8695_s1 }
   0x2   :  { %8717 = sst [smem:[#allocation21_spill]] %s8696_s2 }
   0x3   :  { %8718 = sst [smem:[#allocation22_spill]] %s8700_s6 }
   0x4   :  { %8719 = sst [smem:[#allocation23_spill]] %s8701_s7 }
   0x5   :  { %12 = vsyncpa [#allocation5], 0 }
   0x6   :  { %14 = vsyncpa [#allocation5 + $0x1], 0 }
   0x7   :  { %15 = vsyncpa [#allocation8], 0 }
   0x8   :  { %16 = vsyncpa [#allocation6], 0 }
   0x9   :  { %18 = vsyncpa [#allocation6 + $0x1], 0  ;;  %s7121_s24 = smov 0   ;;  %s7123_s25 = smov 0  }
   0xa   :  { %s7125_s26 = smov 0   ;;  %s7127_s27 = smov 0  }
   0xb   :  { %s7129_s28 = smov 0   ;;  %s7131_s29 = smov 0  }
   0xc   :  { %s7133_s30 = smov 0   ;;  %s7135_s8 = smov 0  }
   0xd   :  { %s7137_s9 = smov 0   ;;  %s7139_s10 = smov 0  }
   0xe   :  { %s7141_s11 = smov 0  }
   0xf LB: > { %8720 = sst [smem:[#allocation14_spill]] %s7029_s24  ;;  %s5243_s12 = sadd.s32 4294967295, %s7069_s11   ;;  %s7069_s11 = sphi %s7141_s11, %s24_s11   ;;  %s7065_s10 = sphi %s7139_s10, %s8771_s10   ;;  %s7061_s9 = sphi %s7137_s9, %s8763_s9   ;;  %s7057_s8 = sphi %s7135_s8, %s8770_s8   ;;  %s7053_s30 = sphi %s7133_s30, %s8762_s30   ;;  %s7049_s29 = sphi %s7131_s29, %s8769_s29   ;;  %s7045_s28 = sphi %s7129_s28, %s8768_s28   ;;  %s7041_s27 = sphi %s7127_s27, %s8767_s27   ;;  %s7037_s26 = sphi %s7125_s26, %s8766_s26   ;;  %s7033_s25 = sphi %s7123_s25, %s8765_s25   ;;  %s7029_s24 = sphi %s7121_s24, %s8764_s24  }
  0x10   : > { %8721 = sst [smem:[#allocation15_spill]] %s7057_s8  ;;  %s5244_s13 = sadd.s32 4294967294, %s7069_s11  }
  0x11   : > { %8722 = sst [smem:[#allocation16_spill]] %s7061_s9  ;;  %p56_p0 = scmp.ne.s32.totalorder %s7045_s28, %s7041_s27 }
  0x12   : > { %p7177_p1 = scmp.eq.s32.totalorder %s5243_s12, 0  ;;  %p207_p2 = scmp.ne.s32.totalorder %s7037_s26, %s7033_s25 }
  0x13   : > { %p208_p4 = scmp.eq.s32.totalorder %s5243_s12, 3  ;;  %p213_p5 = scmp.ne.s32.totalorder %s7033_s25, %s7029_s24 }
  0x14   : > { %s8723_s14 = scalar_select %p7177_p1, 1, 0 }
  0x15   : > { %p7186_p3 = por %p7177_p1, %p56_p0  ;;  %p214_p6 = scmp.eq.s32.totalorder %s5244_s13, 3 }
  0x16   : > { %p7192_p7 = por %p208_p4, %p207_p2  ;;  %p5245_p8 = scmp.ge.s32.totalorder %s7069_s11, 1 }
  0x17   : > { %s8724_s16 = scalar_select %p7186_p3, 1, 0 }
  0x18   : > { %s8725_s17 = scalar_select %p7192_p7, 1, 0 }
  0x19   : > { %p7197_p9 = por %p214_p6, %p213_p5  ;;  %p221_p10 = scmp.lt.s32.totalorder %s7069_s11, 5 }
  0x1a   : > { %8726 = sst [smem:[#allocation17_spill]] %s8725_s17  ;;  %s7071_s20 = smov [#allocation7]  }
  0x1b   : > { %s8727_s18 = scalar_select %p7197_p9, 1, 0 }
  0x1c   : > { %p7202_p11 = pnand %p5245_p8, %p221_p10  ;;  %s233_s21 = sshll.u32 %s7071_s20, 4  ;;  %s234_s21 = int_to_ptr.vmem [resolvable:$true] %s233_s21 }
  0x1d   : > { %8728 = sst [smem:[#allocation18_spill]] %s8727_s18  ;;  %s7072_s23 = smov [#allocation9]  }
  0x1e   : > { %s8729_s19 = scalar_select %p7202_p11, 1, 0 }
  0x1f   : > { %p6570_p12 = pneg %p7202_p11  ;;  %s246_s27 = sshll.u32 %s7072_s23, 4  ;;  %s7214_s27 = int_to_ptr.vmem [resolvable:$true] %s246_s27 }
  0x20   : > { %s8731_s1 = sld [smem:[#allocation20_spill]] }
  0x21   : > { %p7210_p13 = pnand %p6570_p12, %p7177_p1 }
  0x23   : > { %p6859_p2 = pneg %p7210_p13 }
  0x26   : > { %s6857_s15 = scalar_lea.hbm %s8731_s1, 9216 }
  0x27   : > { %p6858_p0 = scmp.ne.s32.totalorder %s8731_s1, %s6857_s15  ;;  %p6864_p6 = scmp.lt.u32.totalorder %s6857_s15, %s8731_s1 }
  0x29   : > { %p6860_p4 = pnand %p6859_p2, %p6858_p0 }
  0x2b   : > { %p6861_p5 = pneg %p6860_p4 }
  0x2d   : > { %p6866_p8 = pnand %p6864_p6, %p6861_p5 }
  0x2f   : > { %6869 = shalt.err (!%p6866_p8)
}
  0x30   : > { %s6870_s23 = scalar_lea.vmem %s234_s21, 9216  ;;  %p6878_p7 = scmp.lt.s32.totalorder %s234_s21, %s234_s21 }
  0x31   : > { %p6871_p10 = scmp.ne.s32.totalorder %s234_s21, %s6870_s23  ;;  %p6879_p1 = scmp.lt.s32.totalorder %s6870_s23, %s6870_s23 }
  0x33   : > { %p6873_p12 = pnand %p6871_p10, %p6859_p2  ;;  %p6880_p3 = por %p6879_p1, %p6878_p7 }
  0x35   : > { %p6874_p9 = pneg %p6873_p12 }
  0x37   : > { %p6881_p11 = pnand %p6880_p3, %p6874_p9 }
  0x39   : > { %6884 = shalt.err (!%p6881_p11)
}
  0x3a   : > { %s8712_s18 = smov 64   ;;  %s8713_s12 = smov 4  }
  0x3b   : > { %6573 = dma.hbm_to_vmem [thread:$0]  (!%p7210_p13), %s8731_s1, 9216, %s234_s21, [#allocation8], %s8712_s18, %s8712_s18, %s8713_s12  }
  0x3c   : > { %s8732_s2 = sld [smem:[#allocation21_spill]] }
  0x42   : > { %s6885_s20 = scalar_lea.hbm %s8732_s2, 9216 }
  0x43   : > { %p6886_p1 = scmp.ne.s32.totalorder %s8732_s2, %s6885_s20  ;;  %p6892_p9 = scmp.lt.u32.totalorder %s6885_s20, %s8732_s2 }
  0x45   : > { %p6888_p3 = pnand %p6886_p1, %p6859_p2 }
  0x47   : > { %p6889_p7 = pneg %p6888_p3 }
  0x49   : > { %p6894_p11 = pnand %p6892_p9, %p6889_p7 }
  0x4b   : > { %6897 = shalt.err (!%p6894_p11)
}
  0x4c   : > { %s6898_s21 = scalar_lea.vmem %s7214_s27, 9216  ;;  %p6906_p6 = scmp.lt.s32.totalorder %s7214_s27, %s7214_s27 }
  0x4d   : > { %p6899_p0 = scmp.ne.s32.totalorder %s7214_s27, %s6898_s21  ;;  %p6907_p8 = scmp.lt.s32.totalorder %s6898_s21, %s6898_s21 }
  0x4f   : > { %p6901_p4 = pnand %p6899_p0, %p6859_p2  ;;  %p6908_p10 = por %p6907_p8, %p6906_p6 }
  0x51   : > { %p6902_p5 = pneg %p6901_p4 }
  0x53   : > { %p6909_p12 = pnand %p6908_p10, %p6902_p5 }
  0x55   : > { %6912 = shalt.err (!%p6909_p12)
}
  0x56   : > { %6576 = dma.hbm_to_vmem [thread:$0]  (!%p7210_p13), %s8732_s2, 9216, %s7214_s27, [#allocation8], %s8712_s18, %s8712_s18, %s8713_s12  }
  0x57   : > { %s33_s17 = sadd.s32 1, %s7061_s9  ;;  %s36_s22 = sadd.s32 1, %s7065_s10 }
  0x58   : > { %p34_p2 = scmp.ge.s32.totalorder %s33_s17, 2  ;;  %s43_s7 = sadd.s32 1, %s7049_s29 }
  0x59   : > { %p50_p1 = scmp.ne.s32.totalorder %s7049_s29, %s7045_s28  ;;  %p51_p3 = scmp.eq.s32.totalorder %s7069_s11, 0 }
  0x5a   : > { %s8773_s17 = smov (%p34_p2, %s33_s17), 0  ;;  %s8775_s22 = smov (!%p34_p2, %s36_s22), %s7065_s10 }
  0x5b   : > { %8733 = sst [smem:[#allocation19_spill]] %s8773_s17  ;;  %p7278_p7 = por %p51_p3, %p50_p1 }
  0x5c   : > { %s193_s15 = ssub.s32 %s7061_s9, %s8773_s17  ;;  %p38_p13 = scmp.ge.s32.totalorder %s8775_s22, 2 }
  0x5d   : > { %p6587_p9 = scmp.lt.s32.totalorder %s7069_s11, 4  ;;  %s272_s27 = sand.u32 1, %s7049_s29  }
  0x5e   : > { %s6556_s13 = smul.u32 3840, %s7065_s10  ;;  %s8777_s22 = smov (%p38_p13, %s8775_s22), 0 }
  0x5f   : > { %s6555_s20 = smul.u32 240, %s272_s27  ;;  %s40_s23 = ssub.s32 %s7065_s10, %s8777_s22 }
  0x60   : > { %s7294_s8 = scalar_lea.hbm %s8694_s0, %s6556_s13  ;;  %p41_p11 = scmp.eq.s32.totalorder %s40_s23, 0 }
  0x61   : > { %s194_s18 = sor.u32 %s193_s15, %s40_s23  ;;  %s8735_s1 = sadd.s32 1, %s7037_s26 }
  0x62   : > { %p195_p0 = scmp.eq.s32.totalorder %s194_s18, 0  ;;  %s276_s17 = scalar_lea.vmem [#allocation4], %s6555_s20 }
  0x63   : > { %s7297_s12 = scalar_select %p41_p11, %s7049_s29, %s43_s7  }
  0x64   : > { %s7302_s2 = scalar_select %p195_p0, %s7037_s26, %s8735_s1  }
  0x65   : > { %s283_s9 = sshll.u32 %s276_s17, 4  ;;  %p7308_p4 = pnand %p6587_p9, %p7278_p7  ;;  %s7312_s9 = int_to_ptr.vmem [resolvable:$true] %s283_s9 }
  0x66   : > { %s7314_s15 = scalar_lea.sflag [#allocation5], %s272_s27  ;;  %s6913_s18 = scalar_lea.hbm %s7294_s8, 3840 }
  0x67   : > { %p6914_p5 = scmp.ne.s32.totalorder %s7294_s8, %s6913_s18  ;;  %p6915_p6 = pneg %p7308_p4 }
  0x68   : > { %s6918_s7 = scalar_lea.hbm %s8694_s0, 7680  ;;  %p6919_p12 = scmp.lt.u32.totalorder %s7294_s8, %s8694_s0 }
  0x69   : > { %p6916_p8 = pnand %p6915_p6, %p6914_p5  ;;  %p6920_p2 = scmp.lt.u32.totalorder %s6918_s7, %s6913_s18 }
  0x6a   : > { %p6922_p3 = scmp.lt.u32.totalorder %s6913_s18, %s7294_s8 }
  0x6b   : > { %p6917_p10 = pneg %p6916_p8  ;;  %p6921_p1 = por %p6920_p2, %p6919_p12 }
  0x6d   : > { %p6923_p7 = por %p6922_p3, %p6921_p1 }
  0x6f   : > { %p6924_p13 = pnand %p6923_p7, %p6917_p10 }
  0x71   : > { %6927 = shalt.err (!%p6924_p13)
}
  0x72   : > { %s6928_s27 = scalar_lea.vmem %s7312_s9, 3840  ;;  %s7075_s20 = smov [#allocation4]  }
  0x73   : > { %p6929_p9 = scmp.ne.s32.totalorder %s7312_s9, %s6928_s27  ;;  %s6933_s23 = sshll.u32 %s7075_s20, 4  ;;  %s6934_s23 = int_to_ptr.vmem [resolvable:$false] %s6933_s23 }
  0x74   : > { %s6935_s6 = scalar_lea.vmem %s6934_s23, 7680  ;;  %p6936_p5 = scmp.lt.s32.totalorder %s7312_s9, %s6934_s23 }
  0x75   : > { %p6931_p11 = pnand %p6929_p9, %p6915_p6  ;;  %p6937_p8 = scmp.lt.s32.totalorder %s6935_s6, %s6928_s27 }
  0x77   : > { %p6932_p0 = pneg %p6931_p11  ;;  %p6938_p12 = por %p6937_p8, %p6936_p5 }
  0x79   : > { %p6939_p2 = pnand %p6938_p12, %p6932_p0 }
  0x7b   : > { %6942 = shalt.err (!%p6939_p2)
}
  0x7c   : > { %s8737_s18 = smov 4   ;;  %s8738_s1 = smov 64  }
  0x7d   : > { %6580 = dma.hbm_to_vmem [thread:$0]  (!%p7308_p4), %s7294_s8, 3840, %s7312_s9, %s7314_s15, %s8738_s1, %s8738_s1, %s8737_s18  }
  0x7e   : > { %p8739_p6 = scmp.ne.s32.totalorder %s8729_s19, 0 }
  0x7f   : > { %s297_s17 = sand.u32 (!%p8739_p6), 1, %s7045_s28   ;;  %p8740_p10 = scmp.ne.s32.totalorder (!%p8739_p6), %s8724_s16, 0 }
  0x80   : > { %295 = sbr.rel (%p8739_p6) target bundleno = 1048 (0x418), region = 48  ;;  %s298_s24 = scalar_lea.sflag (!%p8739_p6), [#allocation5], %s297_s17 }
  0x81   : > { %s7348_s7 = smul.u32 (!%p8739_p6), 240, %s297_s17 }
  0x83   : > { %s301_s13 = scalar_lea.vmem (!%p8739_p6), [#allocation4], %s7348_s7 }
  0x87   : > { %7016 = dma.done.wait (%p8740_p10), %s298_s24, 3840  }
  0x88   : > { %7018 = vsyncadd (%p8740_p10), %s298_s24, 4294963456  ;;  %p8741_p1 = scmp.ne.s32.totalorder %s8723_s14, 0 }
  0x8a   : > { %7020 = dma.done.wait (%p8741_p1), [#allocation8], 18432  }
  0x8b   : > { %7022 = vsyncadd (%p8741_p1), [#allocation8], 4294948864  ;;  %s337_s9 = sand.u32 1, %s7033_s25   ;;  %v6687_v0 = vld [vmem:[#allocation7 + $0x100] sm:$0xff]   ;;  %v6691_v4 = vld [vmem:[#allocation7 + $0x108] sm:$0xff]   ;;  %s5564_s14 = smul.u32 96, %s7053_s30 }
  0x8c   : > { %s7362_s19 = sshll.u32 %s337_s9, 6  ;;  %v6688_v1 = vld [vmem:[#allocation7 + $0xc0] sm:$0xff]   ;;  %5649 = vmatprep.subr.bf16.mxu0 %v6687_v0  ;;  %v6692_v5 = vld [vmem:[#allocation7 + $0xc8] sm:$0xff]   ;;  %v6695_v8 = vld [vmem:[#allocation7 + $0x110] sm:$0xff]   ;;  %vm490_vm0 = vsmask.f32 3328 }
  0x8d   : > { %v6689_v2 = vld [vmem:[#allocation7 + $0x40] sm:$0xff]   ;;  %5650 = vmatpush3.bf16.msra.mxu0 %v6688_v1  ;;  %v6693_v6 = vld [vmem:[#allocation7 + $0x48] sm:$0xff]   ;;  %v6696_v9 = vld [vmem:[#allocation7 + $0xd0] sm:$0xff]   ;;  %vm491_vm1 = vsmask.f32 7440  ;;  %s7367_s16 = scalar_lea.vmem %s301_s13, %s5564_s14 [#allocation4]  ;;  %vm913_vm3 = vcmask 1042432  }
  0x8e   : > { %v6690_v3 = vld [vmem:[#allocation7] sm:$0xff]   ;;  %5743 = vmatprep.subr.bf16.mxu1 %v6689_v2  ;;  %5651 = vmatprep.subr.bf16.mxu0 %v6691_v4  ;;  %v6694_v7 = vld [vmem:[#allocation7 + $0x8] sm:$0xff]   ;;  %v6697_v10 = vld [vmem:[#allocation7 + $0x50] sm:$0xff]   ;;  %vm914_vm4 = vcmask 1046532   ;;  %vm2736_vm6 = vcmask 1043456   ;;  %vm2743_vm9 = vcmask 1040384  }
  0x8f   : > { %5744 = vmatpush3.bf16.msra.mxu1 %v6690_v3  ;;  %v6698_v11 = vld [vmem:[#allocation7 + $0x10] sm:$0xff]   ;;  %v6699_v12 = vld [vmem:[#allocation7 + $0x118] sm:$0xff]   ;;  %v6703_v16 = vld [vmem:[#allocation7 + $0x120] sm:$0xff]   ;;  %vm2737_vm7 = vsmask.f32 7938  ;;  %s8107_s20 = scalar_lea.vmem [#allocation10], %s7362_s19 }
  0x90   : > { %5745 = vmatprep.subr.bf16.mxu1 %v6693_v6  ;;  %v6700_v13 = vld [vmem:[#allocation7 + $0xd8] sm:$0xff]   ;;  %v6704_v17 = vld [vmem:[#allocation7 + $0xe0] sm:$0xff]   ;;  %v6707_v20 = vld [vmem:[#allocation7 + $0x128] sm:$0xff]   ;;  %vm2533_vm8 = vsmask.f32 256  ;;  %p5399_p4 = scmp.ne.s32.totalorder %s7053_s30, 0 }
  0x91   : > { %5652 = vmatpush3.bf16.msra.mxu0 %v6692_v5  ;;  %v6701_v14 = vld [vmem:[#allocation7 + $0x58] sm:$0xff]   ;;  %v6705_v18 = vld [vmem:[#allocation7 + $0x60] sm:$0xff]   ;;  %v6708_v21 = vld [vmem:[#allocation7 + $0xe8] sm:$0xff]   ;;  %vm2534_vm10 = vsmask.f32 4368 }
  0x92   : > { %5653 = vmatprep.subr.bf16.mxu0 %v6695_v8  ;;  %v6702_v15 = vld [vmem:[#allocation7 + $0x18] sm:$0xff]   ;;  %v6706_v19 = vld [vmem:[#allocation7 + $0x20] sm:$0xff]   ;;  %v6709_v22 = vld [vmem:[#allocation7 + $0x68] sm:$0xff]  }
  0x93   : > { %5746 = vmatpush3.bf16.msra.mxu1 %v6694_v7  ;;  %v6710_v23 = vld [vmem:[#allocation7 + $0x28] sm:$0xff]   ;;  %v6711_v24 = vld [vmem:[#allocation7 + $0x130] sm:$0xff]   ;;  %v6715_v28 = vld [vmem:[#allocation7 + $0x138] sm:$0xff]  }
  0x94   : > { %5747 = vmatprep.subr.bf16.mxu1 %v6697_v10  ;;  %v6712_v25 = vld [vmem:[#allocation7 + $0xf0] sm:$0xff]   ;;  %v6716_v29 = vld [vmem:[#allocation7 + $0xf8] sm:$0xff]   ;;  %v6720_v48 = vld [vmem:[#allocation7 + $0x140] sm:$0xff]  }
  0x95   : > { %5654 = vmatpush3.bf16.msra.mxu0 %v6696_v9  ;;  %v6713_v26 = vld [vmem:[#allocation7 + $0x70] sm:$0xff]   ;;  %v6717_v30 = vld [vmem:[#allocation7 + $0x78] sm:$0xff]   ;;  %v454_v49 = vld [vmem:[%s7367_s16] sm:$0xf] }
  0x96   : > { %5655 = vmatprep.subr.bf16.mxu0 %v6699_v12  ;;  %v6714_v27 = vld [vmem:[#allocation7 + $0x30] sm:$0xff]   ;;  %v458_v32 = vld [vmem:[%s7367_s16 + $0x10] sm:$0xf]  ;;  %v459_v33 = vld [vmem:[%s7367_s16 + $0x14] sm:$0x1]  ;;  %v494_v53 = vshrl.u32 %v454_v49, 16 }
  0x97   : > { %5748 = vmatpush3.bf16.msra.mxu1 %v6698_v11  ;;  %v457_v31 = vld [vmem:[%s7367_s16 + $0xc] sm:$0xf]  ;;  %v527_v36 = vshll.u32 %v458_v32, 16  ;;  %v531_v37 = vshrl.u32 %v458_v32, 16  ;;  %v537_v38 = vshll.u32 %v459_v33, 16  ;;  %v6718_v39 = vld [vmem:[#allocation7 + $0x38] sm:$0xff]   ;;  %vm7379_vm2 = vmor %vm490_vm0, %vm491_vm1 }
  0x98   : > { %5749 = vmatprep.subr.bf16.mxu1 %v6701_v14  ;;  %v518_v34 = vshrl.u32 %v457_v31, 16  ;;  %v521_v35 = vshll.u32 %v457_v31, 16  ;;  %v7373_v44 = vld [vmem:[%s7367_s16 + $0xc] sm:$0xff]   ;;  %v455_v50 = vld [vmem:[%s7367_s16 + $0x4] sm:$0xf]  ;;  %v497_v54 = vshll.u32 %v454_v49, 16  ;;  %vm7517_vm5 = vmor %vm913_vm3, %vm914_vm4 }
  0x99   : > { %5656 = vmatpush3.bf16.msra.mxu0 %v6700_v13  ;;  %v529_v42 = vrot.slane %v527_v36, 5  ;;  %v533_v43 = vrot.slane %v531_v37, 4  ;;  %v539_v47 = vrot.slane %v537_v38, 5  ;;  %443 = vst [vmem:[#allocation2 + $0x18] sm:$0xff] %v7373_v44  ;;  %v456_v52 = vld [vmem:[%s7367_s16 + $0x8] sm:$0x1]  ;;  %vm7896_vm11 = vmand %vm2736_vm6, %vm2737_vm7 }
  0x9a   : > { %5657 = vmatprep.subr.bf16.mxu0 %v6703_v16  ;;  %v520_v40 = vrot.slane %v518_v34, 4  ;;  %v523_v41 = vrot.slane %v521_v35, 5  ;;  %v503_v55 = vshll.u32 %v455_v50, 16  ;;  %v507_v56 = vshrl.u32 %v455_v50, 16  ;;  %v6721_v60 = vld [vmem:[%s7367_s16] sm:$0xff]   ;;  %v7393_v6 = vld [vmem:[%s7367_s16 + $0x18] sm:$0xff]   ;;  %vm7905_vm12 = vmand %vm2743_vm9, %vm2533_vm8 }
  0x9b   : > { %5750 = vmatpush3.bf16.msra.mxu1 %v6702_v15  ;;  %v534_v46 = vor.u32 %v533_v43, %v529_v42  ;;  %v513_v59 = vshll.u32 %v456_v52, 16  ;;  %v496_v61 = vrot.slane %v494_v53, 4  ;;  %v499_v62 = vrot.slane %v497_v54, 5  ;;  %v460_v4 = vld [vmem:[%s7367_s16 + $0x18] sm:$0xf]  ;;  %v6723_v12 = vld [vmem:[#allocation7 + $0x148] sm:$0xff]   ;;  %vm7913_vm13 = vmor %vm2533_vm8, %vm2534_vm10 }
  0x9c   : > { %5751 = vmatprep.subr.bf16.mxu1 %v6705_v18  ;;  %v524_v45 = vor.u32 %v523_v41, %v520_v40  ;;  %v505_v63 = vrot.slane %v503_v55, 5  ;;  %v509_v0 = vrot.slane %v507_v56, 4  ;;  %v461_v5 = vld [vmem:[%s7367_s16 + $0x1c] sm:$0xf]  ;;  %v462_v10 = vld [vmem:[%s7367_s16 + $0x20] sm:$0x1]  ;;  %vm7943_vm14 = vmand %vm2743_vm9, %vm2737_vm7 }
  0x9d   : > { %5658 = vmatpush3.bf16.msra.mxu0 %v6704_v17  ;;  %v535_v58 = vrot.slane %v534_v46, 4  ;;  %v515_v3 = vrot.slane %v513_v59, 5  ;;  %v500_v8 = vor.u32 %v499_v62, %v496_v61  ;;  %v542_v11 = vshrl.u32 %v460_v4, 16  ;;  %444 = vst [vmem:[#allocation2 + $0x30] sm:$0xff] %v7393_v6  ;;  %v6725_v34 = vld [vmem:[#allocation7 + $0x150] sm:$0xff]  }
  0x9e   : > { %5659 = vmatprep.subr.bf16.mxu0 %v6707_v20  ;;  %v525_v57 = vrot.slane %v524_v45, 4  ;;  %v510_v9 = vor.u32 %v509_v0, %v505_v63  ;;  %v545_v13 = vshll.u32 %v460_v4, 16  ;;  %v551_v14 = vshll.u32 %v461_v5, 16  ;;  %v7398_v20 = vld [vmem:[%s7367_s16 + $0x24] sm:$0xff]   ;;  %v467_v52 = vld [vmem:[%s7367_s16 + $0x34] sm:$0xf] }
  0x9f   : > { %5752 = vmatpush3.bf16.msra.mxu1 %v6706_v19  ;;  %v540_v2 = vsel %vm7379_vm2, %v535_v58, %v539_v47  ;;  %v555_v15 = vshrl.u32 %v461_v5, 16  ;;  %v561_v16 = vshll.u32 %v462_v10, 16  ;;  %v501_v17 = vrot.slane %v500_v8, 4  ;;  %445 = vst [vmem:[#allocation2 + $0x48] sm:$0xff] %v7398_v20  ;;  %v468_v53 = vld [vmem:[%s7367_s16 + $0x38] sm:$0x1] }
  0xa0   : > { %5753 = vmatprep.subr.bf16.mxu1 %v6709_v22  ;;  %v530_v1 = vsel %vm7379_vm2, %v525_v57, %v529_v42  ;;  %v511_v18 = vrot.slane %v510_v9, 4  ;;  %v544_v19 = vrot.slane %v542_v11, 4  ;;  %v553_v22 = vrot.slane %v551_v14, 5  ;;  %v7410_v42 = vld [vmem:[%s7367_s16 + $0x30] sm:$0xff]   ;;  %v7421_v4 = vld [vmem:[%s7367_s16 + $0x3c] sm:$0xff]  }
  0xa1   : > { %5660 = vmatpush3.bf16.msra.mxu0 %v6708_v21  ;;  %v5270_v7 = vcombine.low %v530_v1, %v540_v2  ;;  %v547_v21 = vrot.slane %v545_v13, 5  ;;  %446 = vst [vmem:[#allocation2 + $0x60] sm:$0xff] %v7410_v42  ;;  %v599_v59 = vshll.u32 %v467_v52, 16  ;;  %v609_v0 = vshll.u32 %v468_v53, 16  ;;  %v469_v9 = vld [vmem:[%s7367_s16 + $0x3c] sm:$0xf] }
  0xa2   : > { %5661 = vmatprep.subr.bf16.mxu0 %v6711_v24  ;;  %v563_v24 = vrot.slane %v561_v16, 5  ;;  %v470_v10 = vld [vmem:[%s7367_s16 + $0x40] sm:$0xf]  ;;  %v471_v13 = vld [vmem:[%s7367_s16 + $0x44] sm:$0x1]  ;;  %v614_v14 = vshrl.u32 %v469_v9, 16 }
  0xa3   : > { %5754 = vmatpush3.bf16.msra.mxu1 %v6710_v23  ;;  %1366 = vmatprep.mubr.bf16.mxu0 %v5270_v7  ;;  %v557_v23 = vrot.slane %v555_v15, 4  ;;  %v548_v31 = vor.u32 %v547_v21, %v544_v19  ;;  %v611_v8 = vrot.slane %v609_v0, 5  ;;  %v617_v15 = vshll.u32 %v469_v9, 16  ;;  %447 = vst [vmem:[#allocation2 + $0x78] sm:$0xff] %v7421_v4  ;;  %v472_v21 = vld [vmem:[%s7367_s16 + $0x48] sm:$0xf] }
  0xa4   : > { %5755 = vmatprep.subr.bf16.mxu1 %v6713_v26  ;;  %v516_v26 = vsel %vm7379_vm2, %v511_v18, %v515_v3  ;;  %v601_v3 = vrot.slane %v599_v59, 5  ;;  %v623_v19 = vshll.u32 %v470_v10, 16 }
  0xa5   : > { %5662 = vmatpush3.bf16.msra.mxu0 %v6712_v25  ;;  %v506_v25 = vsel %vm7379_vm2, %v501_v17, %v505_v63  ;;  %v558_v32 = vor.u32 %v557_v23, %v553_v22  ;;  %v603_v63 = vshrl.u32 %v467_v52, 16  ;;  %v619_v23 = vrot.slane %v617_v15, 5  ;;  %v7452_v52 = vld [vmem:[%s7367_s16 + $0x54] sm:$0xff]  }
  0xa6   : > { %5663 = vmatprep.subr.bf16.mxu0 %v6715_v28  ;;  %v464_v28 = vld [vmem:[%s7367_s16 + $0x28] sm:$0xf] }
  0xa7   : > { %5756 = vmatpush3.bf16.msra.mxu1 %v6714_v27  ;;  %v463_v27 = vld [vmem:[%s7367_s16 + $0x24] sm:$0xf]  ;;  %v575_v36 = vshll.u32 %v464_v28, 16  ;;  %v579_v37 = vshrl.u32 %v464_v28, 16  ;;  %v559_v40 = vrot.slane %v558_v32, 4  ;;  %v7443_v32 = vld [vmem:[%s7367_s16 + $0x48] sm:$0xff]  }
  0xa8   : > { %5757 = vmatprep.subr.bf16.mxu1 %v6717_v30  ;;  %v5269_v30 = vcombine.low %v506_v25, %v516_v26  ;;  %v566_v33 = vshrl.u32 %v463_v27, 16  ;;  %v569_v35 = vshll.u32 %v463_v27, 16  ;;  %v633_v25 = vshll.u32 %v471_v13, 16  ;;  %v473_v26 = vld [vmem:[%s7367_s16 + $0x4c] sm:$0xf]  ;;  %448 = vst [vmem:[#allocation2 + $0x90] sm:$0xff] %v7443_v32 }
  0xa9   : > { %5664 = vmatpush3.bf16.msra.mxu0 %v6716_v29  ;;  %v465_v29 = vld [vmem:[%s7367_s16 + $0x2c] sm:$0x1]  ;;  %v577_v45 = vrot.slane %v575_v36, 5  ;;  %v581_v46 = vrot.slane %v579_v37, 4  ;;  %v564_v50 = vsel %vm7379_vm2, %v559_v40, %v563_v24  ;;  %v627_v24 = vshrl.u32 %v470_v10, 16  ;;  %v6730_v36 = vld [vmem:[#allocation7 + $0x160] sm:$0xff]  }
  0xaa   : > { %6171 = vmatprep.subr.bf16.mxu0 %v6720_v48  ;;  %v585_v38 = vshll.u32 %v465_v29, 16  ;;  %1736 = vmatprep.mubr.bf16.mxu1 %v5269_v30  ;;  %v568_v41 = vrot.slane %v566_v33, 4  ;;  %v571_v43 = vrot.slane %v569_v35, 5  ;;  %v625_v29 = vrot.slane %v623_v19, 5  ;;  %v474_v30 = vld [vmem:[%s7367_s16 + $0x50] sm:$0x1] }
  0xab   : > { %5758 = vmatpush3.bf16.msra.mxu1 %v6718_v39  ;;  %v549_v39 = vrot.slane %v548_v31, 4  ;;  %v582_v58 = vor.u32 %v581_v46, %v577_v45  ;;  %v638_v31 = vshrl.u32 %v472_v21, 16  ;;  %v629_v33 = vrot.slane %v627_v24, 4  ;;  %v7468_v10 = vld [vmem:[%s7367_s16 + $0x60] sm:$0xff]  }
  0xac   : > { %1367 = vmatmul.mubr.bf16.vlgmr.msra.gmra.mrb[0].mxu0 %v7373_v44  ;;  %v587_v47 = vrot.slane %v585_v38, 5  ;;  %v572_v57 = vor.u32 %v571_v43, %v568_v41  ;;  %v641_v35 = vshll.u32 %v472_v21, 16  ;;  %v651_v40 = vshrl.u32 %v473_v26, 16  ;;  %v6731_v41 = vld [vmem:[#allocation7 + $0x80] sm:$0xff]  }
  0xad   : > { %6172 = vmatpush3.bf16.msra.mxu0 %v6720_v48  ;;  %v466_v48 = vld [vmem:[%s7367_s16 + $0x30] sm:$0xf]  ;;  %v554_v49 = vsel %vm7379_vm2, %v549_v39, %v553_v22  ;;  %v583_v2 = vrot.slane %v582_v58, 4  ;;  %v616_v22 = vrot.slane %v614_v14, 4  ;;  %v640_v38 = vrot.slane %v638_v31, 4  ;;  %6207 = vmatprep.subr.bf16.mxu1 %v6731_v41  ;;  %v6736_v14 = vld [vmem:[#allocation7 + $0x90] sm:$0xff]  }
  0xae   : > { %6173 = vmatprep.subr.bf16.mxu0 %v6723_v12  ;;  %1737 = vmatmul.mubr.bf16.vlgmr.msra.gmra.mrb[0].mxu1 %v6721_v60  ;;  %v590_v54 = vshrl.u32 %v466_v48, 16  ;;  %v593_v55 = vshll.u32 %v466_v48, 16  ;;  %v5271_v56 = vcombine.low %v554_v49, %v564_v50  ;;  %v6727_v60 = vld [vmem:[#allocation7 + $0x158] sm:$0xff]   ;;  %v573_v1 = vrot.slane %v572_v57, 4  ;;  %v6733_v57 = vld [vmem:[#allocation7 + $0x168] sm:$0xff]  }
  0xaf   : > { %1744 = vmatprep.mubr.bf16.mxu1 %v5270_v7  ;;  %v605_v7 = vrot.slane %v603_v63, 4  ;;  %v647_v39 = vshll.u32 %v473_v26, 16  ;;  %v630_v46 = vor.u32 %v629_v33, %v625_v29  ;;  %v653_v49 = vrot.slane %v651_v40, 4  ;;  %6208 = vmatpush3.bf16.msra.mxu1 %v6731_v41  ;;  %v480_v26 = vld [vmem:[%s7367_s16 + $0x68] sm:$0x1]  ;;  %v6740_v41 = vld [vmem:[#allocation7 + $0xa0] sm:$0xff]  }
  0xb0   : > { %v592_v61 = vrot.slane %v590_v54, 4  ;;  %v595_v62 = vrot.slane %v593_v55, 5  ;;  %831 = vst [vmem:[#allocation2 + $0x38] sm:$0xff] %v5271_v56  ;;  %1374 = vmatprep.mubr.bf16.mxu0 %v5271_v56  ;;  %v578_v11 = vsel %vm7379_vm2, %v573_v1, %v577_v45  ;;  %v657_v50 = vshll.u32 %v474_v30, 16 }
  0xb1   : > { %6174 = vmatpush3.bf16.msra.mxu0 %v6723_v12  ;;  %v588_v12 = vsel %vm7379_vm2, %v583_v2, %v587_v47  ;;  %v606_v18 = vor.u32 %v605_v7, %v601_v3  ;;  %v643_v47 = vrot.slane %v641_v35, 5  ;;  %v649_v48 = vrot.slane %v647_v39, 5 }
  0xb2   : > { %6175 = vmatprep.subr.bf16.mxu0 %v6725_v34  ;;  %v596_v5 = vor.u32 %v595_v62, %v592_v61  ;;  %v7432_v16 = vcombine.low %v578_v11, %v588_v12  ;;  %v631_v54 = vrot.slane %v630_v46, 4  ;;  %v659_v59 = vrot.slane %v657_v50, 5  ;;  %v477_v61 = vld [vmem:[%s7367_s16 + $0x5c] sm:$0x1]  ;;  %v482_v50 = vld [vmem:[%s7367_s16 + $0x70] sm:$0xf] }
  0xb3   : > { %v607_v28 = vrot.slane %v606_v18, 4  ;;  %v644_v55 = vor.u32 %v643_v47, %v640_v38  ;;  %v654_v58 = vor.u32 %v653_v49, %v649_v48  ;;  %v681_v13 = vshll.u32 %v477_v61, 16 }
  0xb4   : > { %1375 = vmatmul.mubr.bf16.gmra.mrb[4].mxu0 %v7393_v6  ;;  %v597_v17 = vrot.slane %v596_v5, 4  ;;  %832 = vst [vmem:[#allocation2 + $0x50] sm:$0xff] %v7432_v16 }
  0xb5   : > { %6176 = vmatpush3.bf16.msra.mxu0 %v6725_v34  ;;  %1382 = vmatprep.mubr.bf16.mxu0 %v7432_v16  ;;  %v635_v34 = vrot.slane %v633_v25, 5  ;;  %v612_v37 = vsel %vm7379_vm2, %v607_v28, %v611_v8  ;;  %v645_v0 = vrot.slane %v644_v55, 4  ;;  %v655_v7 = vrot.slane %v654_v58, 4  ;;  %v479_v25 = vld [vmem:[%s7367_s16 + $0x64] sm:$0xf] }
  0xb6   : > { %6177 = vmatprep.subr.bf16.mxu0 %v6727_v60  ;;  %1745 = vmatmul.mubr.bf16.gmra.mrb[4].mxu1 %v7373_v44  ;;  %v602_v27 = vsel %vm7379_vm2, %v597_v17, %v601_v3  ;;  %v620_v44 = vor.u32 %v619_v23, %v616_v22  ;;  %v6734_v3 = vld [vmem:[#allocation7 + $0x88] sm:$0xff]   ;;  %v6737_v17 = vld [vmem:[#allocation7 + $0x170] sm:$0xff]   ;;  %v683_v21 = vrot.slane %v681_v13, 5  ;;  %v6738_v23 = vld [vmem:[#allocation7 + $0x98] sm:$0xff]   ;;  %v695_v30 = vshll.u32 %v479_v25, 16 }
  0xb7   : > { %1752 = vmatprep.mubr.bf16.mxu1 %v5271_v56  ;;  %v7448_v43 = vcombine.low %v602_v27, %v612_v37  ;;  %v475_v56 = vld [vmem:[%s7367_s16 + $0x54] sm:$0xf]  ;;  %v636_v63 = vsel %vm7379_vm2, %v631_v54, %v635_v34  ;;  %6209 = vmatprep.subr.bf16.mxu1 %v6734_v3  ;;  %v660_v15 = vsel %vm7379_vm2, %v655_v7, %v659_v59  ;;  %v478_v22 = vld [vmem:[%s7367_s16 + $0x60] sm:$0xf]  ;;  %v699_v31 = vshrl.u32 %v479_v25, 16 }
  0xb8   : > { %v621_v45 = vrot.slane %v620_v44, 4  ;;  %v662_v62 = vshrl.u32 %v475_v56, 16  ;;  %v665_v1 = vshll.u32 %v475_v56, 16  ;;  %6210 = vmatpush3.bf16.msra.mxu1 %v6734_v3  ;;  %v686_v27 = vshrl.u32 %v478_v22, 16  ;;  %v6742_v7 = vld [vmem:[#allocation7 + $0xa8] sm:$0xff]  }
  0xb9   : > { %6178 = vmatpush3.bf16.msra.mxu0 %v6727_v60  ;;  %833 = vst [vmem:[#allocation2 + $0x68] sm:$0xff] %v7448_v43  ;;  %v476_v60 = vld [vmem:[%s7367_s16 + $0x58] sm:$0xf]  ;;  %6211 = vmatprep.subr.bf16.mxu1 %v6736_v14  ;;  %v689_v28 = vshll.u32 %v478_v22, 16  ;;  %v705_v44 = vshll.u32 %v480_v26, 16  ;;  %v697_v38 = vrot.slane %v695_v30, 5 }
  0xba   : > { %6179 = vmatprep.subr.bf16.mxu0 %v6730_v36  ;;  %v626_v53 = vsel %vm7379_vm2, %v621_v45, %v625_v29  ;;  %v671_v2 = vshll.u32 %v476_v60, 16  ;;  %v664_v8 = vrot.slane %v662_v62, 4  ;;  %v675_v9 = vshrl.u32 %v476_v60, 16 }
  0xbb   : > { %v7465_v5 = vcombine.low %v626_v53, %v636_v63  ;;  %v667_v11 = vrot.slane %v665_v1, 5  ;;  %v688_v34 = vrot.slane %v686_v27, 4  ;;  %v691_v35 = vrot.slane %v689_v28, 5  ;;  %v483_v53 = vld [vmem:[%s7367_s16 + $0x74] sm:$0x1] }
  0xbc   : > { %1383 = vmatmul.mubr.bf16.gmra.mrb[8].mxu0 %v7398_v20  ;;  %v673_v12 = vrot.slane %v671_v2, 5  ;;  %6212 = vmatpush3.bf16.msra.mxu1 %v6736_v14  ;;  %v701_v39 = vrot.slane %v699_v31, 4  ;;  %v707_v40 = vrot.slane %v705_v44, 5  ;;  %v723_v58 = vshrl.u32 %v482_v50, 16  ;;  %v6741_v1 = vld [vmem:[#allocation7 + $0x178] sm:$0xff]   ;;  %v6744_v31 = vld [vmem:[#allocation7 + $0xb0] sm:$0xff]  }
  0xbd   : > { %1390 = vmatprep.mubr.bf16.mxu0 %v7448_v43  ;;  %6180 = vmatpush3.bf16.msra.mxu0 %v6730_v36  ;;  %v668_v19 = vor.u32 %v667_v11, %v664_v8  ;;  %v7482_v36 = vld [vmem:[%s7367_s16 + $0x6c] sm:$0xff]   ;;  %v692_v46 = vor.u32 %v691_v35, %v688_v34  ;;  %v729_v60 = vshll.u32 %v483_v53, 16  ;;  %v485_v11 = vld [vmem:[%s7367_s16 + $0x7c] sm:$0xf] }
  0xbe   : > { %1753 = vmatmul.mubr.bf16.gmra.mrb[8].mxu1 %v7393_v6  ;;  %6181 = vmatprep.subr.bf16.mxu0 %v6733_v57  ;;  %v650_v6 = vsel %vm7379_vm2, %v645_v0, %v649_v48  ;;  %v481_v48 = vld [vmem:[%s7367_s16 + $0x6c] sm:$0xf]  ;;  %v725_v0 = vrot.slane %v723_v58, 4  ;;  %v6745_v34 = vld [vmem:[#allocation7 + $0xb8] sm:$0xff]  }
  0xbf   : > { %1760 = vmatprep.mubr.bf16.mxu1 %v7432_v16  ;;  %v677_v16 = vrot.slane %v675_v9, 4  ;;  %v7474_v18 = vcombine.low %v650_v6, %v660_v15  ;;  %v669_v29 = vrot.slane %v668_v19, 4  ;;  %6213 = vmatprep.subr.bf16.mxu1 %v6738_v23  ;;  %v693_v49 = vrot.slane %v692_v46, 4  ;;  %v484_v6 = vld [vmem:[%s7367_s16 + $0x78] sm:$0xf] }
  0xc0   : > { %v710_v54 = vshrl.u32 %v481_v48, 16  ;;  %6214 = vmatpush3.bf16.msra.mxu1 %v6738_v23  ;;  %v713_v56 = vshll.u32 %v481_v48, 16  ;;  %v731_v3 = vrot.slane %v729_v60, 5  ;;  %v734_v13 = vshrl.u32 %v484_v6, 16  ;;  %v7509_v23 = vld [vmem:[%s7367_s16 + $0x78] sm:$0xff]  }
  0xc1   : > { %6182 = vmatpush3.bf16.msra.mxu0 %v6733_v57  ;;  %v678_v24 = vor.u32 %v677_v16, %v673_v12  ;;  %v674_v37 = vsel %vm7379_vm2, %v669_v29, %v673_v12  ;;  %v719_v57 = vshll.u32 %v482_v50, 16  ;;  %6215 = vmatprep.subr.bf16.mxu1 %v6740_v41  ;;  %v486_v12 = vld [vmem:[%s7367_s16 + $0x80] sm:$0x1]  ;;  %v737_v14 = vshll.u32 %v484_v6, 16  ;;  %v844_v35 = vld [vmem:[%s7367_s16 + $0xc] sm:$0xe] }
  0xc2   : > { %6183 = vmatprep.subr.bf16.mxu0 %v6737_v17  ;;  %v712_v59 = vrot.slane %v710_v54, 4  ;;  %v715_v62 = vrot.slane %v713_v56, 5  ;;  %v747_v19 = vshrl.u32 %v485_v11, 16  ;;  %v847_v48 = vld [vmem:[%s7367_s16 + $0x18] sm:$0xe] }
  0xc3   : > { %v679_v33 = vrot.slane %v678_v24, 4  ;;  %v721_v63 = vrot.slane %v719_v57, 5  ;;  %v739_v22 = vrot.slane %v737_v14, 5  ;;  %v5283_v56 = vrot.slane %v847_v48, 9  ;;  %v851_v14 = vld [vmem:[%s7367_s16 + $0x28] sm:$0xf] }
  0xc4   : > { %1391 = vmatmul.mubr.bf16.gmra.mrb[12].mxu0 %v7410_v42  ;;  %6216 = vmatpush3.bf16.msra.mxu1 %v6740_v41  ;;  %v716_v8 = vor.u32 %v715_v62, %v712_v59  ;;  %v749_v27 = vrot.slane %v747_v19, 4  ;;  %v843_v62 = vld [vmem:[%s7367_s16 + $0x8] sm:$0x1]  ;;  %v939_v19 = vrot.slane %v851_v14, 5  ;;  %v866_v14 = vld [vmem:[%s7367_s16 + $0x64] sm:$0xf] }
  0xc5   : > { %1398 = vmatprep.mubr.bf16.mxu0 %v7465_v5  ;;  %6184 = vmatpush3.bf16.msra.mxu0 %v6737_v17  ;;  %v684_v45 = vsel %vm7379_vm2, %v679_v33, %v683_v21  ;;  %v726_v9 = vor.u32 %v725_v0, %v721_v63  ;;  %v743_v17 = vshll.u32 %v485_v11, 16  ;;  %v736_v21 = vrot.slane %v734_v13, 4  ;;  %v850_v13 = vld [vmem:[%s7367_s16 + $0x24] sm:$0xe] }
  0xc6   : > { %1761 = vmatmul.mubr.bf16.gmra.mrb[12].mxu1 %v7398_v20  ;;  %v7490_v47 = vcombine.low %v674_v37, %v684_v45  ;;  %v702_v20 = vor.u32 %v701_v39, %v697_v38  ;;  %6185 = vmatprep.subr.bf16.mxu0 %v6741_v1  ;;  %v717_v15 = vrot.slane %v716_v8, 4  ;;  %v845_v37 = vld [vmem:[%s7367_s16 + $0x10] sm:$0xf]  ;;  %v846_v39 = vld [vmem:[%s7367_s16 + $0x14] sm:$0x1]  ;;  %v6746_v45 = vld [vmem:[#allocation7 + $0x1c0] sm:$0xff]  }
  0xc7   : > { %1768 = vmatprep.mubr.bf16.mxu1 %v7448_v43  ;;  %v698_v43 = vsel %vm7379_vm2, %v693_v49, %v697_v38  ;;  %6217 = vmatprep.subr.bf16.mxu1 %v6742_v7  ;;  %v727_v16 = vrot.slane %v726_v9, 4  ;;  %v745_v26 = vrot.slane %v743_v17, 5  ;;  %v740_v30 = vor.u32 %v739_v22, %v736_v21  ;;  %v848_v49 = vld [vmem:[%s7367_s16 + $0x1c] sm:$0xf]  ;;  %v853_v22 = vld [vmem:[%s7367_s16 + $0x30] sm:$0xe] }
  0xc8   : > { %v703_v55 = vrot.slane %v702_v20, 4  ;;  %6218 = vmatpush3.bf16.msra.mxu1 %v6742_v7  ;;  %v722_v24 = vsel %vm7379_vm2, %v717_v15, %v721_v63  ;;  %v925_v41 = vrot.slane %v845_v37, 5  ;;  %v928_v20 = vrot.slane %v846_v39, 5  ;;  %v852_v15 = vld [vmem:[%s7367_s16 + $0x2c] sm:$0x1] }
  0xc9   : > { %6186 = vmatpush3.bf16.msra.mxu0 %v6741_v1  ;;  %v732_v25 = vsel %vm7379_vm2, %v727_v16, %v731_v3  ;;  %v750_v44 = vor.u32 %v749_v27, %v745_v26  ;;  %v741_v38 = vrot.slane %v740_v30, 4  ;;  %6219 = vmatprep.subr.bf16.mxu1 %v6744_v31  ;;  %v932_v57 = vrot.slane %v848_v49, 5  ;;  %v859_v49 = vld [vmem:[%s7367_s16 + $0x48] sm:$0xe] }
  0xca   : > { %v708_v61 = vsel %vm7379_vm2, %v703_v55, %v707_v40  ;;  %v7522_v29 = vcombine.low %v722_v24, %v732_v25  ;;  %v5282_v40 = vrot.slane %v844_v35, 9  ;;  %v927_v54 = vrot.slane %v925_v41, 4  ;;  %v849_v55 = vld [vmem:[%s7367_s16 + $0x20] sm:$0x1]  ;;  %5837 = vmatprep.subr.bf16.mxu0 %v6746_v45  ;;  %v854_v24 = vld [vmem:[%s7367_s16 + $0x34] sm:$0xf] }
  0xcb   : > { %v7501_v2 = vcombine.low %v698_v43, %v708_v61  ;;  %v751_v46 = vrot.slane %v750_v44, 4  ;;  %v746_v50 = vsel %vm7379_vm2, %v741_v38, %v745_v26  ;;  %v935_v58 = vrot.slane %v849_v55, 5  ;;  %v841_v43 = vld [vmem:[%s7367_s16] sm:$0xe]  ;;  %v842_v61 = vld [vmem:[%s7367_s16 + $0x4] sm:$0xf] }
  0xcc   : > { %1399 = vmatmul.mubr.bf16.gmra.mrb[16].mxu0 %v7421_v4  ;;  %6220 = vmatpush3.bf16.msra.mxu1 %v6744_v31  ;;  %v926_v53 = vsel %vm7517_vm5, %v5282_v40, %v925_v41  ;;  %v929_v60 = vsel %vm7517_vm5, %v927_v54, %v928_v20  ;;  %v5281_v63 = vrot.slane %v841_v43, 9  ;;  %v933_v1 = vsel %vm7517_vm5, %v5283_v56, %v932_v57  ;;  %v855_v25 = vld [vmem:[%s7367_s16 + $0x38] sm:$0x1]  ;;  %v856_v38 = vld [vmem:[%s7367_s16 + $0x3c] sm:$0xe] }
  0xcd   : > { %1406 = vmatprep.mubr.bf16.mxu0 %v7474_v18  ;;  %6221 = vmatprep.subr.bf16.mxu1 %v6745_v34  ;;  %v7546_v0 = vcombine.low %v926_v53, %v929_v60  ;;  %v934_v3 = vrot.slane %v932_v57, 4  ;;  %v918_v7 = vrot.slane %v842_v61, 5  ;;  %v921_v8 = vrot.slane %v843_v62, 5  ;;  %v7575_v26 = vld [vmem:[#allocation7 + $0x200] sm:$0xff]   ;;  %v857_v40 = vld [vmem:[%s7367_s16 + $0x40] sm:$0xf] }
  0xce   : > { %1769 = vmatmul.mubr.bf16.gmra.mrb[16].mxu1 %v7410_v42  ;;  %v753_v42 = vshll.u32 %v486_v12, 16  ;;  %v5284_v17 = vrot.slane %v850_v13, 9  ;;  %v942_v21 = vrot.slane %v852_v15, 5  ;;  %v941_v30 = vrot.slane %v939_v19, 4  ;;  %v858_v41 = vld [vmem:[%s7367_s16 + $0x44] sm:$0x1] }
  0xcf   : > { %1776 = vmatprep.mubr.bf16.mxu1 %v7465_v5  ;;  %v936_v9 = vsel %vm7517_vm5, %v934_v3, %v935_v58  ;;  %v7556_v6 = vsel %vm7517_vm5, %v5281_v63, %v918_v7  ;;  %v920_v11 = vrot.slane %v918_v7, 4  ;;  %v946_v31 = vrot.slane %v854_v24, 5  ;;  %v861_v53 = vld [vmem:[%s7367_s16 + $0x50] sm:$0x1]  ;;  %v863_v3 = vld [vmem:[%s7367_s16 + $0x58] sm:$0xf] }
  0xd0   : > { %v755_v33 = vrot.slane %v753_v42, 5  ;;  %6222 = vmatpush3.bf16.msra.mxu1 %v6745_v34  ;;  %v7558_v12 = vcombine.low %v933_v1, %v936_v9  ;;  %v940_v27 = vsel %vm7517_vm5, %v5284_v17, %v939_v19  ;;  %v949_v44 = vrot.slane %v855_v25, 5  ;;  %v862_v1 = vld [vmem:[%s7367_s16 + $0x54] sm:$0xe]  ;;  %v864_v7 = vld [vmem:[%s7367_s16 + $0x5c] sm:$0x1] }
  0xd1   : > { %v7566_v16 = vsel %vm7517_vm5, %v920_v11, %v921_v8  ;;  %6243 = vmatprep.subr.bf16.mxu1 %v7575_v26  ;;  %v948_v35 = vrot.slane %v946_v31, 4  ;;  %v5286_v45 = vrot.slane %v856_v38, 9  ;;  %v953_v20 = vrot.slane %v857_v40, 5  ;;  %v865_v11 = vld [vmem:[%s7367_s16 + $0x60] sm:$0xe]  ;;  %v6747_v40 = vld [vmem:[#allocation7 + $0x180] sm:$0xff]  }
  0xd2   : > { %1050 = vst [vmem:[#allocation2 + $0x40] sm:$0xff] %v7558_v12  ;;  %v5293_v42 = vcombine.low %v7556_v6, %v7566_v16  ;;  %v956_v48 = vrot.slane %v858_v41, 5  ;;  %v5287_v56 = vrot.slane %v859_v49, 9  ;;  %v963_v57 = vrot.slane %v861_v53, 5  ;;  %v867_v15 = vld [vmem:[%s7367_s16 + $0x68] sm:$0x1] }
  0xd3   : > { %v950_v39 = vsel %vm7517_vm5, %v948_v35, %v949_v44  ;;  %v954_v54 = vsel %vm7517_vm5, %v5286_v45, %v953_v20  ;;  %v955_v55 = vrot.slane %v953_v20, 4  ;;  %v5288_v8 = vrot.slane %v862_v1, 9  ;;  %v870_v35 = vld [vmem:[%s7367_s16 + $0x74] sm:$0x1]  ;;  %v871_v45 = vld [vmem:[%s7367_s16 + $0x78] sm:$0xe] }
  0xd4   : > { %1407 = vmatmul.mubr.bf16.gmra.mrb[20].mxu0 %v7443_v32  ;;  %v967_v9 = vrot.slane %v863_v3, 5  ;;  %v970_v13 = vrot.slane %v864_v7, 5  ;;  %v5289_v17 = vrot.slane %v865_v11, 9  ;;  %v977_v24 = vrot.slane %v867_v15, 5  ;;  %v872_v49 = vld [vmem:[%s7367_s16 + $0x7c] sm:$0xf] }
  0xd5   : > { %1414 = vmatprep.mubr.bf16.mxu0 %v7490_v47  ;;  %v957_v58 = vsel %vm7517_vm5, %v955_v55, %v956_v48  ;;  %v984_v41 = vrot.slane %v870_v35, 5  ;;  %v5291_v53 = vrot.slane %v871_v45, 9  ;;  %v6752_v1 = vld [vmem:[#allocation7 + $0x190] sm:$0xff]   ;;  %v874_v3 = vld [vmem:[%s7367_s16 + $0x84] sm:$0xe] }
  0xd6   : > { %1777 = vmatmul.mubr.bf16.gmra.mrb[20].mxu1 %v7421_v4  ;;  %v756_v4 = vsel %vm7379_vm2, %v751_v46, %v755_v33  ;;  %v943_v33 = vsel %vm7517_vm5, %v941_v30, %v942_v21  ;;  %v7608_v61 = vcombine.low %v954_v54, %v957_v58  ;;  %v968_v19 = vsel %vm7517_vm5, %v5288_v8, %v967_v9  ;;  %v6753_v58 = vld [vmem:[#allocation7 + $0x208] sm:$0xff]   ;;  %v875_v7 = vld [vmem:[%s7367_s16 + $0x88] sm:$0xf]  ;;  %v6754_v8 = vld [vmem:[#allocation7 + $0x1d8] sm:$0xff]  }
  0xd7   : > { %1784 = vmatprep.mubr.bf16.mxu1 %v7474_v18  ;;  %v7540_v59 = vcombine.low %v746_v50, %v756_v4  ;;  %v7585_v37 = vcombine.low %v940_v27, %v943_v33  ;;  %v860_v50 = vld [vmem:[%s7367_s16 + $0x4c] sm:$0xf]  ;;  %v969_v21 = vrot.slane %v967_v9, 4  ;;  %v988_v54 = vrot.slane %v872_v49, 5  ;;  %v487_v15 = vld [vmem:[%s7367_s16 + $0x84] sm:$0xf] }
  0xd8   : > { %v960_v4 = vrot.slane %v860_v50, 5  ;;  %v868_v33 = vld [vmem:[%s7367_s16 + $0x6c] sm:$0xe]  ;;  %v873_v50 = vld [vmem:[%s7367_s16 + $0x80] sm:$0x1] }
  0xd9   : > { %1051 = vst [vmem:[#allocation2 + $0x58] sm:$0xff] %v7585_v37  ;;  %v971_v25 = vsel %vm7517_vm5, %v969_v21, %v970_v13  ;;  %v5290_v38 = vrot.slane %v868_v33, 9  ;;  %v991_v55 = vrot.slane %v873_v50, 5  ;;  %v989_v6 = vsel %vm7517_vm5, %v5291_v53, %v988_v54  ;;  %v6756_v9 = vld [vmem:[#allocation7 + $0x210] sm:$0xff]  }
  0xda   : > { %v961_v43 = vsel %vm7517_vm5, %v5287_v56, %v960_v4  ;;  %v962_v60 = vrot.slane %v960_v4, 4  ;;  %v7630_v30 = vcombine.low %v968_v19, %v971_v25  ;;  %v6748_v56 = vld [vmem:[#allocation7 + $0x1c8] sm:$0xff]   ;;  %v990_v16 = vrot.slane %v988_v54, 4  ;;  %v876_v11 = vld [vmem:[%s7367_s16 + $0x8c] sm:$0x1]  ;;  %v6758_v54 = vld [vmem:[#allocation7 + $0x1a0] sm:$0xff]  }
  0xdb   : > { %v5292_v13 = vrot.slane %v874_v3, 9  ;;  %v488_v19 = vld [vmem:[%s7367_s16 + $0x88] sm:$0xf]  ;;  %v758_v21 = vshrl.u32 %v487_v15, 16 }
  0xdc   : > { %1415 = vmatmul.mubr.bf16.gmra.mrb[24].mxu0 %v7452_v52  ;;  %v964_v62 = vsel %vm7517_vm5, %v962_v60, %v963_v57  ;;  %v6750_v60 = vld [vmem:[#allocation7 + $0x1d0] sm:$0xff]   ;;  %v767_v25 = vshll.u32 %v488_v19, 16 }
  0xdd   : > { %1422 = vmatprep.mubr.bf16.mxu0 %v7501_v2  ;;  %v7614_v63 = vcombine.low %v961_v43, %v964_v62  ;;  %v992_v43 = vsel %vm7517_vm5, %v990_v16, %v991_v55  ;;  %v6766_v3 = vld [vmem:[#allocation7 + $0x230] sm:$0xff]  }
  0xde   : > { %1785 = vmatmul.mubr.bf16.gmra.mrb[24].mxu1 %v7443_v32  ;;  %v5285_v32 = vrot.slane %v853_v22, 9  ;;  %v974_v22 = vrot.slane %v866_v14, 5  ;;  %v7660_v62 = vcombine.low %v989_v6, %v992_v43  ;;  %v995_v14 = vrot.slane %v875_v7, 5  ;;  %v6764_v43 = vld [vmem:[#allocation7 + $0x228] sm:$0xff]   ;;  %v6767_v7 = vld [vmem:[#allocation7 + $0x1f8] sm:$0xff]  }
  0xdf   : > { %1792 = vmatprep.mubr.bf16.mxu1 %v7490_v47 }
  0xe0   : > { %v947_v34 = vsel %vm7517_vm5, %v5285_v32, %v946_v31  ;;  %v975_v32 = vsel %vm7517_vm5, %v5289_v17, %v974_v22  ;;  %v976_v27 = vrot.slane %v974_v22, 4  ;;  %v998_v17 = vrot.slane %v876_v11, 5  ;;  %v1931_v11 = vld [vmem:[#allocation2 + $0x38] sm:$0xff] }
  0xe1   : > { %v7594_v46 = vcombine.low %v947_v34, %v950_v39  ;;  %v869_v34 = vld [vmem:[%s7367_s16 + $0x70] sm:$0xf]  ;;  %v7673_v22 = vsel %vm7517_vm5, %v5292_v13, %v995_v14 }
  0xe2   : > { %v978_v31 = vsel %vm7517_vm5, %v976_v27, %v977_v24  ;;  %v981_v39 = vrot.slane %v869_v34, 5  ;;  %v997_v24 = vrot.slane %v995_v14, 4  ;;  %v760_v27 = vrot.slane %v758_v21, 4  ;;  %v1930_v13 = vld [vmem:[#allocation2 + $0x30] sm:$0xff] }
  0xe3   : > { %1052 = vst [vmem:[#allocation2 + $0x70] sm:$0xff] %v7594_v46  ;;  %v7636_v44 = vcombine.low %v975_v32, %v978_v31  ;;  %v7676_v32 = vld [vmem:[%s7367_s16 + $0x84] sm:$0xff]   ;;  %v771_v31 = vshrl.u32 %v488_v19, 16  ;;  %v1934_v14 = vld [vmem:[#allocation2 + $0x50] sm:$0xff] }
  0xe4   : > { %1423 = vmatmul.mubr.bf16.gmra.mrb[28].mxu0 %v7468_v10  ;;  %v982_v20 = vsel %vm7517_vm5, %v5290_v38, %v981_v39  ;;  %v983_v48 = vrot.slane %v981_v39, 4  ;;  %v7681_v34 = vsel %vm7517_vm5, %v997_v24, %v998_v17  ;;  %v769_v38 = vrot.slane %v767_v25, 5  ;;  %v6755_v39 = vld [vmem:[#allocation7 + $0x198] sm:$0xff]   ;;  %v1937_v17 = vld [vmem:[#allocation2 + $0x68] sm:$0xff]  ;;  %v1936_v19 = vld [vmem:[#allocation2 + $0x60] sm:$0xff] }
  0xe5   : > { %1430 = vmatprep.mubr.bf16.mxu0 %v7522_v29  ;;  %v773_v45 = vrot.slane %v771_v31, 4 }
  0xe6   : > { %1793 = vmatmul.mubr.bf16.gmra.mrb[28].mxu1 %v7452_v52  ;;  %v985_v4 = vsel %vm7517_vm5, %v983_v48, %v984_v41  ;;  %v5304_v41 = vcombine.low %v7673_v22, %v7681_v34 }
  0xe7   : > { %1800 = vmatprep.mubr.bf16.mxu1 %v7501_v2  ;;  %v7652_v57 = vcombine.low %v982_v20, %v985_v4  ;;  %v6757_v20 = vld [vmem:[#allocation7 + $0x1e0] sm:$0xff]   ;;  %v774_v49 = vor.u32 %v773_v45, %v769_v38 }
  0xe8   : > { %v6762_v4 = vld [vmem:[#allocation7 + $0x220] sm:$0xff]  }
  0xe9   : > { %v775_v55 = vrot.slane %v774_v49, 4 }
  0xec   : > { %1431 = vmatmul.mubr.bf16.gmra.mrb[32].mxu0 %v7482_v36 }
  0xed   : > { %1438 = vmatprep.mubr.bf16.mxu0 %v7540_v59 }
  0xee   : > { %1801 = vmatmul.mubr.bf16.gmra.mrb[32].mxu1 %v7468_v10 }
  0xef   : > { %1808 = vmatprep.mubr.bf16.mxu1 %v7522_v29 }
  0xf4   : > { %1439 = vmatmul.mubr.bf16.gmra.mrb[36].mxu0 %v7509_v23 }
  0xf5   : > { %6187 = vmatprep.mubr.bf16.mxu0 %v7546_v0 }
  0xf6   : > { %1809 = vmatmul.mubr.bf16.gmra.mrb[36].mxu1 %v7482_v36 }
  0xf7   : > { %6223 = vmatprep.mubr.bf16.mxu1 %v5293_v42  ;;  %v6749_v42 = vld [vmem:[#allocation7 + $0x188] sm:$0xff]  }
  0xfc   : > { %6188 = vmatmul.mubr.bf16.vlgmr.msra.gmra.mrb[40].mxu0 %v7558_v12 }
  0xfd   : > { %5838 = vmatpush3.bf16.msra.mxu0 %v6747_v40  ;;  %6191 = vmatprep.mubr.bf16.mxu0 %v7585_v37  ;;  %v6759_v40 = vld [vmem:[#allocation7 + $0x218] sm:$0xff]  }
  0xfe   : > { %5839 = vmatprep.subr.bf16.mxu0 %v6748_v56  ;;  %6224 = vmatmul.mubr.bf16.vlgmr.msra.gmra.mrb[40].mxu1 %v7546_v0  ;;  %v489_v0 = vld [vmem:[%s7367_s16 + $0x8c] sm:$0x1]  ;;  %v6760_v56 = vld [vmem:[#allocation7 + $0x1e8] sm:$0xff]  }
  0xff   : > { %6227 = vmatprep.mubr.bf16.mxu1 %v7558_v12  ;;  %6244 = vmatpush3.bf16.msra.mxu1 %v7575_v26  ;;  %v761_v26 = vshll.u32 %v487_v15, 16  ;;  %v777_v33 = vshll.u32 %v489_v0, 16  ;;  %v1933_v15 = vld [vmem:[#allocation2 + $0x48] sm:$0xff] }
 0x100   : > { %6245 = vmatprep.subr.bf16.mxu1 %v6753_v58 }
 0x101   : > { %5840 = vmatpush3.bf16.msra.mxu0 %v6749_v42  ;;  %v763_v35 = vrot.slane %v761_v26, 5  ;;  %v779_v50 = vrot.slane %v777_v33, 5 }
 0x102   : > { %5841 = vmatprep.subr.bf16.mxu0 %v6750_v60  ;;  %v6763_v60 = vld [vmem:[#allocation7 + $0x1f0] sm:$0xff]  }
 0x103   : > { %6246 = vmatpush3.bf16.msra.mxu1 %v6753_v58  ;;  %v764_v48 = vor.u32 %v763_v35, %v760_v27  ;;  %v780_v16 = vsel %vm7379_vm2, %v775_v55, %v779_v50  ;;  %v6761_v58 = vld [vmem:[#allocation7 + $0x1a8] sm:$0xff]  }
 0x104   : > { %6192 = vmatmul.mubr.bf16.gmra.mrb[44].mxu0 %v7594_v46  ;;  %6247 = vmatprep.subr.bf16.mxu1 %v6756_v9 }
 0x105   : > { %5842 = vmatpush3.bf16.msra.mxu0 %v6752_v1  ;;  %6195 = vmatprep.mubr.bf16.mxu0 %v7608_v61  ;;  %v765_v53 = vrot.slane %v764_v48, 4  ;;  %v6765_v1 = vld [vmem:[#allocation7 + $0x1b0] sm:$0xff]  }
 0x106   : > { %5843 = vmatprep.subr.bf16.mxu0 %v6754_v8  ;;  %6228 = vmatmul.mubr.bf16.gmra.mrb[44].mxu1 %v7585_v37  ;;  %v6768_v8 = vld [vmem:[#allocation7 + $0x1b8] sm:$0xff]  }
 0x107   : > { %6231 = vmatprep.mubr.bf16.mxu1 %v7594_v46  ;;  %6248 = vmatpush3.bf16.msra.mxu1 %v6756_v9  ;;  %v770_v6 = vsel %vm7379_vm2, %v765_v53, %v769_v38  ;;  %v6769_v9 = vld [vmem:[#allocation7 + $0x238] sm:$0xff]  }
 0x108   : > { %6249 = vmatprep.subr.bf16.mxu1 %v6759_v40  ;;  %v7693_v42 = vcombine.low %v770_v6, %v780_v16 }
 0x109   : > { %5844 = vmatpush3.bf16.msra.mxu0 %v6755_v39 }
 0x10a   : > { %5845 = vmatprep.subr.bf16.mxu0 %v6757_v20 }
 0x10b   : > { %6250 = vmatpush3.bf16.msra.mxu1 %v6759_v40 }
 0x10c   : > { %6196 = vmatmul.mubr.bf16.gmra.mrb[48].mxu0 %v7614_v63  ;;  %6251 = vmatprep.subr.bf16.mxu1 %v6762_v4 }
 0x10d   : > { %5846 = vmatpush3.bf16.msra.mxu0 %v6758_v54  ;;  %6199 = vmatprep.mubr.bf16.mxu0 %v7630_v30 }
 0x10e   : > { %5847 = vmatprep.subr.bf16.mxu0 %v6760_v56  ;;  %6232 = vmatmul.mubr.bf16.gmra.mrb[48].mxu1 %v7608_v61 }
 0x10f   : > { %6235 = vmatprep.mubr.bf16.mxu1 %v7614_v63  ;;  %6252 = vmatpush3.bf16.msra.mxu1 %v6762_v4 }
 0x110   : > { %6253 = vmatprep.subr.bf16.mxu1 %v6764_v43 }
 0x111   : > { %5848 = vmatpush3.bf16.msra.mxu0 %v6761_v58 }
 0x112   : > { %5849 = vmatprep.subr.bf16.mxu0 %v6763_v60 }
 0x113   : > { %6254 = vmatpush3.bf16.msra.mxu1 %v6764_v43 }
 0x114   : > { %6200 = vmatmul.mubr.bf16.gmra.mrb[52].mxu0 %v7636_v44  ;;  %6255 = vmatprep.subr.bf16.mxu1 %v6766_v3 }
 0x115   : > { %6203 = vmatprep.mubr.bf16.mxu0 %v7652_v57  ;;  %5850 = vmatpush3.bf16.msra.mxu0 %v6765_v1 }
 0x116   : > { %5851 = vmatprep.subr.bf16.mxu0 %v6767_v7  ;;  %6236 = vmatmul.mubr.bf16.gmra.mrb[52].mxu1 %v7630_v30 }
 0x117   : > { %6239 = vmatprep.mubr.bf16.mxu1 %v7636_v44  ;;  %6256 = vmatpush3.bf16.msra.mxu1 %v6766_v3 }
 0x118   : > { %6257 = vmatprep.subr.bf16.mxu1 %v6769_v9 }
 0x119   : > { %5852 = vmatpush3.bf16.msra.mxu0 %v6768_v8 }
 0x11b   : > { %6258 = vmatpush3.bf16.msra.mxu1 %v6769_v9 }
 0x11c   : > { %6204 = vmatmul.mubr.bf16.gmra.mrb[56].mxu0 %v7660_v62 }
 0x11d   : > { %2185 = vmatprep.mubr.bf16.mxu0 %v1931_v11 }
 0x11e   : > { %6240 = vmatmul.mubr.bf16.gmra.mrb[56].mxu1 %v7652_v57 }
 0x11f   : > { %6259 = vmatprep.mubr.bf16.mxu1 %v7558_v12  ;;  %v6771_v12 = vld [vmem:[#allocation2 + $0x78] sm:$0xff] }
 0x124   : > { %2186 = vmatmul.mubr.bf16.vlgmr.msra.gmra.mrb[60].mxu0 %v1930_v13 }
 0x125   : > { %2193 = vmatprep.mubr.bf16.mxu0 %v1934_v14 }
 0x126   : > { %6260 = vmatmul.mubr.bf16.vlgmr.msra.gmra.mrb[40].mxu1 %v7585_v37  ;;  %v6772_v37 = vld [vmem:[#allocation2 + $0x90] sm:$0xff] }
 0x127   : > { %6263 = vmatprep.mubr.bf16.mxu1 %v7594_v46 }
 0x12c   : > { %2194 = vmatmul.mubr.bf16.gmra.mrb[64].mxu0 %v1933_v15 }
 0x12d   : > { %2201 = vmatprep.mubr.bf16.mxu0 %v1937_v17 }
 0x12e   : > { %6264 = vmatmul.mubr.bf16.gmra.mrb[44].mxu1 %v7608_v61 }
 0x12f   : > { %6267 = vmatprep.mubr.bf16.mxu1 %v7614_v63 }
 0x134   : > { %2202 = vmatmul.mubr.bf16.gmra.mrb[68].mxu0 %v1936_v19 }
 0x135   : > { %2209 = vmatprep.mubr.bf16.mxu0 %v7465_v5 }
 0x136   : > { %6268 = vmatmul.mubr.bf16.gmra.mrb[48].mxu1 %v7630_v30 }
 0x137   : > { %6271 = vmatprep.mubr.bf16.mxu1 %v7636_v44 }
 0x13c   : > { %2210 = vmatmul.mubr.bf16.gmra.mrb[72].mxu0 %v6771_v12 }
 0x13d   : > { %2217 = vmatprep.mubr.bf16.mxu0 %v7474_v18 }
 0x13e   : > { %6272 = vmatmul.mubr.bf16.gmra.mrb[52].mxu1 %v7652_v57 }
 0x13f   : > { %6275 = vmatprep.mubr.bf16.mxu1 %v7660_v62 }
 0x144   : > { %2218 = vmatmul.mubr.bf16.gmra.mrb[76].mxu0 %v6772_v37 }
 0x145   : > { %2225 = vmatprep.mubr.bf16.mxu0 %v7490_v47 }
 0x146   : > { %6276 = vmatmul.mubr.bf16.gmra.mrb[56].mxu1 %v5304_v41 }
 0x14c   : > { %2226 = vmatmul.mubr.bf16.gmra.mrb[80].mxu0 %v7452_v52 }
 0x14d   : > { %2233 = vmatprep.mubr.bf16.mxu0 %v7501_v2 }
 0x154   : > { %2234 = vmatmul.mubr.bf16.gmra.mrb[84].mxu0 %v7468_v10 }
 0x155   : > { %2241 = vmatprep.mubr.bf16.mxu0 %v7522_v29 }
 0x15c   : > { %2242 = vmatmul.mubr.bf16.gmra.mrb[88].mxu0 %v7482_v36 }
 0x15d   : > { %2249 = vmatprep.mubr.bf16.mxu0 %v7540_v59 }
 0x164   : > { %2250 = vmatmul.mubr.bf16.gmra.mrb[92].mxu0 %v7509_v23 }
 0x165   : > { %2257 = vmatprep.mubr.bf16.mxu0 %v7693_v42 }
 0x16c   : > { %2258 = vmatmul.mubr.bf16.gmra.mrb[96].mxu0 %v7676_v32 }
 0x17f   : > { %v5665_v5 = vpop.f32.mrb[0].mxu0 }
 0x180   : > { %v5666_v18 = vpop.f32.mrb[1].mxu0 }
 0x181   : > { %v7728_v47 = vadd.f32 %v5666_v18, %v5665_v5  ;;  %v5668_v52 = vpop.f32.mrb[2].mxu0  ;;  %v5759_v10 = vpop.f32.mrb[0].mxu1 }
 0x182   : > { %v5669_v2 = vpop.f32.mrb[3].mxu0  ;;  %v5760_v29 = vpop.f32.mrb[1].mxu1 }
 0x183   : > { %v7730_v46 = vadd.f32 %v5669_v2, %v5668_v52  ;;  %v7732_v61 = vadd.f32 %v5760_v29, %v5759_v10  ;;  %v5762_v36 = vpop.f32.mrb[2].mxu1 }
 0x184   : > { %v5763_v59 = vpop.f32.mrb[3].mxu1 }
 0x185   : > { %v7734_v63 = vadd.f32 %v5763_v59, %v5762_v36 }
 0x187   : > { %v5671_v23 = vpop.f32.mrb[4].mxu0 }
 0x188   : > { %v5672_v30 = vpop.f32.mrb[5].mxu0 }
 0x189   : > { %v7736_v44 = vadd.f32 %v5672_v30, %v5671_v23  ;;  %v5674_v57 = vpop.f32.mrb[6].mxu0  ;;  %v5765_v0 = vpop.f32.mrb[4].mxu1 }
 0x18a   : > { %v5675_v62 = vpop.f32.mrb[7].mxu0  ;;  %v5766_v22 = vpop.f32.mrb[5].mxu1 }
 0x18b   : > { %v7738_v21 = vadd.f32 %v5675_v62, %v5674_v57  ;;  %v7740_v24 = vadd.f32 %v5766_v22, %v5765_v0  ;;  %v5768_v26 = vpop.f32.mrb[6].mxu1 }
 0x18c   : > { %v5769_v25 = vpop.f32.mrb[7].mxu1 }
 0x18d   : > { %v7742_v32 = vadd.f32 %v5769_v25, %v5768_v26 }
 0x18f   : > { %v5677_v27 = vpop.f32.mrb[8].mxu0 }
 0x190   : > { %v5678_v31 = vpop.f32.mrb[9].mxu0 }
 0x191   : > { %v7744_v33 = vadd.f32 %v5678_v31, %v5677_v27  ;;  %v5680_v34 = vpop.f32.mrb[10].mxu0  ;;  %v5771_v38 = vpop.f32.mrb[8].mxu1 }
 0x192   : > { %v5681_v35 = vpop.f32.mrb[11].mxu0  ;;  %v5772_v40 = vpop.f32.mrb[9].mxu1 }
 0x193   : > { %v7746_v39 = vadd.f32 %v5681_v35, %v5680_v34  ;;  %v7748_v41 = vadd.f32 %v5772_v40, %v5771_v38  ;;  %v5774_v45 = vpop.f32.mrb[10].mxu1 }
 0x194   : > { %v5775_v20 = vpop.f32.mrb[11].mxu1 }
 0x195   : > { %v7750_v48 = vadd.f32 %v5775_v20, %v5774_v45 }
 0x197   : > { %v5683_v49 = vpop.f32.mrb[12].mxu0 }
 0x198   : > { %v5684_v50 = vpop.f32.mrb[13].mxu0 }
 0x199   : > { %v7752_v53 = vadd.f32 %v5684_v50, %v5683_v49  ;;  %v5686_v54 = vpop.f32.mrb[14].mxu0  ;;  %v5777_v56 = vpop.f32.mrb[12].mxu1 }
 0x19a   : > { %v5687_v55 = vpop.f32.mrb[15].mxu0  ;;  %v5778_v6 = vpop.f32.mrb[13].mxu1 }
 0x19b   : > { %v7754_v4 = vadd.f32 %v5687_v55, %v5686_v54  ;;  %v7756_v16 = vadd.f32 %v5778_v6, %v5777_v56  ;;  %v5780_v42 = vpop.f32.mrb[14].mxu1 }
 0x19c   : > { %v5781_v58 = vpop.f32.mrb[15].mxu1 }
 0x19d   : > { %v7758_v43 = vadd.f32 %v5781_v58, %v5780_v42 }
 0x19f   : > { %v5689_v60 = vpop.f32.mrb[16].mxu0 }
 0x1a0   : > { %v5690_v1 = vpop.f32.mrb[17].mxu0 }
 0x1a1   : > { %v7760_v3 = vadd.f32 %v5690_v1, %v5689_v60  ;;  %v5692_v7 = vpop.f32.mrb[18].mxu0  ;;  %v5783_v9 = vpop.f32.mrb[16].mxu1 }
 0x1a2   : > { %v5693_v8 = vpop.f32.mrb[19].mxu0  ;;  %v5784_v13 = vpop.f32.mrb[17].mxu1 }
 0x1a3   : > { %v7762_v11 = vadd.f32 %v5693_v8, %v5692_v7  ;;  %v7764_v14 = vadd.f32 %v5784_v13, %v5783_v9  ;;  %v5786_v15 = vpop.f32.mrb[18].mxu1 }
 0x1a4   : > { %v5787_v17 = vpop.f32.mrb[19].mxu1 }
 0x1a5   : > { %v7766_v19 = vadd.f32 %v5787_v17, %v5786_v15 }
 0x1a7   : > { %v5695_v12 = vpop.f32.mrb[20].mxu0 }
 0x1a8   : > { %v5696_v37 = vpop.f32.mrb[21].mxu0 }
 0x1a9   : > { %v7768_v5 = vadd.f32 %v5696_v37, %v5695_v12  ;;  %v5698_v18 = vpop.f32.mrb[22].mxu0  ;;  %v5789_v2 = vpop.f32.mrb[20].mxu1 }
 0x1aa   : > { %v5699_v52 = vpop.f32.mrb[23].mxu0  ;;  %v5790_v29 = vpop.f32.mrb[21].mxu1 }
 0x1ab   : > { %v7770_v10 = vadd.f32 %v5699_v52, %v5698_v18  ;;  %v7772_v36 = vadd.f32 %v5790_v29, %v5789_v2  ;;  %v5792_v59 = vpop.f32.mrb[22].mxu1 }
 0x1ac   : > { %v5793_v23 = vpop.f32.mrb[23].mxu1 }
 0x1ad   : > { %v7774_v30 = vadd.f32 %v5793_v23, %v5792_v59 }
 0x1af   : > { %v5701_v57 = vpop.f32.mrb[24].mxu0 }
 0x1b0   : > { %v5702_v62 = vpop.f32.mrb[25].mxu0 }
 0x1b1   : > { %v7776_v0 = vadd.f32 %v5702_v62, %v5701_v57  ;;  %v5704_v22 = vpop.f32.mrb[26].mxu0  ;;  %v5795_v25 = vpop.f32.mrb[24].mxu1 }
 0x1b2   : > { %v5705_v26 = vpop.f32.mrb[27].mxu0  ;;  %v5796_v31 = vpop.f32.mrb[25].mxu1 }
 0x1b3   : > { %v7778_v27 = vadd.f32 %v5705_v26, %v5704_v22  ;;  %v7780_v34 = vadd.f32 %v5796_v31, %v5795_v25  ;;  %v5798_v35 = vpop.f32.mrb[26].mxu1 }
 0x1b4   : > { %v5799_v38 = vpop.f32.mrb[27].mxu1 }
 0x1b5   : > { %v7782_v40 = vadd.f32 %v5799_v38, %v5798_v35 }
 0x1b7   : > { %v5707_v45 = vpop.f32.mrb[28].mxu0 }
 0x1b8   : > { %v5708_v20 = vpop.f32.mrb[29].mxu0 }
 0x1b9   : > { %v7784_v49 = vadd.f32 %v5708_v20, %v5707_v45  ;;  %v5710_v50 = vpop.f32.mrb[30].mxu0  ;;  %v5801_v55 = vpop.f32.mrb[28].mxu1 }
 0x1ba   : > { %v5711_v54 = vpop.f32.mrb[31].mxu0  ;;  %v5802_v6 = vpop.f32.mrb[29].mxu1 }
 0x1bb   : > { %v7786_v56 = vadd.f32 %v5711_v54, %v5710_v50  ;;  %v7788_v42 = vadd.f32 %v5802_v6, %v5801_v55  ;;  %v5804_v58 = vpop.f32.mrb[30].mxu1 }
 0x1bc   : > { %v5805_v60 = vpop.f32.mrb[31].mxu1 }
 0x1bd   : > { %v7790_v1 = vadd.f32 %v5805_v60, %v5804_v58 }
 0x1bf   : > { %v5713_v7 = vpop.f32.mrb[32].mxu0 }
 0x1c0   : > { %v5714_v8 = vpop.f32.mrb[33].mxu0 }
 0x1c1   : > { %v7792_v9 = vadd.f32 %v5714_v8, %v5713_v7  ;;  %v5716_v13 = vpop.f32.mrb[34].mxu0  ;;  %v5807_v17 = vpop.f32.mrb[32].mxu1 }
 0x1c2   : > { %v5717_v15 = vpop.f32.mrb[35].mxu0  ;;  %v5808_v37 = vpop.f32.mrb[33].mxu1 }
 0x1c3   : > { %v7794_v12 = vadd.f32 %v5717_v15, %v5716_v13  ;;  %v7796_v18 = vadd.f32 %v5808_v37, %v5807_v17  ;;  %v5810_v52 = vpop.f32.mrb[34].mxu1 }
 0x1c4   : > { %v5811_v2 = vpop.f32.mrb[35].mxu1 }
 0x1c5   : > { %v7798_v29 = vadd.f32 %v5811_v2, %v5810_v52 }
 0x1c7   : > { %v5719_v59 = vpop.f32.mrb[36].mxu0 }
 0x1c8   : > { %v5720_v23 = vpop.f32.mrb[37].mxu0 }
 0x1c9   : > { %v5721_v57 = vadd.f32 %v5720_v23, %v5719_v59  ;;  %v5722_v62 = vpop.f32.mrb[38].mxu0  ;;  %v5813_v26 = vpop.f32.mrb[36].mxu1 }
 0x1ca   : > { %v5723_v22 = vpop.f32.mrb[39].mxu0  ;;  %v5814_v31 = vpop.f32.mrb[37].mxu1 }
 0x1cb   : > { %v5724_v25 = vadd.f32 %v5723_v22, %v5722_v62  ;;  %v5815_v35 = vadd.f32 %v5814_v31, %v5813_v26  ;;  %v5816_v38 = vpop.f32.mrb[38].mxu1 }
 0x1cc   : > { %v5817_v45 = vpop.f32.mrb[39].mxu1 }
 0x1cd   : > { %v5818_v20 = vadd.f32 %v5817_v45, %v5816_v38 }
 0x1cf   : > { %v6189_v50 = vpop.f32.mrb[40].mxu0 }
 0x1d0   : > { %v1490_v54 = vadd.f32 %v6189_v50, %v7736_v44  ;;  %v1481_v55 = vpop.f32.mrb[41].mxu0 }
 0x1d1   : > { %v1482_v6 = vadd.f32 %v7728_v47, %v1481_v55  ;;  %v6190_v58 = vpop.f32.mrb[42].mxu0 }
 0x1d2   : > { %v7803_v60 = vadd.f32 %v7740_v24, %v1490_v54  ;;  %v1493_v7 = vadd.f32 %v6190_v58, %v7738_v21  ;;  %v1484_v8 = vpop.f32.mrb[43].mxu0 }
 0x1d3   : > { %v1739_v13 = vadd.f32 %v7732_v61, %v1482_v6  ;;  %v1485_v15 = vadd.f32 %v7730_v46, %v1484_v8 }
 0x1d4   : > { %v7809_v17 = vadd.f32 %v7742_v32, %v1493_v7 }
 0x1d5   : > { %v1742_v37 = vadd.f32 %v7734_v63, %v1485_v15 }
 0x1d7   : > { %v6193_v44 = vpop.f32.mrb[44].mxu0 }
 0x1d8   : > { %v1506_v52 = vadd.f32 %v6193_v44, %v7752_v53  ;;  %v1497_v47 = vpop.f32.mrb[45].mxu0 }
 0x1d9   : > { %v1498_v2 = vadd.f32 %v7744_v33, %v1497_v47  ;;  %v6194_v24 = vpop.f32.mrb[46].mxu0 }
 0x1da   : > { %v7815_v59 = vadd.f32 %v7756_v16, %v1506_v52  ;;  %v1509_v21 = vadd.f32 %v6194_v24, %v7754_v4  ;;  %v1500_v61 = vpop.f32.mrb[47].mxu0 }
 0x1db   : > { %v7819_v46 = vadd.f32 %v7748_v41, %v1498_v2  ;;  %v1501_v32 = vadd.f32 %v7746_v39, %v1500_v61 }
 0x1dc   : > { %v7823_v63 = vadd.f32 %v7758_v43, %v1509_v21 }
 0x1dd   : > { %v7826_v53 = vadd.f32 %v7750_v48, %v1501_v32 }
 0x1df   : > { %v6197_v23 = vpop.f32.mrb[48].mxu0 }
 0x1e0   : > { %v1522_v33 = vadd.f32 %v6197_v23, %v7768_v5  ;;  %v1513_v62 = vpop.f32.mrb[49].mxu0 }
 0x1e1   : > { %v1514_v16 = vadd.f32 %v7760_v3, %v1513_v62  ;;  %v6198_v22 = vpop.f32.mrb[50].mxu0 }
 0x1e2   : > { %v7831_v4 = vadd.f32 %v7772_v36, %v1522_v33  ;;  %v1525_v41 = vadd.f32 %v6198_v22, %v7770_v10  ;;  %v1516_v26 = vpop.f32.mrb[51].mxu0 }
 0x1e3   : > { %v7835_v39 = vadd.f32 %v7764_v14, %v1514_v16  ;;  %v1517_v43 = vadd.f32 %v7762_v11, %v1516_v26 }
 0x1e4   : > { %v7839_v48 = vadd.f32 %v7774_v30, %v1525_v41 }
 0x1e5   : > { %v7842_v5 = vadd.f32 %v7766_v19, %v1517_v43 }
 0x1e7   : > { %v6201_v31 = vpop.f32.mrb[52].mxu0 }
 0x1e8   : > { %v1538_v3 = vadd.f32 %v6201_v31, %v7784_v49  ;;  %v1529_v38 = vpop.f32.mrb[53].mxu0 }
 0x1e9   : > { %v1530_v36 = vadd.f32 %v7776_v0, %v1529_v38  ;;  %v6202_v45 = vpop.f32.mrb[54].mxu0 }
 0x1ea   : > { %v7847_v10 = vadd.f32 %v7788_v42, %v1538_v3  ;;  %v1541_v14 = vadd.f32 %v6202_v45, %v7786_v56  ;;  %v1532_v50 = vpop.f32.mrb[55].mxu0 }
 0x1eb   : > { %v7851_v11 = vadd.f32 %v7780_v34, %v1530_v36  ;;  %v1533_v30 = vadd.f32 %v7778_v27, %v1532_v50 }
 0x1ec   : > { %v7855_v19 = vadd.f32 %v7790_v1, %v1541_v14 }
 0x1ed   : > { %v7858_v49 = vadd.f32 %v7782_v40, %v1533_v30 }
 0x1ef   : > { %v6205_v54 = vpop.f32.mrb[56].mxu0 }
 0x1f0   : > { %v1554_v0 = vadd.f32 %v6205_v54, %v5721_v57  ;;  %v1545_v55 = vpop.f32.mrb[57].mxu0 }
 0x1f1   : > { %v1546_v42 = vadd.f32 %v7792_v9, %v1545_v55  ;;  %v6206_v6 = vpop.f32.mrb[58].mxu0 }
 0x1f2   : > { %v7861_v58 = vadd.f32 %v5815_v35, %v1554_v0  ;;  %v1557_v56 = vadd.f32 %v6206_v6, %v5724_v25  ;;  %v1548_v7 = vpop.f32.mrb[59].mxu0 }
 0x1f3   : > { %v7864_v34 = vadd.f32 %v7796_v18, %v1546_v42  ;;  %v1549_v27 = vadd.f32 %v7794_v12, %v1548_v7  ;;  %v7875_v18 = vld [vmem:[%s8697_s3] ss:$0 sm:$0xff] }
 0x1f4   : > { %v7867_v1 = vadd.f32 %v5818_v20, %v1557_v56 }
 0x1f5   : > { %v7870_v40 = vadd.f32 %v7798_v29, %v1549_v27  ;;  %v7880_v29 = vld [vmem:[%s8698_s4] ss:$0 sm:$0xff] }
 0x1f7   : > { %v5853_v8 = vpop.f32.mrb[60].mxu0 }
 0x1f8   : > { %v5854_v57 = vpop.f32.mrb[61].mxu0 }
 0x1f9   : > { %v5855_v15 = vadd.f32 %v5854_v57, %v5853_v8  ;;  %v5856_v44 = vpop.f32.mrb[62].mxu0  ;;  %v6261_v9 = vpop.f32.mrb[40].mxu1 }
 0x1fa   : > { %v5857_v52 = vpop.f32.mrb[63].mxu0  ;;  %v2300_v47 = vpop.f32.mrb[41].mxu1 }
 0x1fb   : > { %v5858_v35 = vadd.f32 %v5857_v52, %v5856_v44  ;;  %v6381_v25 = vadd.f32 %v5855_v15, %v1739_v13  ;;  %v6262_v12 = vpop.f32.mrb[42].mxu1  ;;  %v2739_v15 = vld [vmem:[#allocation3] sm:$0xf] }
 0x1fc   : > { %v2303_v2 = vpop.f32.mrb[43].mxu1 }
 0x1fd   : > { %v6382_v20 = vadd.f32 %v6381_v25, %v2300_v47  ;;  %v6389_v24 = vadd.f32 %v5858_v35, %v1742_v37 }
 0x1ff   : > { %v2406_v21 = vmul.f32 %v6382_v20, %v7875_v18  ;;  %v6390_v61 = vadd.f32 %v6389_v24, %v2303_v2  ;;  %v5859_v32 = vpop.f32.mrb[64].mxu0 }
 0x200   : > { %v5860_v23 = vpop.f32.mrb[65].mxu0 }
 0x201   : > { %v2433_v13 = vadd.f32 %v7880_v29, %v2406_v21  ;;  %v2407_v33 = vmul.f32 %v6390_v61, %v7875_v18  ;;  %v5861_v62 = vadd.f32 %v5860_v23, %v5859_v32  ;;  %v5862_v16 = vpop.f32.mrb[66].mxu0  ;;  %v7885_v22 = vpop.f32.mrb[44].mxu1  ;;  %v2745_v32 = vld [vmem:[#allocation3 + $0x8] sm:$0x1] }
 0x202   : > { %v5863_v41 = vpop.f32.mrb[67].mxu0  ;;  %v2316_v3 = vpop.f32.mrb[45].mxu1 }
 0x203   : > { %v2453_v37 = vmax.f32 %v2433_v13, 0.0  ;;  %v2434_v26 = vadd.f32 %v7880_v29, %v2407_v33  ;;  %v6377_v43 = vadd.f32 %v5861_v62, %v7803_v60  ;;  %v5864_v31 = vadd.f32 %v5863_v41, %v5862_v16  ;;  %v7889_v38 = vpop.f32.mrb[46].mxu1 }
 0x204   : > { %v2319_v30 = vpop.f32.mrb[47].mxu1 }
 0x205   : > { %v5565_v36 = vpack.c.bf16 %v2453_v37, %v2453_v37  ;;  %v2454_v45 = vmax.f32 %v2434_v26, 0.0  ;;  %v6378_v14 = vadd.f32 %v6377_v43, %v6261_v9  ;;  %v6385_v50 = vadd.f32 %v5864_v31, %v7809_v17 }
 0x207   : > { %v2537_v54 = vshrl.u32 %v5565_v36, 16  ;;  %v5566_v0 = vpack.c.bf16 %v2454_v45, %v2454_v45  ;;  %v2408_v55 = vmul.f32 %v6378_v14, %v7875_v18  ;;  %v5865_v42 = vpop.f32.mrb[68].mxu0  ;;  %v6386_v60 = vadd.f32 %v6385_v50, %v6262_v12 }
 0x208   : > { %v5866_v6 = vpop.f32.mrb[69].mxu0  ;;  %v2540_v7 = vshll.u32 %v5565_v36, 16 }
 0x209   : > { %v2539_v56 = vrot.slane %v2537_v54, 7  ;;  %v2545_v27 = vshrl.u32 %v5566_v0, 16  ;;  %v2435_v8 = vadd.f32 %v7880_v29, %v2408_v55  ;;  %v5868_v57 = vpop.f32.mrb[70].mxu0  ;;  %v2409_v44 = vmul.f32 %v6386_v60, %v7875_v18  ;;  %v7901_v52 = vpop.f32.mrb[48].mxu1 }
 0x20a   : > { %v5867_v9 = vadd.f32 %v5866_v6, %v5865_v42  ;;  %v5869_v35 = vpop.f32.mrb[71].mxu0  ;;  %v2548_v20 = vshll.u32 %v5566_v0, 16  ;;  %v7909_v24 = vpop.f32.mrb[49].mxu1 }
 0x20b   : > { %v2542_v47 = vor.u32 %v2540_v7, %v2539_v56  ;;  %v2547_v12 = vrot.slane %v2545_v27, 7  ;;  %v2455_v2 = vmax.f32 %v2435_v8, 0.0  ;;  %v2543_v21 = vrot.slane %v2539_v56, 4  ;;  %v7919_v62 = vpop.f32.mrb[50].mxu1 }
 0x20c   : > { %v2436_v23 = vadd.f32 %v7880_v29, %v2409_v44  ;;  %v6397_v13 = vadd.f32 %v5867_v9, %v7819_v46  ;;  %v5870_v33 = vadd.f32 %v5869_v35, %v5868_v57  ;;  %v7923_v43 = vpop.f32.mrb[51].mxu1 }
 0x20d   : > { %v2740_v16 = vsel %vm7896_vm11, %v2542_v47, %v2739_v15  ;;  %v2550_v41 = vor.u32 %v2548_v20, %v2547_v12  ;;  %v2552_v37 = vrot.slane %v2547_v12, 4  ;;  %v5567_v26 = vpack.c.bf16 %v2455_v2, %v2455_v2 }
 0x20e   : > { %2741 = vst [vmem:[#allocation3] sm:$0xf] %v2740_v16  ;;  %v2456_v31 = vmax.f32 %v2436_v23, 0.0  ;;  %v6398_v36 = vadd.f32 %v6397_v13, %v2316_v3  ;;  %v6405_v45 = vadd.f32 %v5870_v33, %v7826_v53  ;;  %v2748_v53 = vld [vmem:[#allocation3 + $0xc] sm:$0xf] }
 0x20f   : > { %v2551_v14 = vsel %vm7913_vm13, %v2543_v21, %v2550_v41  ;;  %v2746_v46 = vsel %vm7905_vm12, %v2552_v37, %v2745_v32  ;;  %v2554_v50 = vshrl.u32 %v5567_v26, 16  ;;  %v5871_v54 = vpop.f32.mrb[72].mxu0  ;;  %v2557_v56 = vshll.u32 %v5567_v26, 16  ;;  %v2752_v16 = vld [vmem:[#allocation3 + $0x14] sm:$0x1] }
 0x210   : > { %2742 = vst [vmem:[#allocation3 + $0x4] sm:$0xf] %v2551_v14  ;;  %2747 = vst [vmem:[#allocation3 + $0x8] sm:$0x1] %v2746_v46  ;;  %v5568_v0 = vpack.c.bf16 %v2456_v31, %v2456_v31  ;;  %v2410_v55 = vmul.f32 %v6398_v36, %v7875_v18  ;;  %v6406_v42 = vadd.f32 %v6405_v45, %v2319_v30  ;;  %v5872_v60 = vpop.f32.mrb[73].mxu0 }
 0x211   : > { %v2556_v6 = vrot.slane %v2554_v50, 7  ;;  %v5873_v3 = vadd.f32 %v5872_v60, %v5871_v54  ;;  %v5874_v7 = vpop.f32.mrb[74].mxu0  ;;  %v7933_v15 = vpop.f32.mrb[52].mxu1 }
 0x212   : > { %v2562_v27 = vshrl.u32 %v5568_v0, 16  ;;  %v2437_v8 = vadd.f32 %v7880_v29, %v2410_v55  ;;  %v2411_v57 = vmul.f32 %v6406_v42, %v7875_v18  ;;  %v5875_v44 = vpop.f32.mrb[75].mxu0  ;;  %v7936_v12 = vpop.f32.mrb[53].mxu1  ;;  %v2565_v20 = vshll.u32 %v5568_v0, 16 }
 0x213   : > { %v2559_v9 = vor.u32 %v2557_v56, %v2556_v6  ;;  %v6393_v35 = vadd.f32 %v5873_v3, %v7815_v59  ;;  %v5876_v47 = vadd.f32 %v5875_v44, %v5874_v7  ;;  %v7939_v32 = vpop.f32.mrb[54].mxu1  ;;  %v2560_v33 = vrot.slane %v2556_v6, 4 }
 0x214   : > { %v2564_v30 = vrot.slane %v2562_v27, 7  ;;  %v2457_v2 = vmax.f32 %v2437_v8, 0.0  ;;  %v2438_v21 = vadd.f32 %v7880_v29, %v2411_v57  ;;  %v7951_v26 = vpop.f32.mrb[55].mxu1 }
 0x215   : > { %v2811_v23 = vld [vmem:[#allocation3] sm:$0x1]  ;;  %v2749_v59 = vsel %vm7896_vm11, %v2559_v9, %v2748_v53  ;;  %v6394_v41 = vadd.f32 %v6393_v35, %v7885_v22  ;;  %v6401_v37 = vadd.f32 %v5876_v47, %v7823_v63  ;;  %v2755_v9 = vld [vmem:[#allocation3 + $0x18] sm:$0xf] }
 0x216   : > { %v2812_v31 = vsel %vm7905_vm12, 0, %v2811_v23  ;;  %2750 = vst [vmem:[#allocation3 + $0xc] sm:$0xf] %v2749_v59  ;;  %v2567_v36 = vor.u32 %v2565_v20, %v2564_v30  ;;  %v2569_v45 = vrot.slane %v2564_v30, 4  ;;  %v5569_v14 = vpack.c.bf16 %v2457_v2, %v2457_v2 }
 0x217   : > { %2813 = vst [vmem:[#allocation3] sm:$0x1] %v2812_v31  ;;  %v2842_v46 = vld [vmem:[#allocation3 + $0x8] sm:$0x1]  ;;  %v2458_v50 = vmax.f32 %v2438_v21, 0.0  ;;  %v2412_v54 = vmul.f32 %v6394_v41, %v7875_v18  ;;  %v6402_v0 = vadd.f32 %v6401_v37, %v7889_v38  ;;  %v5877_v55 = vpop.f32.mrb[76].mxu0 }
 0x218   : > { %v2843_v63 = vsel %vm7943_vm14, 0, %v2842_v46  ;;  %v2568_v22 = vsel %vm7913_vm13, %v2560_v33, %v2567_v36  ;;  %v2753_v42 = vsel %vm7905_vm12, %v2569_v45, %v2752_v16  ;;  %v2571_v60 = vshrl.u32 %v5569_v14, 16  ;;  %v5878_v6 = vpop.f32.mrb[77].mxu0  ;;  %v2759_v46 = vld [vmem:[#allocation3 + $0x20] sm:$0x1] }
 0x219   : > { %2844 = vst [vmem:[#allocation3 + $0x8] sm:$0x1] %v2843_v63  ;;  %2751 = vst [vmem:[#allocation3 + $0x10] sm:$0xf] %v2568_v22  ;;  %v5570_v56 = vpack.c.bf16 %v2458_v50, %v2458_v50  ;;  %v2439_v3 = vadd.f32 %v7880_v29, %v2412_v54  ;;  %v2413_v38 = vmul.f32 %v6402_v0, %v7875_v18  ;;  %v5880_v7 = vpop.f32.mrb[78].mxu0  ;;  %v2574_v27 = vshll.u32 %v5569_v14, 16 }
 0x21a   : > { %2754 = vst [vmem:[#allocation3 + $0x14] sm:$0x1] %v2753_v42  ;;  %v2573_v53 = vrot.slane %v2571_v60, 7  ;;  %v5879_v8 = vadd.f32 %v5878_v6, %v5877_v55  ;;  %v7965_v57 = vpop.f32.mrb[56].mxu1  ;;  %v5881_v44 = vpop.f32.mrb[79].mxu0 }
 0x21b   : > { %v2579_v35 = vshrl.u32 %v5570_v56, 16  ;;  %v2459_v47 = vmax.f32 %v2439_v3, 0.0  ;;  %v2440_v30 = vadd.f32 %v7880_v29, %v2413_v38  ;;  %v7968_v20 = vpop.f32.mrb[57].mxu1  ;;  %v5882_v23 = vadd.f32 %v5881_v44, %v5880_v7 }
 0x21c   : > { %v2576_v2 = vor.u32 %v2574_v27, %v2573_v53  ;;  %v6413_v21 = vadd.f32 %v5879_v8, %v7835_v39  ;;  %v7971_v33 = vpop.f32.mrb[58].mxu1  ;;  %v2582_v41 = vshll.u32 %v5570_v56, 16  ;;  %v2577_v54 = vrot.slane %v2573_v53, 4  ;;  %v2762_v8 = vld [vmem:[#allocation3 + $0x24] sm:$0xf] }
 0x21d   : > { %v2814_v59 = vld [vmem:[#allocation3 + $0xc] sm:$0x1]  ;;  %v2581_v16 = vrot.slane %v2579_v35, 7  ;;  %v5571_v37 = vpack.c.bf16 %v2459_v47, %v2459_v47  ;;  %v2460_v31 = vmax.f32 %v2440_v30, 0.0  ;;  %v7973_v36 = vpop.f32.mrb[59].mxu1  ;;  %v6421_v39 = vadd.f32 %v5882_v23, %v7842_v5 }
 0x21e   : > { %v2815_v45 = vsel %vm7905_vm12, 0, %v2814_v59  ;;  %v2756_v14 = vsel %vm7896_vm11, %v2576_v2, %v2755_v9  ;;  %v6414_v50 = vadd.f32 %v6413_v21, %v7909_v24 }
 0x21f   : > { %2816 = vst [vmem:[#allocation3 + $0xc] sm:$0x1] %v2815_v45  ;;  %2757 = vst [vmem:[#allocation3 + $0x18] sm:$0xf] %v2756_v14  ;;  %v2584_v0 = vor.u32 %v2582_v41, %v2581_v16  ;;  %v2586_v55 = vrot.slane %v2581_v16, 4  ;;  %v2588_v63 = vshrl.u32 %v5571_v37, 16  ;;  %v5572_v6 = vpack.c.bf16 %v2460_v31, %v2460_v31 }
 0x220   : > { %v5883_v22 = vpop.f32.mrb[80].mxu0  ;;  %v2591_v60 = vshll.u32 %v5571_v37, 16  ;;  %v2414_v56 = vmul.f32 %v6414_v50, %v7875_v18  ;;  %v6422_v3 = vadd.f32 %v6421_v39, %v7923_v43  ;;  %v2766_v31 = vld [vmem:[#allocation3 + $0x2c] sm:$0x1] }
 0x221   : > { %v2845_v42 = vld [vmem:[#allocation3 + $0x14] sm:$0x1]  ;;  %v5884_v38 = vpop.f32.mrb[81].mxu0  ;;  %v2585_v5 = vsel %vm7913_vm13, %v2577_v54, %v2584_v0  ;;  %v2760_v7 = vsel %vm7905_vm12, %v2586_v55, %v2759_v46  ;;  %v2590_v53 = vrot.slane %v2588_v63, 7  ;;  %v2596_v44 = vshrl.u32 %v5572_v6, 16 }
 0x222   : > { %v2846_v24 = vsel %vm7943_vm14, 0, %v2845_v42  ;;  %v5886_v27 = vpop.f32.mrb[82].mxu0  ;;  %2758 = vst [vmem:[#allocation3 + $0x1c] sm:$0xf] %v2585_v5  ;;  %2761 = vst [vmem:[#allocation3 + $0x20] sm:$0x1] %v2760_v7  ;;  %v2441_v9 = vadd.f32 %v7880_v29, %v2414_v56  ;;  %v2415_v43 = vmul.f32 %v6422_v3, %v7875_v18  ;;  %v5885_v30 = vadd.f32 %v5884_v38, %v5883_v22 }
 0x223   : > { %2847 = vst [vmem:[#allocation3 + $0x14] sm:$0x1] %v2846_v24  ;;  %v5887_v35 = vpop.f32.mrb[83].mxu0  ;;  %v2593_v47 = vor.u32 %v2591_v60, %v2590_v53  ;;  %v2598_v21 = vrot.slane %v2596_v44, 7  ;;  %v2599_v23 = vshll.u32 %v5572_v6, 16  ;;  %v2594_v41 = vrot.slane %v2590_v53, 4 }
 0x224   : > { %v5888_v2 = vadd.f32 %v5887_v35, %v5886_v27  ;;  %v2461_v59 = vmax.f32 %v2441_v9, 0.0  ;;  %v2442_v16 = vadd.f32 %v7880_v29, %v2415_v43  ;;  %v6409_v45 = vadd.f32 %v5885_v30, %v7831_v4 }
 0x225   : > { %v2763_v37 = vsel %vm7896_vm11, %v2593_v47, %v2762_v8  ;;  %v2601_v50 = vor.u32 %v2599_v23, %v2598_v21  ;;  %v2603_v39 = vrot.slane %v2598_v21, 4  ;;  %v2769_v8 = vld [vmem:[#allocation3 + $0x30] sm:$0xf] }
 0x226   : > { %v6417_v14 = vadd.f32 %v5888_v2, %v7839_v48  ;;  %v2817_v46 = vld [vmem:[#allocation3 + $0x18] sm:$0x1]  ;;  %2764 = vst [vmem:[#allocation3 + $0x24] sm:$0xf] %v2763_v37  ;;  %v5573_v54 = vpack.c.bf16 %v2461_v59, %v2461_v59  ;;  %v2462_v0 = vmax.f32 %v2442_v16, 0.0  ;;  %v6410_v63 = vadd.f32 %v6409_v45, %v7901_v52 }
 0x227   : > { %v2818_v55 = vsel %vm7905_vm12, 0, %v2817_v46  ;;  %v5889_v42 = vpop.f32.mrb[84].mxu0  ;;  %v2602_v4 = vsel %vm7913_vm13, %v2594_v41, %v2601_v50  ;;  %v2767_v48 = vsel %vm7905_vm12, %v2603_v39, %v2766_v31  ;;  %v2773_v45 = vld [vmem:[#allocation3 + $0x38] sm:$0x1] }
 0x228   : > { %v6418_v22 = vadd.f32 %v6417_v14, %v7919_v62  ;;  %2819 = vst [vmem:[#allocation3 + $0x18] sm:$0x1] %v2818_v55  ;;  %v2605_v60 = vshrl.u32 %v5573_v54, 16  ;;  %v5890_v6 = vpop.f32.mrb[85].mxu0  ;;  %2765 = vst [vmem:[#allocation3 + $0x28] sm:$0xf] %v2602_v4  ;;  %v5574_v3 = vpack.c.bf16 %v2462_v0, %v2462_v0  ;;  %v2416_v38 = vmul.f32 %v6410_v63, %v7875_v18 }
 0x229   : > { %v2848_v56 = vld [vmem:[#allocation3 + $0x20] sm:$0x1]  ;;  %2768 = vst [vmem:[#allocation3 + $0x2c] sm:$0x1] %v2767_v48  ;;  %v5891_v24 = vadd.f32 %v5890_v6, %v5889_v42  ;;  %v5892_v62 = vpop.f32.mrb[86].mxu0  ;;  %v2608_v53 = vshll.u32 %v5573_v54, 16 }
 0x22a   : > { %v2417_v52 = vmul.f32 %v6418_v22, %v7875_v18  ;;  %v2849_v5 = vsel %vm7943_vm14, 0, %v2848_v56  ;;  %v2607_v7 = vrot.slane %v2605_v60, 7  ;;  %v5893_v27 = vpop.f32.mrb[87].mxu0  ;;  %v2613_v44 = vshrl.u32 %v5574_v3, 16 }
 0x22b   : > { %2850 = vst [vmem:[#allocation3 + $0x20] sm:$0x1] %v2849_v5  ;;  %v2443_v9 = vadd.f32 %v7880_v29, %v2416_v38  ;;  %v2616_v47 = vshll.u32 %v5574_v3, 16  ;;  %v6429_v30 = vadd.f32 %v5891_v24, %v7851_v11  ;;  %v5894_v2 = vadd.f32 %v5893_v27, %v5892_v62  ;;  %v2776_v5 = vld [vmem:[#allocation3 + $0x3c] sm:$0xf] }
 0x22c   : > { %v2444_v43 = vadd.f32 %v7880_v29, %v2417_v52  ;;  %v2610_v35 = vor.u32 %v2608_v53, %v2607_v7  ;;  %v2611_v23 = vrot.slane %v2607_v7, 4  ;;  %v2615_v59 = vrot.slane %v2613_v44, 7 }
 0x22d   : > { %v2820_v21 = vld [vmem:[#allocation3 + $0x24] sm:$0x1]  ;;  %v2463_v16 = vmax.f32 %v2443_v9, 0.0  ;;  %v6430_v14 = vadd.f32 %v6429_v30, %v7936_v12  ;;  %v6437_v46 = vadd.f32 %v5894_v2, %v7858_v49 }
 0x22e   : > { %v2464_v41 = vmax.f32 %v2444_v43, 0.0  ;;  %v2821_v37 = vsel %vm7905_vm12, 0, %v2820_v21  ;;  %v2770_v31 = vsel %vm7896_vm11, %v2610_v35, %v2769_v8  ;;  %v2618_v11 = vor.u32 %v2616_v47, %v2615_v59  ;;  %v2780_v9 = vld [vmem:[#allocation3 + $0x44] sm:$0x1] }
 0x22f   : > { %2822 = vst [vmem:[#allocation3 + $0x24] sm:$0x1] %v2821_v37  ;;  %2771 = vst [vmem:[#allocation3 + $0x30] sm:$0xf] %v2770_v31  ;;  %v2620_v50 = vrot.slane %v2615_v59, 4  ;;  %v5575_v39 = vpack.c.bf16 %v2463_v16, %v2463_v16  ;;  %v5895_v0 = vpop.f32.mrb[88].mxu0  ;;  %v2418_v63 = vmul.f32 %v6430_v14, %v7875_v18  ;;  %v6438_v22 = vadd.f32 %v6437_v46, %v7951_v26 }
 0x230   : > { %v5576_v54 = vpack.c.bf16 %v2464_v41, %v2464_v41  ;;  %v2851_v55 = vld [vmem:[#allocation3 + $0x2c] sm:$0x1]  ;;  %v5896_v42 = vpop.f32.mrb[89].mxu0  ;;  %v2619_v12 = vsel %vm7913_vm13, %v2611_v23, %v2618_v11 }
 0x231   : > { %v2852_v4 = vsel %vm7943_vm14, 0, %v2851_v55  ;;  %v2774_v49 = vsel %vm7905_vm12, %v2620_v50, %v2773_v45  ;;  %v2622_v48 = vshrl.u32 %v5575_v39, 16  ;;  %v5898_v60 = vpop.f32.mrb[90].mxu0  ;;  %2772 = vst [vmem:[#allocation3 + $0x34] sm:$0xf] %v2619_v12  ;;  %v2625_v6 = vshll.u32 %v5575_v39, 16 }
 0x232   : > { %2853 = vst [vmem:[#allocation3 + $0x2c] sm:$0x1] %v2852_v4  ;;  %2775 = vst [vmem:[#allocation3 + $0x38] sm:$0x1] %v2774_v49  ;;  %v2630_v56 = vshrl.u32 %v5576_v54, 16  ;;  %v2445_v3 = vadd.f32 %v7880_v29, %v2418_v63  ;;  %v5899_v26 = vpop.f32.mrb[91].mxu0  ;;  %v2419_v52 = vmul.f32 %v6438_v22, %v7875_v18  ;;  %v5897_v24 = vadd.f32 %v5896_v42, %v5895_v0 }
 0x233   : > { %v2624_v38 = vrot.slane %v2622_v48, 7  ;;  %v5900_v62 = vadd.f32 %v5899_v26, %v5898_v60  ;;  %v2633_v53 = vshll.u32 %v5576_v54, 16  ;;  %v2783_v42 = vld [vmem:[#allocation3 + $0x48] sm:$0xf] }
 0x234   : > { %v2632_v7 = vrot.slane %v2630_v56, 7  ;;  %v2465_v27 = vmax.f32 %v2445_v3, 0.0  ;;  %v2446_v43 = vadd.f32 %v7880_v29, %v2419_v52  ;;  %v6425_v35 = vadd.f32 %v5897_v24, %v7847_v10  ;;  %v2787_v24 = vld [vmem:[#allocation3 + $0x50] sm:$0x1] }
 0x235   : > { %v2627_v8 = vor.u32 %v2625_v6, %v2624_v38  ;;  %v2628_v44 = vrot.slane %v2624_v38, 4  ;;  %v6433_v23 = vadd.f32 %v5900_v62, %v7855_v19 }
 0x236   : > { %v2823_v47 = vld [vmem:[#allocation3 + $0x30] sm:$0x1]  ;;  %v2635_v30 = vor.u32 %v2633_v53, %v2632_v7  ;;  %v2637_v2 = vrot.slane %v2632_v7, 4  ;;  %v5577_v21 = vpack.c.bf16 %v2465_v27, %v2465_v27  ;;  %v2466_v41 = vmax.f32 %v2446_v43, 0.0 }
 0x237   : > { %v2824_v59 = vsel %vm7905_vm12, 0, %v2823_v47  ;;  %v2777_v16 = vsel %vm7896_vm11, %v2627_v8, %v2776_v5  ;;  %v6426_v37 = vadd.f32 %v6425_v35, %v7933_v15  ;;  %v5901_v31 = vpop.f32.mrb[92].mxu0  ;;  %v6434_v39 = vadd.f32 %v6433_v23, %v7939_v32 }
 0x238   : > { %2825 = vst [vmem:[#allocation3 + $0x30] sm:$0x1] %v2824_v59  ;;  %2778 = vst [vmem:[#allocation3 + $0x3c] sm:$0xf] %v2777_v16  ;;  %v2636_v10 = vsel %vm7913_vm13, %v2628_v44, %v2635_v30  ;;  %v2781_v45 = vsel %vm7905_vm12, %v2637_v2, %v2780_v9  ;;  %v2639_v14 = vshrl.u32 %v5577_v21, 16  ;;  %v5902_v19 = vpop.f32.mrb[93].mxu0  ;;  %v5578_v11 = vpack.c.bf16 %v2466_v41, %v2466_v41 }
 0x239   : > { %v2854_v46 = vld [vmem:[#allocation3 + $0x38] sm:$0x1]  ;;  %2779 = vst [vmem:[#allocation3 + $0x40] sm:$0xf] %v2636_v10  ;;  %2782 = vst [vmem:[#allocation3 + $0x44] sm:$0x1] %v2781_v45  ;;  %v2420_v50 = vmul.f32 %v6426_v37, %v7875_v18  ;;  %v5903_v15 = vadd.f32 %v5902_v19, %v5901_v31  ;;  %v2421_v49 = vmul.f32 %v6434_v39, %v7875_v18 }
 0x23a   : > { %v5904_v54 = vpop.f32.mrb[94].mxu0  ;;  %v2855_v0 = vsel %vm7943_vm14, 0, %v2854_v46  ;;  %v2641_v55 = vrot.slane %v2639_v14, 7  ;;  %v2642_v63 = vshll.u32 %v5577_v21, 16  ;;  %v2647_v4 = vshrl.u32 %v5578_v11, 16 }
 0x23b   : > { %v5905_v22 = vpop.f32.mrb[95].mxu0  ;;  %2856 = vst [vmem:[#allocation3 + $0x38] sm:$0x1] %v2855_v0  ;;  %v2447_v12 = vadd.f32 %v7880_v29, %v2420_v50  ;;  %v6445_v60 = vadd.f32 %v5903_v15, %v7864_v34  ;;  %v2650_v56 = vshll.u32 %v5578_v11, 16  ;;  %v2448_v26 = vadd.f32 %v7880_v29, %v2421_v49  ;;  %v2790_v14 = vld [vmem:[#allocation3 + $0x54] sm:$0xf] }
 0x23c   : > { %v2644_v48 = vor.u32 %v2642_v63, %v2641_v55  ;;  %v5906_v6 = vadd.f32 %v5905_v22, %v5904_v54  ;;  %v2649_v32 = vrot.slane %v2647_v4, 7  ;;  %v2645_v38 = vrot.slane %v2641_v55, 4 }
 0x23d   : > { %v2467_v3 = vmax.f32 %v2447_v12, 0.0  ;;  %v6446_v62 = vadd.f32 %v6445_v60, %v7968_v20  ;;  %v2468_v8 = vmax.f32 %v2448_v26, 0.0  ;;  %v2794_v12 = vld [vmem:[#allocation3 + $0x5c] sm:$0x1] }
 0x23e   : > { %v2784_v52 = vsel %vm7896_vm11, %v2644_v48, %v2783_v42  ;;  %v6453_v5 = vadd.f32 %v5906_v6, %v7870_v40  ;;  %v2652_v53 = vor.u32 %v2650_v56, %v2649_v32  ;;  %v2654_v27 = vrot.slane %v2649_v32, 4 }
 0x23f   : > { %v2826_v7 = vld [vmem:[#allocation3 + $0x3c] sm:$0x1]  ;;  %2785 = vst [vmem:[#allocation3 + $0x48] sm:$0xf] %v2784_v52  ;;  %v5579_v34 = vpack.c.bf16 %v2467_v3, %v2467_v3  ;;  %v5907_v44 = vpop.f32.mrb[96].mxu0  ;;  %v2422_v35 = vmul.f32 %v6446_v62, %v7875_v18  ;;  %v5580_v59 = vpack.c.bf16 %v2468_v8, %v2468_v8 }
 0x240   : > { %v2827_v9 = vsel %vm7905_vm12, 0, %v2826_v7  ;;  %v2857_v43 = vld [vmem:[#allocation3 + $0x44] sm:$0x1]  ;;  %v6454_v47 = vadd.f32 %v6453_v5, %v7973_v36  ;;  %v5908_v30 = vpop.f32.mrb[97].mxu0  ;;  %v2653_v20 = vsel %vm7913_vm13, %v2645_v38, %v2652_v53  ;;  %v2788_v2 = vsel %vm7905_vm12, %v2654_v27, %v2787_v24  ;;  %v2797_v62 = vld [vmem:[#allocation3 + $0x60] sm:$0xf] }
 0x241   : > { %2828 = vst [vmem:[#allocation3 + $0x3c] sm:$0x1] %v2827_v9  ;;  %v2858_v40 = vsel %vm7943_vm14, 0, %v2857_v43  ;;  %v2656_v21 = vshrl.u32 %v5579_v34, 16  ;;  %v5910_v23 = vpop.f32.mrb[98].mxu0  ;;  %v2449_v16 = vadd.f32 %v7880_v29, %v2422_v35  ;;  %v2659_v31 = vshll.u32 %v5579_v34, 16 }
 0x242   : > { %2859 = vst [vmem:[#allocation3 + $0x44] sm:$0x1] %v2858_v40  ;;  %2786 = vst [vmem:[#allocation3 + $0x4c] sm:$0xf] %v2653_v20  ;;  %v2423_v36 = vmul.f32 %v6454_v47, %v7875_v18  ;;  %v5911_v41 = vpop.f32.mrb[99].mxu0  ;;  %v5909_v10 = vadd.f32 %v5908_v30, %v5907_v44  ;;  %v2664_v19 = vshrl.u32 %v5580_v59, 16 }
 0x243   : > { %2789 = vst [vmem:[#allocation3 + $0x50] sm:$0x1] %v2788_v2  ;;  %v2658_v37 = vrot.slane %v2656_v21, 7  ;;  %v5912_v45 = vadd.f32 %v5911_v41, %v5910_v23  ;;  %v2469_v46 = vmax.f32 %v2449_v16, 0.0  ;;  %v2667_v55 = vshll.u32 %v5580_v59, 16 }
 0x244   : > { %v2450_v11 = vadd.f32 %v7880_v29, %v2423_v36  ;;  %v6441_v39 = vadd.f32 %v5909_v10, %v7861_v58  ;;  %v2666_v0 = vrot.slane %v2664_v19, 7  ;;  %v2801_v35 = vld [vmem:[#allocation3 + $0x68] sm:$0x1]  ;;  %v2804_v10 = vld [vmem:[#allocation3 + $0x6c] sm:$0xf] }
 0x245   : > { %v2661_v50 = vor.u32 %v2659_v31, %v2658_v37  ;;  %v6449_v15 = vadd.f32 %v5912_v45, %v7867_v1  ;;  %v5581_v63 = vpack.c.bf16 %v2469_v46, %v2469_v46  ;;  %v2662_v58 = vrot.slane %v2658_v37, 4  ;;  %v2808_v46 = vld [vmem:[#allocation3 + $0x74] sm:$0x1] }
 0x246   : > { %v2829_v54 = vld [vmem:[#allocation3 + $0x48] sm:$0x1]  ;;  %v2470_v22 = vmax.f32 %v2450_v11, 0.0  ;;  %v6442_v49 = vadd.f32 %v6441_v39, %v7965_v57  ;;  %v2669_v1 = vor.u32 %v2667_v55, %v2666_v0  ;;  %v2671_v60 = vrot.slane %v2666_v0, 4 }
 0x247   : > { %v2830_v42 = vsel %vm7905_vm12, 0, %v2829_v54  ;;  %v2791_v4 = vsel %vm7896_vm11, %v2661_v50, %v2790_v14  ;;  %v6450_v48 = vadd.f32 %v6449_v15, %v7971_v33  ;;  %v2673_v6 = vshrl.u32 %v5581_v63, 16 }
 0x248   : > { %2831 = vst [vmem:[#allocation3 + $0x48] sm:$0x1] %v2830_v42  ;;  %2792 = vst [vmem:[#allocation3 + $0x54] sm:$0xf] %v2791_v4  ;;  %v2676_v56 = vshll.u32 %v5581_v63, 16  ;;  %v5582_v3 = vpack.c.bf16 %v2470_v22, %v2470_v22  ;;  %v2424_v26 = vmul.f32 %v6442_v49, %v7875_v18  ;;  %v2670_v57 = vsel %vm7913_vm13, %v2662_v58, %v2669_v1 }
 0x249   : > { %v2425_v38 = vmul.f32 %v6450_v48, %v7875_v18  ;;  %v2795_v33 = vsel %vm7905_vm12, %v2671_v60, %v2794_v12  ;;  %v2675_v24 = vrot.slane %v2673_v6, 7  ;;  %2793 = vst [vmem:[#allocation3 + $0x58] sm:$0xf] %v2670_v57  ;;  %v7076_v49 = vmov (!%p5399_p4), 0  }
 0x24a   : > { %v2860_v32 = vld [vmem:[#allocation3 + $0x50] sm:$0x1]  ;;  %2796 = vst [vmem:[#allocation3 + $0x5c] sm:$0x1] %v2795_v33  ;;  %v2681_v5 = vshrl.u32 %v5582_v3, 16  ;;  %v2451_v7 = vadd.f32 %v7880_v29, %v2424_v26  ;;  %v2684_v34 = vshll.u32 %v5582_v3, 16 }
 0x24b   : > { %v2861_v52 = vsel %vm7943_vm14, 0, %v2860_v32  ;;  %v2452_v53 = vadd.f32 %v7880_v29, %v2425_v38  ;;  %v2678_v18 = vor.u32 %v2676_v56, %v2675_v24  ;;  %v2679_v9 = vrot.slane %v2675_v24, 4  ;;  %2876 = vst [vmem:[#allocation3] sm:$0xf] (!%p5399_p4), %v7076_v49  ;;  %2877 = vst [vmem:[#allocation3 + $0x4] sm:$0xf] (!%p5399_p4), %v7076_v49 }
 0x24c   : > { %2862 = vst [vmem:[#allocation3 + $0x50] sm:$0x1] %v2861_v52  ;;  %v2683_v27 = vrot.slane %v2681_v5, 7  ;;  %v2471_v8 = vmax.f32 %v2451_v7, 0.0  ;;  %2878 = vst [vmem:[#allocation3 + $0x8] sm:$0x1] (!%p5399_p4), %v7076_v49 }
 0x24d   : > { %v2472_v44 = vmax.f32 %v2452_v53, 0.0  ;;  %v2798_v43 = vsel %vm7896_vm11, %v2678_v18, %v2797_v62 }
 0x24e   : > { %2799 = vst [vmem:[#allocation3 + $0x60] sm:$0xf] %v2798_v43  ;;  %v2686_v30 = vor.u32 %v2684_v34, %v2683_v27  ;;  %v2688_v40 = vrot.slane %v2683_v27, 4  ;;  %v5583_v20 = vpack.c.bf16 %v2471_v8, %v2471_v8 }
 0x24f   : > { %v2832_v47 = vld [vmem:[#allocation3 + $0x54] sm:$0x1]  ;;  %v5584_v2 = vpack.c.bf16 %v2472_v44, %v2472_v44 }
 0x250   : > { %v2833_v21 = vsel %vm7905_vm12, 0, %v2832_v47  ;;  %v2687_v29 = vsel %vm7913_vm13, %v2679_v9, %v2686_v30  ;;  %v2802_v23 = vsel %vm7905_vm12, %v2688_v40, %v2801_v35  ;;  %v2690_v59 = vshrl.u32 %v5583_v20, 16 }
 0x251   : > { %2834 = vst [vmem:[#allocation3 + $0x54] sm:$0x1] %v2833_v21  ;;  %v2863_v16 = vld [vmem:[#allocation3 + $0x5c] sm:$0x1]  ;;  %2800 = vst [vmem:[#allocation3 + $0x64] sm:$0xf] %v2687_v29 }
 0x252   : > { %2803 = vst [vmem:[#allocation3 + $0x68] sm:$0x1] %v2802_v23  ;;  %v2698_v36 = vshrl.u32 %v5584_v2, 16  ;;  %v2864_v41 = vsel %vm7943_vm14, 0, %v2863_v16  ;;  %v2692_v37 = vrot.slane %v2690_v59, 7  ;;  %v2693_v31 = vshll.u32 %v5583_v20, 16 }
 0x253   : > { %2865 = vst [vmem:[#allocation3 + $0x5c] sm:$0x1] %v2864_v41  ;;  %v2701_v14 = vshll.u32 %v5584_v2, 16 }
 0x254   : > { %v2700_v45 = vrot.slane %v2698_v36, 7  ;;  %v2695_v19 = vor.u32 %v2693_v31, %v2692_v37  ;;  %v2696_v50 = vrot.slane %v2692_v37, 4 }
 0x255   : > { %v2835_v11 = vld [vmem:[#allocation3 + $0x60] sm:$0x1] }
 0x256   : > { %v2703_v39 = vor.u32 %v2701_v14, %v2700_v45  ;;  %v2705_v15 = vrot.slane %v2700_v45, 4  ;;  %v2836_v54 = vsel %vm7905_vm12, 0, %v2835_v11  ;;  %v2805_v0 = vsel %vm7896_vm11, %v2695_v19, %v2804_v10 }
 0x257   : > { %2837 = vst [vmem:[#allocation3 + $0x60] sm:$0x1] %v2836_v54  ;;  %2806 = vst [vmem:[#allocation3 + $0x6c] sm:$0xf] %v2805_v0 }
 0x258   : > { %v2704_v55 = vsel %vm7913_vm13, %v2696_v50, %v2703_v39  ;;  %v2809_v63 = vsel %vm7905_vm12, %v2705_v15, %v2808_v46 }
 0x259   : > { %v2866_v22 = vld [vmem:[#allocation3 + $0x68] sm:$0x1]  ;;  %2807 = vst [vmem:[#allocation3 + $0x70] sm:$0xf] %v2704_v55  ;;  %2810 = vst [vmem:[#allocation3 + $0x74] sm:$0x1] %v2809_v63 }
 0x25a   : > { %v2867_v42 = vsel %vm7943_vm14, 0, %v2866_v22 }
 0x25b   : > { %2868 = vst [vmem:[#allocation3 + $0x68] sm:$0x1] %v2867_v42 }
 0x25c   : > { %2875 = sbr.rel (%p5399_p4) target bundleno = 611 (0x263), region = 64 }
 0x25e   : > { %v2838_v4 = vld [vmem:[#allocation3 + $0x6c] sm:$0x1] }
 0x25f   : > { %v2839_v17 = vsel %vm7905_vm12, 0, %v2838_v4 }
 0x260   : > { %v2869_v12 = vld [vmem:[#allocation3 + $0x74] sm:$0x1]  ;;  %2840 = vst [vmem:[#allocation3 + $0x6c] sm:$0x1] %v2839_v17 }
 0x261   : > { %v2870_v61 = vsel %vm7943_vm14, 0, %v2869_v12 }
 0x262   : > { %2871 = vst [vmem:[#allocation3 + $0x74] sm:$0x1] %v2870_v61 }
 0x263 PF: > { %p5400_p3 = scmp.ne.s32.totalorder %s7053_s30, 1 }
 0x264   : > { %v7077_v25 = vmov (!%p5400_p3), 0  }
 0x265   : > { %2882 = sbr.rel (%p5400_p3) target bundleno = 620 (0x26c), region = 68  ;;  %2884 = vst [vmem:[#allocation3 + $0x6c] sm:$0xf] (!%p5400_p3), %v7077_v25  ;;  %2885 = vst [vmem:[#allocation3 + $0x70] sm:$0xf] (!%p5400_p3), %v7077_v25 }
 0x266   : > { %2886 = vst [vmem:[#allocation3 + $0x74] sm:$0x1] (!%p5400_p3), %v7077_v25 }
 0x26c PF: > { %v6773_v13 = vld [vmem:[#allocation9 + $0x100] sm:$0xff]   ;;  %v6776_v1 = vld [vmem:[#allocation9 + $0x108] sm:$0xff]   ;;  %v6779_v32 = vld [vmem:[#allocation9 + $0x110] sm:$0xff]   ;;  %s8754_s17 = sld [smem:[#allocation22_spill]]  ;;  %s8755_s7 = sld [smem:[#allocation15_spill]] }
 0x26d   : > { %v6774_v48 = vld [vmem:[#allocation9 + $0x140] sm:$0xff]   ;;  %5931 = vmatprep.subr.bf16.mxu0 %v6773_v13  ;;  %v6777_v60 = vld [vmem:[#allocation9 + $0x148] sm:$0xff]   ;;  %v6780_v56 = vld [vmem:[#allocation9 + $0x150] sm:$0xff]   ;;  %s5601_s24 = sshll.u32 %s7053_s30, 4  ;;  %s8756_s30 = sld [smem:[#allocation17_spill]] }
 0x26e   : > { %v6775_v58 = vld [vmem:[#allocation9 + $0xc0] sm:$0xff]   ;;  %6279 = vmatprep.subr.bf16.mxu1 %v6774_v48  ;;  %v6778_v6 = vld [vmem:[#allocation9 + $0xc8] sm:$0xff]   ;;  %v6781_v3 = vld [vmem:[#allocation9 + $0xd0] sm:$0xff]   ;;  %s5131_s14 = sshll.u32 %s8107_s20, 4  ;;  %s8757_s15 = sld [smem:[#allocation23_spill]]  ;;  %s8622_s14 = int_to_ptr.vmem [resolvable:$true] %s5131_s14 }
 0x26f   : > { %5932 = vmatpush3.bf16.msra.mxu0 %v6775_v58  ;;  %6280 = vmatpush3.bf16.msra.mxu1 %v6774_v48  ;;  %v6782_v26 = vld [vmem:[#allocation9 + $0x118] sm:$0xff]   ;;  %v6785_v57 = vld [vmem:[#allocation9 + $0x120] sm:$0xff]   ;;  %v6788_v62 = vld [vmem:[#allocation9 + $0x128] sm:$0xff]   ;;  %s8633_s23 = scalar_lea.sflag [#allocation6], %s337_s9  ;;  %s6943_s6 = scalar_lea.vmem %s8622_s14, 1024 }
 0x270   : > { %5933 = vmatprep.subr.bf16.mxu0 %v6776_v1  ;;  %6281 = vmatprep.subr.bf16.mxu1 %v6777_v60  ;;  %v6783_v38 = vld [vmem:[#allocation9 + $0x158] sm:$0xff]   ;;  %v6786_v33 = vld [vmem:[#allocation9 + $0x160] sm:$0xff]   ;;  %v6789_v5 = vld [vmem:[#allocation9 + $0x168] sm:$0xff]   ;;  %p6944_p7 = scmp.ne.s32.totalorder %s8622_s14, %s6943_s6  ;;  %s7078_s18 = smov [#allocation10]  }
 0x271   : > { %v6784_v52 = vld [vmem:[#allocation9 + $0xd8] sm:$0xff]   ;;  %v6787_v24 = vld [vmem:[#allocation9 + $0xe0] sm:$0xff]   ;;  %v6790_v7 = vld [vmem:[#allocation9 + $0xe8] sm:$0xff]   ;;  %s6947_s1 = sshll.u32 %s7078_s18, 4  ;;  %s6948_s1 = int_to_ptr.vmem [resolvable:$false] %s6947_s1 }
 0x272   : > { %v6791_v53 = vld [vmem:[#allocation9 + $0x130] sm:$0xff]   ;;  %v6794_v34 = vld [vmem:[#allocation9 + $0x138] sm:$0xff]   ;;  %v3303_v11 = vld [vmem:[#allocation3 + $0x18] sm:$0xe]  ;;  %s5560_s13 = sshll.u32 %s8755_s7, 5  ;;  %p6950_p0 = scmp.lt.s32.totalorder %s8622_s14, %s6948_s1 }
 0x273   : > { %5934 = vmatpush3.bf16.msra.mxu0 %v6778_v6  ;;  %6282 = vmatpush3.bf16.msra.mxu1 %v6777_v60  ;;  %v6792_v18 = vld [vmem:[#allocation9 + $0x170] sm:$0xff]   ;;  %v6795_v8 = vld [vmem:[#allocation9 + $0x178] sm:$0xff]   ;;  %v3304_v50 = vld [vmem:[#allocation3 + $0x1c] sm:$0xf]  ;;  %v5423_v0 = vrot.slane %v3303_v11, 9  ;;  %s5128_s19 = sadd.s32 %s5601_s24, %s5560_s13  ;;  %p8758_p13 = scmp.ne.s32.totalorder %s8756_s30, 0 }
 0x274   : > { %5935 = vmatprep.subr.bf16.mxu0 %v6779_v32  ;;  %6283 = vmatprep.subr.bf16.mxu1 %v6780_v56  ;;  %v6793_v27 = vld [vmem:[#allocation9 + $0xf0] sm:$0xff]   ;;  %v2981_v9 = vld [vmem:[#allocation3 + $0x10] sm:$0xf]  ;;  %v2982_v43 = vld [vmem:[#allocation3 + $0x14] sm:$0x1]  ;;  %v3373_v55 = vrot.slane %v3304_v50, 5 }
 0x275   : > { %v2980_v44 = vld [vmem:[#allocation3 + $0xc] sm:$0xf]  ;;  %v3041_v30 = vshll.u32 %v2981_v9, 16  ;;  %v3045_v40 = vshrl.u32 %v2981_v9, 16  ;;  %v6796_v2 = vld [vmem:[#allocation9 + $0xf8] sm:$0xff]   ;;  %v3051_v21 = vshll.u32 %v2982_v43, 16  ;;  %p6945_p9 = pnand %p6944_p7, %p8758_p13 }
 0x276   : > { %v3032_v35 = vshrl.u32 %v2980_v44, 16  ;;  %v3035_v47 = vshll.u32 %v2980_v44, 16  ;;  %v3300_v20 = vld [vmem:[#allocation3 + $0xc] sm:$0xe]  ;;  %v3301_v29 = vld [vmem:[#allocation3 + $0x10] sm:$0xf]  ;;  %v3374_v12 = vsel %vm7517_vm5, %v5423_v0, %v3373_v55 }
 0x277   : > { %5936 = vmatpush3.bf16.msra.mxu0 %v6781_v3  ;;  %6284 = vmatpush3.bf16.msra.mxu1 %v6780_v56  ;;  %v3302_v23 = vld [vmem:[#allocation3 + $0x14] sm:$0x1]  ;;  %v5422_v59 = vrot.slane %v3300_v20, 9  ;;  %v3043_v41 = vrot.slane %v3041_v30, 5  ;;  %v3047_v37 = vrot.slane %v3045_v40, 4  ;;  %v3053_v31 = vrot.slane %v3051_v21, 5  ;;  %p6946_p11 = pneg %p6945_p9 }
 0x278   : > { %5937 = vmatprep.subr.bf16.mxu0 %v6782_v26  ;;  %6285 = vmatprep.subr.bf16.mxu1 %v6783_v38  ;;  %v3034_v16 = vrot.slane %v3032_v35, 4  ;;  %v3037_v36 = vrot.slane %v3035_v47, 5  ;;  %v3366_v10 = vrot.slane %v3301_v29, 5  ;;  %v3369_v45 = vrot.slane %v3302_v23, 5  ;;  %v6797_v14 = vld [vmem:[#allocation3 + $0xc] sm:$0xff]   ;;  %v6798_v63 = vld [vmem:[#allocation9 + $0x80] sm:$0xff]  }
 0x279   : > { %v3048_v46 = vor.u32 %v3047_v37, %v3043_v41  ;;  %v3305_v39 = vld [vmem:[#allocation3 + $0x20] sm:$0x1]  ;;  %2968 = vst [vmem:[#allocation2 + $0x18] sm:$0xff] %v6797_v14  ;;  %v3375_v61 = vrot.slane %v3373_v55, 4  ;;  %v8117_v49 = vld [vmem:[#allocation3 + $0x18] sm:$0xff]   ;;  %v6801_v9 = vld [vmem:[#allocation9 + $0x90] sm:$0xff]  }
 0x27a   : > { %v3038_v19 = vor.u32 %v3037_v36, %v3034_v16  ;;  %v3367_v15 = vsel %vm7517_vm5, %v5422_v59, %v3366_v10  ;;  %v3368_v54 = vrot.slane %v3366_v10, 4  ;;  %v3376_v4 = vrot.slane %v3305_v39, 5  ;;  %v2983_v58 = vld [vmem:[#allocation3 + $0x18] sm:$0xf]  ;;  %v2984_v1 = vld [vmem:[#allocation3 + $0x1c] sm:$0xf] }
 0x27b   : > { %5938 = vmatpush3.bf16.msra.mxu0 %v6784_v52  ;;  %6286 = vmatpush3.bf16.msra.mxu1 %v6783_v38  ;;  %v3049_v42 = vrot.slane %v3048_v46, 4  ;;  %v2985_v60 = vld [vmem:[#allocation3 + $0x20] sm:$0x1]  ;;  %v3056_v56 = vshrl.u32 %v2983_v58, 16  ;;  %v3059_v3 = vshll.u32 %v2983_v58, 16  ;;  %2969 = vst [vmem:[#allocation2 + $0x30] sm:$0xff] %v8117_v49 }
 0x27c   : > { %5939 = vmatprep.subr.bf16.mxu0 %v6785_v57  ;;  %6287 = vmatprep.subr.bf16.mxu1 %v6786_v33  ;;  %v3039_v22 = vrot.slane %v3038_v19, 4  ;;  %v3370_v17 = vsel %vm7517_vm5, %v3368_v54, %v3369_v45  ;;  %v3377_v32 = vsel %vm7517_vm5, %v3375_v61, %v3376_v4  ;;  %v3306_v26 = vld [vmem:[#allocation3 + $0x24] sm:$0xe]  ;;  %v3307_v38 = vld [vmem:[#allocation3 + $0x28] sm:$0xf]  ;;  %v6802_v19 = vld [vmem:[#allocation9 + $0x98] sm:$0xff]  }
 0x27d   : > { %v3054_v13 = vsel %vm7379_vm2, %v3049_v42, %v3053_v31  ;;  %v8123_v48 = vcombine.low %v3367_v15, %v3370_v17  ;;  %v8131_v52 = vcombine.low %v3374_v12, %v3377_v32  ;;  %v6799_v57 = vld [vmem:[#allocation9 + $0x88] sm:$0xff]   ;;  %v3309_v40 = vld [vmem:[#allocation3 + $0x30] sm:$0xe]  ;;  %v3310_v20 = vld [vmem:[#allocation3 + $0x34] sm:$0xf] }
 0x27e   : > { %v3044_v25 = vsel %vm7379_vm2, %v3039_v22, %v3043_v41  ;;  %v3311_v21 = vld [vmem:[#allocation3 + $0x38] sm:$0x1]  ;;  %v5425_v29 = vrot.slane %v3309_v40, 9  ;;  %v3387_v23 = vrot.slane %v3310_v20, 5  ;;  %v2986_v45 = vld [vmem:[#allocation3 + $0x24] sm:$0xf] }
 0x27f   : > { %5940 = vmatpush3.bf16.msra.mxu0 %v6787_v24  ;;  %6288 = vmatpush3.bf16.msra.mxu1 %v6786_v33  ;;  %v8125_v6 = vcombine.low %v3044_v25, %v3054_v13  ;;  %v3065_v33 = vshll.u32 %v2984_v1, 16  ;;  %v3069_v24 = vshrl.u32 %v2984_v1, 16  ;;  %3469 = vst [vmem:[#allocation2 + $0x40] sm:$0xff] %v8131_v52  ;;  %v3390_v36 = vrot.slane %v3311_v21, 5  ;;  %v2987_v46 = vld [vmem:[#allocation3 + $0x28] sm:$0xf] }
 0x280   : > { %5941 = vmatprep.subr.bf16.mxu0 %v6788_v62  ;;  %6289 = vmatprep.subr.bf16.mxu1 %v6789_v5  ;;  %v3075_v62 = vshll.u32 %v2985_v60, 16  ;;  %v3388_v31 = vsel %vm7517_vm5, %v5425_v29, %v3387_v23  ;;  %v3389_v10 = vrot.slane %v3387_v23, 4  ;;  %v2988_v11 = vld [vmem:[#allocation3 + $0x2c] sm:$0x1]  ;;  %v3080_v50 = vshrl.u32 %v2986_v45, 16 }
 0x281   : > { %6295 = vmatprep.mubr.bf16.mxu1 %v8123_v48  ;;  %3777 = vmatprep.mubr.bf16.mxu0 %v8125_v6  ;;  %v3083_v39 = vshll.u32 %v2986_v45, 16  ;;  %v3089_v0 = vshll.u32 %v2987_v46, 16  ;;  %v3093_v55 = vshrl.u32 %v2987_v46, 16  ;;  %v3313_v22 = vld [vmem:[#allocation3 + $0x40] sm:$0xf]  ;;  %v3099_v58 = vshll.u32 %v2988_v11, 16 }
 0x282   : > { %v3077_v35 = vrot.slane %v3075_v62, 5  ;;  %v3391_v54 = vsel %vm7517_vm5, %v3389_v10, %v3390_v36  ;;  %v3082_v17 = vrot.slane %v3080_v50, 4  ;;  %v3314_v61 = vld [vmem:[#allocation3 + $0x44] sm:$0x1]  ;;  %v3394_v32 = vrot.slane %v3313_v22, 5 }
 0x283   : > { %5942 = vmatpush3.bf16.msra.mxu0 %v6790_v7  ;;  %6290 = vmatpush3.bf16.msra.mxu1 %v6789_v5  ;;  %v3308_v5 = vld [vmem:[#allocation3 + $0x2c] sm:$0x1]  ;;  %v3058_v7 = vrot.slane %v3056_v56, 4  ;;  %v8154_v4 = vcombine.low %v3388_v31, %v3391_v54  ;;  %v3085_v12 = vrot.slane %v3083_v39, 5  ;;  %v3091_v25 = vrot.slane %v3089_v0, 5 }
 0x284   : > { %5943 = vmatprep.subr.bf16.mxu0 %v6791_v53  ;;  %6291 = vmatprep.subr.bf16.mxu1 %v6792_v18  ;;  %v3061_v53 = vrot.slane %v3059_v3, 5  ;;  %v3383_v44 = vrot.slane %v3308_v5, 5  ;;  %v3095_v13 = vrot.slane %v3093_v55, 4  ;;  %v3397_v56 = vrot.slane %v3314_v61, 5  ;;  %v8160_v3 = vld [vmem:[#allocation3 + $0x24] sm:$0xff]  }
 0x285   : > { %3471 = vst [vmem:[#allocation2 + $0x70] sm:$0xff] %v8154_v4  ;;  %v3086_v60 = vor.u32 %v3085_v12, %v3082_v17  ;;  %2970 = vst [vmem:[#allocation2 + $0x48] sm:$0xff] %v8160_v3  ;;  %v2991_v21 = vld [vmem:[#allocation3 + $0x38] sm:$0x1]  ;;  %v3318_v31 = vld [vmem:[#allocation3 + $0x54] sm:$0xe] }
 0x286   : > { %v3062_v43 = vor.u32 %v3061_v53, %v3058_v7  ;;  %v3396_v53 = vrot.slane %v3394_v32, 4  ;;  %v3319_v10 = vld [vmem:[#allocation3 + $0x58] sm:$0xf]  ;;  %v3123_v11 = vshll.u32 %v2991_v21, 16  ;;  %v3320_v50 = vld [vmem:[#allocation3 + $0x5c] sm:$0x1] }
 0x287   : > { %5944 = vmatpush3.bf16.msra.mxu0 %v6793_v27  ;;  %6292 = vmatpush3.bf16.msra.mxu1 %v6792_v18  ;;  %v5424_v18 = vrot.slane %v3306_v26, 9  ;;  %v3380_v27 = vrot.slane %v3307_v38, 5  ;;  %v3315_v26 = vld [vmem:[#allocation3 + $0x48] sm:$0xe]  ;;  %v3096_v38 = vor.u32 %v3095_v13, %v3091_v25  ;;  %v3087_v5 = vrot.slane %v3086_v60, 4  ;;  %v4279_v28 = vld [vmem:[#allocation2 + $0x40] sm:$0xff] }
 0x288   : > { %5945 = vmatprep.subr.bf16.mxu0 %v6794_v34  ;;  %6293 = vmatprep.subr.bf16.mxu1 %v6795_v8  ;;  %v3067_v34 = vrot.slane %v3065_v33, 5  ;;  %v3063_v59 = vrot.slane %v3062_v43, 4  ;;  %v3316_v33 = vld [vmem:[#allocation3 + $0x4c] sm:$0xf]  ;;  %v5427_v62 = vrot.slane %v3315_v26, 9  ;;  %v5428_v54 = vrot.slane %v3318_v31, 9 }
 0x289   : > { %v3381_v47 = vsel %vm7517_vm5, %v5424_v18, %v3380_v27  ;;  %v3382_v30 = vrot.slane %v3380_v27, 4  ;;  %v3401_v18 = vrot.slane %v3316_v33, 5  ;;  %v6804_v27 = vld [vmem:[#allocation9 + $0xa0] sm:$0xff]   ;;  %v3408_v0 = vrot.slane %v3319_v10, 5  ;;  %v3321_v17 = vld [vmem:[#allocation3 + $0x60] sm:$0xe] }
 0x28a   : > { %v3411_v22 = vrot.slane %v3320_v50, 5  ;;  %v6807_v12 = vld [vmem:[#allocation9 + $0xb0] sm:$0xff]   ;;  %v5429_v60 = vrot.slane %v3321_v17, 9  ;;  %v3297_v21 = vld [vmem:[#allocation3] sm:$0xe] }
 0x28b   : > { %5946 = vmatpush3.bf16.msra.mxu0 %v6796_v2  ;;  %6294 = vmatpush3.bf16.msra.mxu1 %v6795_v8  ;;  %v3071_v8 = vrot.slane %v3069_v24, 4  ;;  %v3384_v16 = vsel %vm7517_vm5, %v3382_v30, %v3383_v44  ;;  %v3317_v24 = vld [vmem:[#allocation3 + $0x50] sm:$0x1]  ;;  %v3092_v44 = vsel %vm7379_vm2, %v3087_v5, %v3091_v25  ;;  %v3402_v43 = vsel %vm7517_vm5, %v5427_v62, %v3401_v18  ;;  %v6814_v17 = vld [vmem:[#allocation9 + $0x48] sm:$0xff]  }
 0x28c   : > { %6311 = vmatprep.subr.bf16.mxu1 %v6798_v63  ;;  %v8140_v37 = vcombine.low %v3381_v47, %v3384_v16  ;;  %v2989_v47 = vld [vmem:[#allocation3 + $0x30] sm:$0xf]  ;;  %v3409_v25 = vsel %vm7517_vm5, %v5428_v54, %v3408_v0  ;;  %v3410_v13 = vrot.slane %v3408_v0, 4 }
 0x28d   : > { %v3072_v2 = vor.u32 %v3071_v8, %v3067_v34  ;;  %v3404_v8 = vrot.slane %v3317_v24, 5  ;;  %v8172_v30 = vld [vmem:[#allocation3 + $0x30] sm:$0xff]   ;;  %v3104_v29 = vshrl.u32 %v2989_v47, 16  ;;  %v3107_v23 = vshll.u32 %v2989_v47, 16  ;;  %v6809_v24 = vld [vmem:[#allocation9] sm:$0xff]  }
 0x28e   : > { %3778 = vmatmul.mubr.bf16.vlgmr.msra.gmra.mrb[100].mxu0 %v6797_v14  ;;  %6296 = vmatmul.mubr.bf16.vlgmr.msra.gmra.mrb[60].mxu1 %v8131_v52  ;;  %v3068_v14 = vsel %vm7379_vm2, %v3063_v59, %v3067_v34  ;;  %3470 = vst [vmem:[#allocation2 + $0x58] sm:$0xff] %v8140_v37  ;;  %v3097_v34 = vrot.slane %v3096_v38, 4  ;;  %2971 = vst [vmem:[#allocation2 + $0x60] sm:$0xff] %v8172_v30  ;;  %v6808_v38 = vld [vmem:[#allocation9 + $0x40] sm:$0xff]   ;;  %v3412_v33 = vsel %vm7517_vm5, %v3410_v13, %v3411_v22 }
 0x28f   : > { %6312 = vmatpush3.bf16.msra.mxu1 %v6798_v63  ;;  %v3073_v41 = vrot.slane %v3072_v2, 4  ;;  %6299 = vmatprep.mubr.bf16.mxu1 %v8140_v37  ;;  %v3312_v63 = vld [vmem:[#allocation3 + $0x3c] sm:$0xe]  ;;  %v2990_v2 = vld [vmem:[#allocation3 + $0x34] sm:$0xf]  ;;  %v3109_v46 = vrot.slane %v3107_v23, 5  ;;  %v8196_v5 = vcombine.low %v3409_v25, %v3412_v33 }
 0x290   : > { %6313 = vmatprep.subr.bf16.mxu1 %v6799_v57  ;;  %v5426_v1 = vrot.slane %v3312_v63, 9  ;;  %v3113_v36 = vshll.u32 %v2990_v2, 16  ;;  %v3125_v63 = vrot.slane %v3123_v11, 5  ;;  %6011 = vmatprep.subr.bf16.mxu0 %v6808_v38  ;;  %v2995_v38 = vld [vmem:[#allocation3 + $0x48] sm:$0xf] }
 0x291   : > { %v3078_v15 = vsel %vm7379_vm2, %v3073_v41, %v3077_v35  ;;  %v3403_v35 = vrot.slane %v3401_v18, 4  ;;  %v3117_v41 = vshrl.u32 %v2990_v2, 16  ;;  %6012 = vmatpush3.bf16.msra.mxu0 %v6809_v24  ;;  %v2997_v33 = vld [vmem:[#allocation3 + $0x50] sm:$0x1]  ;;  %v3152_v24 = vshrl.u32 %v2995_v38, 16 }
 0x292   : > { %v8152_v42 = vcombine.low %v3068_v14, %v3078_v15  ;;  %v3395_v7 = vsel %vm7517_vm5, %v5426_v1, %v3394_v32  ;;  %v6805_v14 = vld [vmem:[#allocation9 + $0xa8] sm:$0xff]   ;;  %v3115_v39 = vrot.slane %v3113_v36, 5  ;;  %v3323_v1 = vld [vmem:[#allocation3 + $0x68] sm:$0x1]  ;;  %6013 = vmatprep.subr.bf16.mxu0 %v6814_v17 }
 0x293   : > { %6314 = vmatpush3.bf16.msra.mxu1 %v6799_v57  ;;  %v3101_v57 = vrot.slane %v3099_v58, 5  ;;  %v3405_v16 = vsel %vm7517_vm5, %v3403_v35, %v3404_v8  ;;  %v3119_v15 = vrot.slane %v3117_v41, 4  ;;  %v3322_v58 = vld [vmem:[#allocation3 + $0x64] sm:$0xf]  ;;  %v3418_v26 = vrot.slane %v3323_v1, 5  ;;  %v6813_v1 = vld [vmem:[#allocation9 + $0x180] sm:$0xff]  }
 0x294   : > { %6315 = vmatprep.subr.bf16.mxu1 %v6801_v9  ;;  %3289 = vst [vmem:[#allocation2 + $0x38] sm:$0xff] %v8152_v42  ;;  %3785 = vmatprep.mubr.bf16.mxu0 %v8152_v42  ;;  %v8184_v45 = vcombine.low %v3402_v43, %v3405_v16  ;;  %v2994_v43 = vld [vmem:[#allocation3 + $0x44] sm:$0x1]  ;;  %v3299_v41 = vld [vmem:[#allocation3 + $0x8] sm:$0x1] }
 0x295   : > { %v3102_v40 = vsel %vm7379_vm2, %v3097_v34, %v3101_v57  ;;  %v3120_v61 = vor.u32 %v3119_v15, %v3115_v39  ;;  %v3147_v16 = vshll.u32 %v2994_v43, 16  ;;  %v3298_v36 = vld [vmem:[#allocation3 + $0x4] sm:$0xf]  ;;  %v3362_v50 = vrot.slane %v3299_v41, 5  ;;  %v6812_v15 = vld [vmem:[#allocation9 + $0x1c0] sm:$0xff]   ;;  %v6822_v41 = vld [vmem:[#allocation9 + $0x190] sm:$0xff]  }
 0x296   : > { %6300 = vmatmul.mubr.bf16.gmra.mrb[64].mxu1 %v8154_v4  ;;  %3786 = vmatmul.mubr.bf16.gmra.mrb[104].mxu0 %v8117_v49  ;;  %v8178_v59 = vcombine.low %v3092_v44, %v3102_v40  ;;  %v2992_v44 = vld [vmem:[#allocation3 + $0x3c] sm:$0xf]  ;;  %v3359_v11 = vrot.slane %v3298_v36, 5 }
 0x297   : > { %6316 = vmatpush3.bf16.msra.mxu1 %v6801_v9  ;;  %v3398_v9 = vsel %vm7517_vm5, %v3396_v53, %v3397_v56  ;;  %v3415_v56 = vrot.slane %v3322_v58, 5  ;;  %v3121_v57 = vrot.slane %v3120_v61, 4  ;;  %v3128_v47 = vshrl.u32 %v2992_v44, 16 }
 0x298   : > { %6317 = vmatprep.subr.bf16.mxu1 %v6802_v19  ;;  %v8176_v20 = vcombine.low %v3395_v7, %v3398_v9  ;;  %3290 = vst [vmem:[#allocation2 + $0x50] sm:$0xff] %v8178_v59  ;;  %3793 = vmatprep.mubr.bf16.mxu0 %v8178_v59  ;;  %v2993_v9 = vld [vmem:[#allocation3 + $0x40] sm:$0xf]  ;;  %v3131_v40 = vshll.u32 %v2992_v44, 16  ;;  %v3149_v0 = vrot.slane %v3147_v16, 5 }
 0x299   : > { %v3416_v7 = vsel %vm7517_vm5, %v5429_v60, %v3415_v56  ;;  %v3417_v53 = vrot.slane %v3415_v56, 4  ;;  %v3126_v18 = vsel %vm7379_vm2, %v3121_v57, %v3125_v63  ;;  %v3137_v2 = vshll.u32 %v2993_v9, 16  ;;  %v2996_v57 = vld [vmem:[#allocation3 + $0x4c] sm:$0xf] }
 0x29a   : > { %6303 = vmatprep.mubr.bf16.mxu1 %v8176_v20  ;;  %v3141_v23 = vshrl.u32 %v2993_v9, 16  ;;  %v3130_v31 = vrot.slane %v3128_v47, 4  ;;  %v3133_v10 = vrot.slane %v3131_v40, 5  ;;  %v3361_v63 = vrot.slane %v3359_v11, 4 }
 0x29b   : > { %6318 = vmatpush3.bf16.msra.mxu1 %v6802_v19  ;;  %v3106_v19 = vrot.slane %v3104_v29, 4  ;;  %v3419_v8 = vsel %vm7517_vm5, %v3417_v53, %v3418_v26  ;;  %v8209_v29 = vld [vmem:[#allocation3 + $0x3c] sm:$0xff]   ;;  %v3165_v53 = vshrl.u32 %v2996_v57, 16 }
 0x29c   : > { %6319 = vmatprep.subr.bf16.mxu1 %v6804_v27  ;;  %v8207_v35 = vcombine.low %v3416_v7, %v3419_v8  ;;  %2972 = vst [vmem:[#allocation2 + $0x78] sm:$0xff] %v8209_v29  ;;  %v3363_v25 = vsel %vm7517_vm5, %v3361_v63, %v3362_v50  ;;  %v6817_v26 = vld [vmem:[#allocation9 + $0x188] sm:$0xff]   ;;  %v3161_v7 = vshll.u32 %v2996_v57, 16  ;;  %v3154_v8 = vrot.slane %v3152_v24, 4  ;;  %v2998_v50 = vld [vmem:[#allocation3 + $0x54] sm:$0xf] }
 0x29d   : > { %v3110_v55 = vor.u32 %v3109_v46, %v3106_v19  ;;  %v5421_v19 = vrot.slane %v3297_v21, 9  ;;  %v3143_v46 = vrot.slane %v3141_v23, 4  ;;  %v3167_v43 = vrot.slane %v3165_v53, 4  ;;  %v6820_v21 = vld [vmem:[#allocation9 + $0x1d0] sm:$0xff]   ;;  %v6831_v57 = vld [vmem:[#allocation9 + $0x1a0] sm:$0xff]  }
 0x29e   : > { %3794 = vmatmul.mubr.bf16.gmra.mrb[108].mxu0 %v8160_v3  ;;  %6304 = vmatmul.mubr.bf16.gmra.mrb[68].mxu1 %v8184_v45  ;;  %v3163_v9 = vrot.slane %v3161_v7, 5  ;;  %v6821_v23 = vld [vmem:[#allocation9 + $0x10] sm:$0xff]   ;;  %v6833_v7 = vld [vmem:[#allocation9 + $0x1e8] sm:$0xff]  }
 0x29f   : > { %6320 = vmatpush3.bf16.msra.mxu1 %v6804_v27  ;;  %v3111_v32 = vrot.slane %v3110_v55, 4  ;;  %v6810_v27 = vld [vmem:[#allocation9 + $0xb8] sm:$0xff]   ;;  %6307 = vmatprep.mubr.bf16.mxu1 %v8196_v5  ;;  %v3360_v55 = vsel %vm7517_vm5, %v5421_v19, %v3359_v11 }
 0x2a0   : > { %6321 = vmatprep.subr.bf16.mxu1 %v6805_v14  ;;  %v5431_v58 = vcombine.low %v3360_v55, %v3363_v25  ;;  %v3168_v40 = vor.u32 %v3167_v43, %v3163_v9  ;;  %v6826_v11 = vld [vmem:[#allocation9 + $0x198] sm:$0xff]   ;;  %v3003_v43 = vld [vmem:[#allocation3 + $0x68] sm:$0x1] }
 0x2a1   : > { %v3116_v62 = vsel %vm7379_vm2, %v3111_v32, %v3115_v39  ;;  %v3134_v39 = vor.u32 %v3133_v10, %v3130_v31  ;;  %v6816_v32 = vld [vmem:[#allocation9 + $0x1c8] sm:$0xff]   ;;  %v6823_v31 = vld [vmem:[#allocation9 + $0x58] sm:$0xff]  }
 0x2a2   : > { %v8202_v34 = vcombine.low %v3116_v62, %v3126_v18  ;;  %v3155_v62 = vshll.u32 %v2995_v38, 16  ;;  %v3171_v18 = vshll.u32 %v2997_v33, 16  ;;  %v3169_v36 = vrot.slane %v3168_v40, 4  ;;  %v6832_v33 = vld [vmem:[#allocation9 + $0x68] sm:$0xff]  }
 0x2a3   : > { %6322 = vmatpush3.bf16.msra.mxu1 %v6805_v14  ;;  %v3139_v14 = vrot.slane %v3137_v2, 5  ;;  %v3135_v22 = vrot.slane %v3134_v39, 4  ;;  %v2999_v39 = vld [vmem:[#allocation3 + $0x58] sm:$0xf] }
 0x2a4   : > { %6323 = vmatprep.subr.bf16.mxu1 %v6807_v12  ;;  %3291 = vst [vmem:[#allocation2 + $0x68] sm:$0xff] %v8202_v34  ;;  %3801 = vmatprep.mubr.bf16.mxu0 %v8202_v34  ;;  %v3157_v44 = vrot.slane %v3155_v62, 5  ;;  %v3173_v2 = vrot.slane %v3171_v18, 5  ;;  %v3185_v55 = vshll.u32 %v2999_v39, 16  ;;  %v6834_v18 = vld [vmem:[#allocation9 + $0x28] sm:$0xff]  }
 0x2a5   : > { %v3144_v54 = vor.u32 %v3143_v46, %v3139_v14  ;;  %v3140_v13 = vsel %vm7379_vm2, %v3135_v22, %v3139_v14  ;;  %v6824_v14 = vld [vmem:[#allocation9 + $0x1d8] sm:$0xff]  }
 0x2a6   : > { %3802 = vmatmul.mubr.bf16.gmra.mrb[112].mxu0 %v8172_v30  ;;  %6308 = vmatmul.mubr.bf16.gmra.mrb[72].mxu1 %v8207_v35  ;;  %v3158_v47 = vor.u32 %v3157_v44, %v3154_v8  ;;  %v6825_v46 = vld [vmem:[#allocation9 + $0x18] sm:$0xff]   ;;  %v6835_v8 = vld [vmem:[#allocation9 + $0x1a8] sm:$0xff]  }
 0x2a7   : > { %6324 = vmatpush3.bf16.msra.mxu1 %v6807_v12  ;;  %v3145_v61 = vrot.slane %v3144_v54, 4  ;;  %v6815_v12 = vld [vmem:[#allocation9 + $0x8] sm:$0xff]   ;;  %6327 = vmatprep.mubr.bf16.mxu1 %v5431_v58  ;;  %v3176_v54 = vshrl.u32 %v2998_v50, 16  ;;  %v8243_v22 = vld [vmem:[#allocation3 + $0x54] sm:$0xff]  }
 0x2a8   : > { %6325 = vmatprep.subr.bf16.mxu1 %v6810_v27  ;;  %6014 = vmatpush3.bf16.msra.mxu0 %v6815_v12  ;;  %v3159_v16 = vrot.slane %v3158_v47, 4  ;;  %v6828_v12 = vld [vmem:[#allocation9 + $0x60] sm:$0xff]   ;;  %v3001_v44 = vld [vmem:[#allocation3 + $0x60] sm:$0xf] }
 0x2a9   : > { %v3150_v60 = vsel %vm7379_vm2, %v3145_v61, %v3149_v0  ;;  %v3179_v0 = vshll.u32 %v2998_v50, 16  ;;  %v3178_v17 = vrot.slane %v3176_v54, 4  ;;  %v3187_v61 = vrot.slane %v3185_v55, 5  ;;  %v6839_v50 = vld [vmem:[#allocation9 + $0x30] sm:$0xff]  }
 0x2aa   : > { %v8224_v56 = vcombine.low %v3140_v13, %v3150_v60  ;;  %v3164_v10 = vsel %vm7379_vm2, %v3159_v16, %v3163_v9  ;;  %v6829_v60 = vld [vmem:[#allocation9 + $0x1e0] sm:$0xff]   ;;  %v3002_v9 = vld [vmem:[#allocation3 + $0x64] sm:$0xf]  ;;  %v3203_v47 = vshll.u32 %v3001_v44, 16 }
 0x2ab   : > { %6326 = vmatpush3.bf16.msra.mxu1 %v6810_v27  ;;  %v8228_v27 = vld [vmem:[#allocation3 + $0x48] sm:$0xff]   ;;  %v3209_v40 = vshll.u32 %v3002_v9, 16 }
 0x2ac   : > { %6091 = vmatprep.subr.bf16.mxu1 %v6812_v15  ;;  %3809 = vmatprep.mubr.bf16.mxu0 %v8224_v56  ;;  %2973 = vst [vmem:[#allocation2 + $0x90] sm:$0xff] %v8228_v27  ;;  %v3000_v15 = vld [vmem:[#allocation3 + $0x5c] sm:$0x1] }
 0x2ad   : > { %v3195_v63 = vshll.u32 %v3000_v15, 16  ;;  %v6840_v15 = vld [vmem:[#allocation9 + $0x1b0] sm:$0xff]  }
 0x2ae   : > { %6328 = vmatmul.mubr.bf16.vlgmr.msra.gmra.mrb[60].mxu1 %v8123_v48  ;;  %3810 = vmatmul.mubr.bf16.gmra.mrb[116].mxu0 %v8209_v29  ;;  %v6819_v48 = vld [vmem:[#allocation9 + $0x50] sm:$0xff]  }
 0x2af   : > { %6092 = vmatpush3.bf16.msra.mxu1 %v6813_v1  ;;  %6331 = vmatprep.mubr.bf16.mxu1 %v8131_v52  ;;  %v3174_v52 = vsel %vm7379_vm2, %v3169_v36, %v3173_v2  ;;  %v3197_v1 = vrot.slane %v3195_v63, 5  ;;  %v3213_v2 = vshrl.u32 %v3002_v9, 16  ;;  %v3205_v36 = vrot.slane %v3203_v47, 5  ;;  %v6847_v9 = vld [vmem:[#allocation9 + $0x208] sm:$0xff]  }
 0x2b0   : > { %6093 = vmatprep.subr.bf16.mxu1 %v6816_v32  ;;  %6015 = vmatprep.subr.bf16.mxu0 %v6819_v48  ;;  %v8238_v19 = vcombine.low %v3164_v10, %v3174_v52  ;;  %v6830_v32 = vld [vmem:[#allocation9 + $0x20] sm:$0xff]   ;;  %v3200_v48 = vshrl.u32 %v3001_v44, 16  ;;  %v6837_v10 = vld [vmem:[#allocation9 + $0x70] sm:$0xff]  }
 0x2b1   : > { %6016 = vmatpush3.bf16.msra.mxu0 %v6821_v23  ;;  %v8255_v23 = vld [vmem:[#allocation3 + $0x60] sm:$0xff]  }
 0x2b2   : > { %6017 = vmatprep.subr.bf16.mxu0 %v6823_v31  ;;  %3817 = vmatprep.mubr.bf16.mxu0 %v8238_v19  ;;  %v3202_v16 = vrot.slane %v3200_v48, 4  ;;  %v3215_v31 = vrot.slane %v3213_v2, 4  ;;  %v6848_v2 = vld [vmem:[#allocation9 + $0x210] sm:$0xff]  }
 0x2b3   : > { %6094 = vmatpush3.bf16.msra.mxu1 %v6817_v26 }
 0x2b4   : > { %6095 = vmatprep.subr.bf16.mxu1 %v6820_v21  ;;  %v3219_v21 = vshll.u32 %v3003_v43, 16  ;;  %v3206_v52 = vor.u32 %v3205_v36, %v3202_v16  ;;  %v3004_v16 = vld [vmem:[#allocation3 + $0x6c] sm:$0xf]  ;;  %v3005_v36 = vld [vmem:[#allocation3 + $0x70] sm:$0xf] }
 0x2b5   : > { %6018 = vmatpush3.bf16.msra.mxu0 %v6825_v46 }
 0x2b6   : > { %6332 = vmatmul.mubr.bf16.gmra.mrb[64].mxu1 %v8140_v37  ;;  %v3189_v37 = vshrl.u32 %v2999_v39, 16  ;;  %3818 = vmatmul.mubr.bf16.gmra.mrb[120].mxu0 %v8228_v27  ;;  %v3207_v39 = vrot.slane %v3206_v52, 4  ;;  %v3233_v52 = vshll.u32 %v3005_v36, 16 }
 0x2b7   : > { %6096 = vmatpush3.bf16.msra.mxu1 %v6822_v41  ;;  %6335 = vmatprep.mubr.bf16.mxu1 %v8154_v4  ;;  %v3181_v4 = vrot.slane %v3179_v0, 5  ;;  %v3211_v41 = vrot.slane %v3209_v40, 5  ;;  %v6841_v0 = vld [vmem:[#allocation9 + $0x78] sm:$0xff]  }
 0x2b8   : > { %6097 = vmatprep.subr.bf16.mxu1 %v6824_v14  ;;  %v3191_v25 = vrot.slane %v3189_v37, 4  ;;  %6019 = vmatprep.subr.bf16.mxu0 %v6828_v12  ;;  %v6838_v14 = vld [vmem:[#allocation9 + $0x1f0] sm:$0xff]   ;;  %v6842_v37 = vld [vmem:[#allocation9 + $0x1f8] sm:$0xff]   ;;  %v2978_v12 = vld [vmem:[#allocation3 + $0x4] sm:$0xf] }
 0x2b9   : > { %v3182_v13 = vor.u32 %v3181_v4, %v3178_v17  ;;  %6020 = vmatpush3.bf16.msra.mxu0 %v6830_v32  ;;  %v3216_v46 = vor.u32 %v3215_v31, %v3211_v41  ;;  %v3212_v55 = vsel %vm7379_vm2, %v3207_v39, %v3211_v41  ;;  %v6843_v17 = vld [vmem:[#allocation9 + $0x38] sm:$0xff]   ;;  %v3021_v32 = vshrl.u32 %v2978_v12, 16 }
 0x2ba   : > { %v3192_v58 = vor.u32 %v3191_v25, %v3187_v61  ;;  %6021 = vmatprep.subr.bf16.mxu0 %v6832_v33  ;;  %v2977_v25 = vld [vmem:[#allocation3] sm:$0xf]  ;;  %v3006_v41 = vld [vmem:[#allocation3 + $0x74] sm:$0x1]  ;;  %v3224_v31 = vshrl.u32 %v3004_v16, 16 }
 0x2bb   : > { %6098 = vmatpush3.bf16.msra.mxu1 %v6826_v11  ;;  %v3183_v26 = vrot.slane %v3182_v13, 4  ;;  %v3221_v11 = vrot.slane %v3219_v21, 5  ;;  %v3217_v54 = vrot.slane %v3216_v46, 4  ;;  %v2979_v13 = vld [vmem:[#allocation3 + $0x8] sm:$0x1]  ;;  %v6849_v21 = vld [vmem:[#allocation9 + $0x218] sm:$0xff]  }
 0x2bc   : > { %v3193_v38 = vrot.slane %v3192_v58, 4  ;;  %6099 = vmatprep.subr.bf16.mxu1 %v6829_v60  ;;  %v3008_v58 = vshrl.u32 %v2977_v25, 16  ;;  %v3017_v60 = vshll.u32 %v2978_v12, 16  ;;  %v3243_v46 = vshll.u32 %v3006_v41, 16 }
 0x2bd   : > { %v3188_v24 = vsel %vm7379_vm2, %v3183_v26, %v3187_v61  ;;  %6022 = vmatpush3.bf16.msra.mxu0 %v6834_v18  ;;  %v3222_v63 = vsel %vm7379_vm2, %v3217_v54, %v3221_v11  ;;  %v6844_v61 = vld [vmem:[#allocation9 + $0x1b8] sm:$0xff]   ;;  %v3027_v26 = vshll.u32 %v2979_v13, 16 }
 0x2be   : > { %6336 = vmatmul.mubr.bf16.gmra.mrb[68].mxu1 %v8176_v20  ;;  %v3198_v62 = vsel %vm7379_vm2, %v3193_v38, %v3197_v1  ;;  %6023 = vmatprep.subr.bf16.mxu0 %v6837_v10  ;;  %v8263_v4 = vcombine.low %v3212_v55, %v3222_v63  ;;  %v3011_v1 = vshll.u32 %v2977_v25, 16  ;;  %v6845_v38 = vld [vmem:[#allocation3] sm:$0xff]   ;;  %v3227_v10 = vshll.u32 %v3004_v16, 16  ;;  %v8274_v11 = vld [vmem:[#allocation3 + $0x6c] sm:$0xff]   ;;  %v3326_v25 = vld [vmem:[#allocation3 + $0x74] sm:$0x1] }
 0x2bf   : > { %6339 = vmatprep.mubr.bf16.mxu1 %v8184_v45  ;;  %6100 = vmatpush3.bf16.msra.mxu1 %v6831_v57  ;;  %v8251_v53 = vcombine.low %v3188_v24, %v3198_v62  ;;  %v3010_v57 = vrot.slane %v3008_v58, 4  ;;  %v3019_v24 = vrot.slane %v3017_v60, 5  ;;  %v3023_v62 = vrot.slane %v3021_v32, 4  ;;  %v3324_v63 = vld [vmem:[#allocation3 + $0x6c] sm:$0xe] }
 0x2c0   : > { %6101 = vmatprep.subr.bf16.mxu1 %v6833_v7  ;;  %v3013_v33 = vrot.slane %v3011_v1, 5  ;;  %v6846_v7 = vld [vmem:[#allocation9 + $0x200] sm:$0xff]   ;;  %v3029_v44 = vrot.slane %v3027_v26, 5  ;;  %v3229_v39 = vrot.slane %v3227_v10, 5  ;;  %v5430_v12 = vrot.slane %v3324_v63, 9 }
 0x2c1   : > { %3825 = vmatprep.mubr.bf16.mxu0 %v8251_v53  ;;  %6024 = vmatpush3.bf16.msra.mxu0 %v6839_v50  ;;  %v3226_v50 = vrot.slane %v3224_v31, 4  ;;  %v3425_v60 = vrot.slane %v3326_v25, 5 }
 0x2c2   : > { %3826 = vmatmul.mubr.bf16.gmra.mrb[124].mxu0 %v8243_v22  ;;  %6025 = vmatprep.subr.bf16.mxu0 %v6841_v0  ;;  %v3014_v18 = vor.u32 %v3013_v33, %v3010_v57  ;;  %v6851_v57 = vld [vmem:[#allocation9 + $0x228] sm:$0xff]  }
 0x2c3   : > { %6102 = vmatpush3.bf16.msra.mxu1 %v6835_v8  ;;  %3833 = vmatprep.mubr.bf16.mxu0 %v8263_v4  ;;  %v3024_v8 = vor.u32 %v3023_v62, %v3019_v24  ;;  %v3230_v0 = vor.u32 %v3229_v39, %v3226_v50 }
 0x2c4   : > { %6103 = vmatprep.subr.bf16.mxu1 %v6838_v14  ;;  %v3015_v43 = vrot.slane %v3014_v18, 4  ;;  %v3237_v14 = vshrl.u32 %v3005_v36, 16  ;;  %v6852_v18 = vld [vmem:[#allocation9 + $0x230] sm:$0xff]  }
 0x2c5   : > { %6026 = vmatpush3.bf16.msra.mxu0 %v6843_v17  ;;  %v3025_v48 = vrot.slane %v3024_v8, 4  ;;  %v6850_v17 = vld [vmem:[#allocation9 + $0x220] sm:$0xff]   ;;  %v3231_v13 = vrot.slane %v3230_v0, 4  ;;  %v6854_v8 = vld [vmem:[#allocation9 + $0x238] sm:$0xff]  }
 0x2c6   : > { %6340 = vmatmul.mubr.bf16.gmra.mrb[72].mxu1 %v8196_v5  ;;  %v3020_v47 = vsel %vm7379_vm2, %v3015_v43, %v3019_v24  ;;  %v3239_v54 = vrot.slane %v3237_v14, 4  ;;  %v6855_v24 = vld [vmem:[#allocation2 + $0x18] sm:$0xff] }
 0x2c7   : > { %4526 = vmatprep.mubr.bf16.mxu1 %v8152_v42  ;;  %6104 = vmatpush3.bf16.msra.mxu1 %v6840_v15  ;;  %v3030_v40 = vsel %vm7379_vm2, %v3025_v48, %v3029_v44  ;;  %v3235_v15 = vrot.slane %v3233_v52, 5  ;;  %v6856_v44 = vld [vmem:[#allocation2 + $0x30] sm:$0xff] }
 0x2c8   : > { %6105 = vmatprep.subr.bf16.mxu1 %v6842_v37  ;;  %v3245_v37 = vrot.slane %v3243_v46, 5 }
 0x2c9   : > { %v3240_v55 = vor.u32 %v3239_v54, %v3235_v15  ;;  %v3236_v32 = vsel %vm7379_vm2, %v3231_v13, %v3235_v15 }
 0x2ca   : > { %3834 = vmatmul.mubr.bf16.gmra.mrb[128].mxu0 %v8255_v23 }
 0x2cb   : > { %6106 = vmatpush3.bf16.msra.mxu1 %v6844_v61  ;;  %v3325_v61 = vld [vmem:[#allocation3 + $0x70] sm:$0xf]  ;;  %v3241_v58 = vrot.slane %v3240_v55, 4 }
 0x2cc   : > { %6343 = vmatprep.subr.bf16.mxu1 %v6846_v7  ;;  %v3422_v1 = vrot.slane %v3325_v61, 5 }
 0x2ce   : > { %4527 = vmatmul.mubr.bf16.vlgmr.msra.gmra.mrb[76].mxu1 %v8117_v49  ;;  %v5411_v49 = vcombine.low %v3020_v47, %v3030_v40  ;;  %v3423_v26 = vsel %vm7517_vm5, %v5430_v12, %v3422_v1 }
 0x2cf   : > { %4534 = vmatprep.mubr.bf16.mxu1 %v8178_v59  ;;  %6344 = vmatpush3.bf16.msra.mxu1 %v6846_v7 }
 0x2d0   : > { %6345 = vmatprep.subr.bf16.mxu1 %v6847_v9  ;;  %4115 = vmatprep.mubr.bf16.mxu0 %v5411_v49 }
 0x2d2   : > { %4116 = vmatmul.mubr.bf16.vlgmr.msra.gmra.mrb[132].mxu0 %v6845_v38  ;;  %v3424_v38 = vrot.slane %v3422_v1, 4 }
 0x2d3   : > { %6346 = vmatpush3.bf16.msra.mxu1 %v6847_v9  ;;  %4123 = vmatprep.mubr.bf16.mxu0 %v8125_v6  ;;  %v3246_v6 = vsel %vm7379_vm2, %v3241_v58, %v3245_v37 }
 0x2d4   : > { %6347 = vmatprep.subr.bf16.mxu1 %v6848_v2  ;;  %v5420_v33 = vcombine.low %v3236_v32, %v3246_v6  ;;  %v3426_v62 = vsel %vm7517_vm5, %v3424_v38, %v3425_v60 }
 0x2d5   : > { %v5440_v7 = vcombine.low %v3423_v26, %v3426_v62 }
 0x2d6   : > { %4535 = vmatmul.mubr.bf16.gmra.mrb[80].mxu1 %v8160_v3 }
 0x2d7   : > { %4542 = vmatprep.mubr.bf16.mxu1 %v8202_v34  ;;  %6348 = vmatpush3.bf16.msra.mxu1 %v6848_v2 }
 0x2d8   : > { %6349 = vmatprep.subr.bf16.mxu1 %v6849_v21 }
 0x2da   : > { %4124 = vmatmul.mubr.bf16.gmra.mrb[136].mxu0 %v6855_v24 }
 0x2db   : > { %6350 = vmatpush3.bf16.msra.mxu1 %v6849_v21  ;;  %4131 = vmatprep.mubr.bf16.mxu0 %v8152_v42  ;;  %v4282_v42 = vld [vmem:[#allocation2 + $0x58] sm:$0xff] }
 0x2dc   : > { %6351 = vmatprep.subr.bf16.mxu1 %v6850_v17 }
 0x2de   : > { %4543 = vmatmul.mubr.bf16.gmra.mrb[84].mxu1 %v8172_v30 }
 0x2df   : > { %4550 = vmatprep.mubr.bf16.mxu1 %v8224_v56  ;;  %6352 = vmatpush3.bf16.msra.mxu1 %v6850_v17 }
 0x2e0   : > { %6353 = vmatprep.subr.bf16.mxu1 %v6851_v57 }
 0x2e2   : > { %4132 = vmatmul.mubr.bf16.gmra.mrb[140].mxu0 %v6856_v44 }
 0x2e3   : > { %6354 = vmatpush3.bf16.msra.mxu1 %v6851_v57  ;;  %4139 = vmatprep.mubr.bf16.mxu0 %v8178_v59 }
 0x2e4   : > { %6355 = vmatprep.subr.bf16.mxu1 %v6852_v18 }
 0x2e6   : > { %4551 = vmatmul.mubr.bf16.gmra.mrb[88].mxu1 %v8209_v29 }
 0x2e7   : > { %4558 = vmatprep.mubr.bf16.mxu1 %v8238_v19  ;;  %6356 = vmatpush3.bf16.msra.mxu1 %v6852_v18 }
 0x2e8   : > { %6357 = vmatprep.subr.bf16.mxu1 %v6854_v8 }
 0x2ea   : > { %4140 = vmatmul.mubr.bf16.gmra.mrb[144].mxu0 %v8160_v3  ;;  %v4285_v3 = vld [vmem:[#allocation2 + $0x70] sm:$0xff] }
 0x2eb   : > { %6358 = vmatpush3.bf16.msra.mxu1 %v6854_v8  ;;  %4147 = vmatprep.mubr.bf16.mxu0 %v8202_v34 }
 0x2ee   : > { %4559 = vmatmul.mubr.bf16.gmra.mrb[92].mxu1 %v8228_v27 }
 0x2ef   : > { %4566 = vmatprep.mubr.bf16.mxu1 %v8251_v53 }
 0x2f2   : > { %4148 = vmatmul.mubr.bf16.gmra.mrb[148].mxu0 %v8172_v30 }
 0x2f3   : > { %4155 = vmatprep.mubr.bf16.mxu0 %v8224_v56 }
 0x2f6   : > { %4567 = vmatmul.mubr.bf16.gmra.mrb[96].mxu1 %v8243_v22 }
 0x2f7   : > { %4574 = vmatprep.mubr.bf16.mxu1 %v8263_v4 }
 0x2fa   : > { %4156 = vmatmul.mubr.bf16.gmra.mrb[152].mxu0 %v8209_v29 }
 0x2fb   : > { %4163 = vmatprep.mubr.bf16.mxu0 %v8238_v19 }
 0x2fe   : > { %4575 = vmatmul.mubr.bf16.gmra.mrb[100].mxu1 %v8255_v23 }
 0x2ff   : > { %4582 = vmatprep.mubr.bf16.mxu1 %v5420_v33 }
 0x302   : > { %4164 = vmatmul.mubr.bf16.gmra.mrb[156].mxu0 %v8228_v27 }
 0x303   : > { %4171 = vmatprep.mubr.bf16.mxu0 %v8251_v53 }
 0x306   : > { %4583 = vmatmul.mubr.bf16.gmra.mrb[104].mxu1 %v8274_v11 }
 0x307   : > { %6359 = vmatprep.mubr.bf16.mxu1 %v4279_v28 }
 0x30a   : > { %4172 = vmatmul.mubr.bf16.gmra.mrb[160].mxu0 %v8243_v22 }
 0x30e   : > { %6360 = vmatmul.mubr.bf16.vlgmr.msra.gmra.mrb[60].mxu1 %v4282_v42 }
 0x30f   : > { %6363 = vmatprep.mubr.bf16.mxu1 %v4285_v3 }
 0x316   : > { %6364 = vmatmul.mubr.bf16.gmra.mrb[64].mxu1 %v8176_v20 }
 0x317   : > { %6367 = vmatprep.mubr.bf16.mxu1 %v8184_v45 }
 0x31e   : > { %6368 = vmatmul.mubr.bf16.gmra.mrb[68].mxu1 %v8196_v5 }
 0x31f   : > { %6371 = vmatprep.mubr.bf16.mxu1 %v8207_v35 }
 0x326   : > { %6372 = vmatmul.mubr.bf16.gmra.mrb[72].mxu1 %v5440_v7 }
 0x361   : > { %v5947_v30 = vpop.f32.mrb[100].mxu0 }
 0x362   : > { %v5948_v59 = vpop.f32.mrb[101].mxu0 }
 0x363   : > { %v8311_v34 = vadd.f32 %v5948_v59, %v5947_v30  ;;  %v5950_v29 = vpop.f32.mrb[102].mxu0 }
 0x364   : > { %v5951_v56 = vpop.f32.mrb[103].mxu0 }
 0x365   : > { %v5952_v27 = vadd.f32 %v5951_v56, %v5950_v29 }
 0x369   : > { %v5953_v19 = vpop.f32.mrb[104].mxu0 }
 0x36a   : > { %v5954_v53 = vpop.f32.mrb[105].mxu0 }
 0x36b   : > { %v8313_v22 = vadd.f32 %v5954_v53, %v5953_v19  ;;  %v5956_v23 = vpop.f32.mrb[106].mxu0 }
 0x36c   : > { %v5957_v20 = vpop.f32.mrb[107].mxu0 }
 0x36d   : > { %v8315_v4 = vadd.f32 %v5957_v20, %v5956_v23  ;;  %v5518_v20 = vld [vmem:[%s7367_s16 + $0x24] sm:$0xf] }
 0x371   : > { %v5959_v45 = vpop.f32.mrb[108].mxu0 }
 0x372   : > { %v5960_v5 = vpop.f32.mrb[109].mxu0 }
 0x373   : > { %v8317_v9 = vadd.f32 %v5960_v5, %v5959_v45  ;;  %v5962_v35 = vpop.f32.mrb[110].mxu0 }
 0x374   : > { %v5963_v43 = vpop.f32.mrb[111].mxu0 }
 0x375   : > { %v8319_v48 = vadd.f32 %v5963_v43, %v5962_v35 }
 0x379   : > { %v5965_v47 = vpop.f32.mrb[112].mxu0 }
 0x37a   : > { %v5966_v40 = vpop.f32.mrb[113].mxu0 }
 0x37b   : > { %v8321_v2 = vadd.f32 %v5966_v40, %v5965_v47  ;;  %v5968_v49 = vpop.f32.mrb[114].mxu0 }
 0x37c   : > { %v5969_v21 = vpop.f32.mrb[115].mxu0 }
 0x37d   : > { %v8323_v16 = vadd.f32 %v5969_v21, %v5968_v49  ;;  %v5515_v49 = vld [vmem:[%s7367_s16 + $0x18] sm:$0xf] }
 0x381   : > { %v5971_v36 = vpop.f32.mrb[116].mxu0 }
 0x382   : > { %v5972_v41 = vpop.f32.mrb[117].mxu0 }
 0x383   : > { %v8325_v31 = vadd.f32 %v5972_v41, %v5971_v36  ;;  %v5974_v10 = vpop.f32.mrb[118].mxu0 }
 0x384   : > { %v5975_v52 = vpop.f32.mrb[119].mxu0 }
 0x385   : > { %v8327_v14 = vadd.f32 %v5975_v52, %v5974_v10  ;;  %v4757_v10 = vshrl.u32 %v5518_v20, 16 }
 0x389   : > { %v5977_v46 = vpop.f32.mrb[120].mxu0 }
 0x38a   : > { %v5978_v11 = vpop.f32.mrb[121].mxu0 }
 0x38b   : > { %v8329_v50 = vadd.f32 %v5978_v11, %v5977_v46  ;;  %v5980_v39 = vpop.f32.mrb[122].mxu0 }
 0x38c   : > { %v5981_v15 = vpop.f32.mrb[123].mxu0 }
 0x38d   : > { %v8331_v54 = vadd.f32 %v5981_v15, %v5980_v39  ;;  %v4733_v39 = vshrl.u32 %v5515_v49, 16  ;;  %v4736_v15 = vshll.u32 %v5515_v49, 16 }
 0x395   : > { %v5983_v0 = vpop.f32.mrb[124].mxu0 }
 0x396   : > { %v5984_v55 = vpop.f32.mrb[125].mxu0 }
 0x397   : > { %v8333_v37 = vadd.f32 %v5984_v55, %v5983_v0  ;;  %v5986_v63 = vpop.f32.mrb[126].mxu0 }
 0x398   : > { %v5987_v17 = vpop.f32.mrb[127].mxu0 }
 0x399   : > { %v8335_v61 = vadd.f32 %v5987_v17, %v5986_v63  ;;  %v5519_v63 = vld [vmem:[%s7367_s16 + $0x28] sm:$0xf]  ;;  %v4759_v17 = vrot.slane %v4757_v10, 4  ;;  %v5517_v10 = vld [vmem:[%s7367_s16 + $0x20] sm:$0x1] }
 0x39d   : > { %v5989_v25 = vpop.f32.mrb[128].mxu0 }
 0x39e   : > { %v5990_v12 = vpop.f32.mrb[129].mxu0 }
 0x39f   : > { %v8337_v13 = vadd.f32 %v5990_v12, %v5989_v25  ;;  %v5992_v58 = vpop.f32.mrb[130].mxu0 }
 0x3a0   : > { %v5993_v60 = vpop.f32.mrb[131].mxu0 }
 0x3a1   : > { %v6107_v1 = vpop.f32.mrb[76].mxu1  ;;  %v8339_v6 = vadd.f32 %v5993_v60, %v5992_v58  ;;  %v5516_v60 = vld [vmem:[%s7367_s16 + $0x1c] sm:$0xf] }
 0x3a2   : > { %v6108_v32 = vpop.f32.mrb[77].mxu1 }
 0x3a3   : > { %v6109_v26 = vadd.f32 %v6108_v32, %v6107_v1  ;;  %v6110_v38 = vpop.f32.mrb[78].mxu1  ;;  %v4735_v32 = vrot.slane %v4733_v39, 4 }
 0x3a4   : > { %v6111_v57 = vpop.f32.mrb[79].mxu1 }
 0x3a5   : > { %v6112_v33 = vadd.f32 %v6111_v57, %v6110_v38  ;;  %v6027_v62 = vpop.f32.mrb[132].mxu0 }
 0x3a6   : > { %v6028_v18 = vpop.f32.mrb[133].mxu0 }
 0x3a7   : > { %v6029_v28 = vadd.f32 %v6028_v18, %v6027_v62  ;;  %v6030_v42 = vpop.f32.mrb[134].mxu0  ;;  %v4770_v62 = vshrl.u32 %v5519_v63, 16 }
 0x3a8   : > { %v6031_v30 = vpop.f32.mrb[135].mxu0 }
 0x3a9   : > { %v6113_v24 = vpop.f32.mrb[80].mxu1  ;;  %v6458_v29 = vadd.f32 %v6029_v28, %v8311_v34  ;;  %v6032_v56 = vadd.f32 %v6031_v30, %v6030_v42  ;;  %v4760_v34 = vshll.u32 %v5518_v20, 16  ;;  %v4742_v42 = vshll.u32 %v5516_v60, 16 }
 0x3aa   : > { %v6114_v7 = vpop.f32.mrb[81].mxu1 }
 0x3ab   : > { %v6115_v8 = vadd.f32 %v6114_v7, %v6113_v24  ;;  %v6116_v44 = vpop.f32.mrb[82].mxu1  ;;  %v6464_v19 = vadd.f32 %v6032_v56, %v5952_v27  ;;  %v8342_v53 = vadd.f32 %v6458_v29, %v6109_v26  ;;  %v4762_v25 = vrot.slane %v4760_v34, 5 }
 0x3ac   : > { %v6117_v3 = vpop.f32.mrb[83].mxu1  ;;  %v4738_v26 = vrot.slane %v4736_v15, 5  ;;  %v4766_v24 = vshll.u32 %v5519_v63, 16  ;;  %v4746_v29 = vshrl.u32 %v5516_v60, 16  ;;  %v4744_v49 = vrot.slane %v4742_v42, 5 }
 0x3ad   : > { %v6118_v59 = vadd.f32 %v6117_v3, %v6116_v44  ;;  %v6033_v45 = vpop.f32.mrb[136].mxu0  ;;  %v8345_v35 = vadd.f32 %v6464_v19, %v6112_v33  ;;  %v4772_v19 = vrot.slane %v4770_v62, 4 }
 0x3ae   : > { %v6034_v43 = vpop.f32.mrb[137].mxu0  ;;  %v4768_v56 = vrot.slane %v4766_v24, 5  ;;  %v5522_v24 = vld [vmem:[%s7367_s16 + $0x34] sm:$0xf] }
 0x3af   : > { %v6035_v21 = vadd.f32 %v6034_v43, %v6033_v45  ;;  %v6036_v36 = vpop.f32.mrb[138].mxu0  ;;  %v5520_v45 = vld [vmem:[%s7367_s16 + $0x2c] sm:$0x1] }
 0x3b0   : > { %v6037_v27 = vpop.f32.mrb[139].mxu0  ;;  %v4776_v39 = vshll.u32 %v5520_v45, 16 }
 0x3b1   : > { %v6119_v23 = vpop.f32.mrb[84].mxu1  ;;  %v6455_v46 = vadd.f32 %v6035_v21, %v8313_v22  ;;  %v6038_v11 = vadd.f32 %v6037_v27, %v6036_v36 }
 0x3b2   : > { %v6120_v5 = vpop.f32.mrb[85].mxu1 }
 0x3b3   : > { %v6121_v47 = vadd.f32 %v6120_v5, %v6119_v23  ;;  %v6122_v40 = vpop.f32.mrb[86].mxu1  ;;  %v6461_v0 = vadd.f32 %v6038_v11, %v8315_v4  ;;  %v8350_v55 = vadd.f32 %v6455_v46, %v6115_v8  ;;  %v4763_v8 = vor.u32 %v4762_v25, %v4759_v17  ;;  %v5524_v5 = vld [vmem:[%s7367_s16 + $0x3c] sm:$0xf] }
 0x3b4   : > { %v6123_v41 = vpop.f32.mrb[87].mxu1  ;;  %v4808_v25 = vshll.u32 %v5524_v5, 16 }
 0x3b5   : > { %v6124_v52 = vadd.f32 %v6123_v41, %v6122_v40  ;;  %v6039_v58 = vpop.f32.mrb[140].mxu0  ;;  %v8354_v38 = vadd.f32 %v6461_v0, %v6118_v59  ;;  %v4739_v59 = vor.u32 %v4738_v26, %v4735_v32  ;;  %v4764_v20 = vrot.slane %v4763_v8, 4 }
 0x3b6   : > { %v6040_v57 = vpop.f32.mrb[141].mxu0  ;;  %v4810_v42 = vrot.slane %v4808_v25, 5 }
 0x3b7   : > { %v6041_v4 = vadd.f32 %v6040_v57, %v6039_v58  ;;  %v6042_v7 = vpop.f32.mrb[142].mxu0  ;;  %v4740_v41 = vrot.slane %v4739_v59, 4  ;;  %v4769_v17 = vsel %vm7379_vm2, %v4764_v20, %v4768_v56 }
 0x3b8   : > { %v6043_v44 = vpop.f32.mrb[143].mxu0  ;;  %v8377_v62 = vunpack.c.l.bf16 %v4769_v17 }
 0x3b9   : > { %v6125_v12 = vpop.f32.mrb[88].mxu1  ;;  %v6470_v3 = vadd.f32 %v6041_v4, %v8317_v9  ;;  %v6044_v30 = vadd.f32 %v6043_v44, %v6042_v7  ;;  %v4748_v9 = vrot.slane %v4746_v29, 4  ;;  %v4745_v26 = vsel %vm7379_vm2, %v4740_v41, %v4744_v49 }
 0x3ba   : > { %v6126_v1 = vpop.f32.mrb[89].mxu1  ;;  %v4778_v7 = vrot.slane %v4776_v39, 5  ;;  %v8383_v59 = vunpack.c.l.bf16 %v4745_v26  ;;  %v4794_v41 = vshrl.u32 %v5522_v24, 16 }
 0x3bb   : > { %v6127_v22 = vadd.f32 %v6126_v1, %v6125_v12  ;;  %v6128_v33 = vpop.f32.mrb[90].mxu1  ;;  %v6476_v23 = vadd.f32 %v6044_v30, %v8319_v48  ;;  %v8360_v43 = vadd.f32 %v6470_v3, %v6121_v47  ;;  %v4773_v48 = vor.u32 %v4772_v19, %v4768_v56  ;;  %v5525_v1 = vld [vmem:[%s7367_s16 + $0x40] sm:$0xf]  ;;  %v5530_v30 = vld [vmem:[%s7367_s16 + $0x54] sm:$0xf] }
 0x3bc   : > { %v6129_v18 = vpop.f32.mrb[91].mxu1  ;;  %v4805_v47 = vshrl.u32 %v5524_v5, 16  ;;  %v4749_v57 = vor.u32 %v4748_v9, %v4744_v49  ;;  %v4814_v3 = vshll.u32 %v5525_v1, 16  ;;  %v4790_v19 = vshll.u32 %v5522_v24, 16 }
 0x3bd   : > { %v6130_v28 = vadd.f32 %v6129_v18, %v6128_v33  ;;  %v6045_v21 = vpop.f32.mrb[144].mxu0  ;;  %v8363_v34 = vadd.f32 %v6476_v23, %v6124_v52  ;;  %v4752_v52 = vshll.u32 %v5517_v10, 16  ;;  %v5521_v33 = vld [vmem:[%s7367_s16 + $0x30] sm:$0xf]  ;;  %v4774_v4 = vrot.slane %v4773_v48, 4 }
 0x3be   : > { %v6046_v27 = vpop.f32.mrb[145].mxu0  ;;  %v4807_v18 = vrot.slane %v4805_v47, 4  ;;  %v4781_v29 = vshrl.u32 %v5521_v33, 16  ;;  %v4784_v56 = vshll.u32 %v5521_v33, 16  ;;  %v8385_v45 = vrot.slane %v4749_v57, 4 }
 0x3bf   : > { %v6047_v15 = vadd.f32 %v6046_v27, %v6045_v21  ;;  %v6048_v0 = vpop.f32.mrb[146].mxu0  ;;  %v8387_v5 = vrot.slane %v4752_v52, 5  ;;  %v5526_v10 = vld [vmem:[%s7367_s16 + $0x44] sm:$0x1]  ;;  %v4853_v9 = vshrl.u32 %v5530_v30, 16  ;;  %v8396_v47 = vrot.slane %v4814_v3, 5 }
 0x3c0   : > { %v6049_v12 = vpop.f32.mrb[147].mxu0  ;;  %v4811_v39 = vor.u32 %v4810_v42, %v4807_v18  ;;  %v4783_v17 = vrot.slane %v4781_v29, 4  ;;  %v4786_v25 = vrot.slane %v4784_v56, 5  ;;  %v5531_v52 = vld [vmem:[%s7367_s16 + $0x58] sm:$0xf]  ;;  %v4824_v26 = vshll.u32 %v5526_v10, 16 }
 0x3c1   : > { %v6131_v40 = vpop.f32.mrb[92].mxu1  ;;  %v6467_v60 = vadd.f32 %v6047_v15, %v8321_v2  ;;  %v6050_v32 = vadd.f32 %v6049_v12, %v6048_v0  ;;  %v5527_v15 = vld [vmem:[%s7367_s16 + $0x48] sm:$0xf]  ;;  %v8401_v12 = vrot.slane %v4790_v19, 5  ;;  %v5523_v57 = vld [vmem:[%s7367_s16 + $0x38] sm:$0x1] }
 0x3c2   : > { %v6132_v36 = vpop.f32.mrb[93].mxu1  ;;  %v4796_v33 = vrot.slane %v4794_v41, 4  ;;  %v4855_v24 = vrot.slane %v4853_v9, 4  ;;  %v4862_v42 = vshll.u32 %v5531_v52, 16  ;;  %v4812_v29 = vrot.slane %v4811_v39, 4 }
 0x3c3   : > { %v8365_v46 = vadd.f32 %v6132_v36, %v6131_v40  ;;  %v6134_v11 = vpop.f32.mrb[94].mxu1  ;;  %v6473_v8 = vadd.f32 %v6050_v32, %v8323_v16  ;;  %v8380_v44 = vadd.f32 %v6467_v60, %v6127_v22  ;;  %v4818_v16 = vshrl.u32 %v5525_v1, 16 }
 0x3c4   : > { %v6135_v63 = vpop.f32.mrb[95].mxu1  ;;  %v4779_v36 = vsel %vm7379_vm2, %v4774_v4, %v4778_v7  ;;  %v4829_v4 = vshrl.u32 %v5527_v15, 16  ;;  %v4832_v7 = vshll.u32 %v5527_v15, 16  ;;  %v4866_v56 = vshrl.u32 %v5531_v52, 16 }
 0x3c5   : > { %v8369_v58 = vadd.f32 %v6135_v63, %v6134_v11  ;;  %v6051_v23 = vpop.f32.mrb[148].mxu0  ;;  %v8389_v22 = vadd.f32 %v6473_v8, %v6130_v28  ;;  %v4856_v28 = vshll.u32 %v5530_v30, 16  ;;  %v4820_v32 = vrot.slane %v4818_v16, 4 }
 0x3c6   : > { %v6052_v40 = vpop.f32.mrb[149].mxu0  ;;  %v4800_v16 = vshll.u32 %v5523_v57, 16  ;;  %v4797_v10 = vor.u32 %v4796_v33, %v8401_v12  ;;  %v4868_v52 = vrot.slane %v4866_v56, 4 }
 0x3c7   : > { %v6053_v27 = vadd.f32 %v6052_v40, %v6051_v23  ;;  %v6054_v11 = vpop.f32.mrb[150].mxu0  ;;  %v4858_v8 = vrot.slane %v4856_v28, 5  ;;  %v5528_v40 = vld [vmem:[%s7367_s16 + $0x4c] sm:$0xf]  ;;  %v4864_v28 = vrot.slane %v4862_v42, 5 }
 0x3c8   : > { %v6055_v0 = vpop.f32.mrb[151].mxu0  ;;  %v4798_v33 = vrot.slane %v4797_v10, 4 }
 0x3c9   : > { %v6137_v2 = vpop.f32.mrb[96].mxu1  ;;  %v6482_v1 = vadd.f32 %v6053_v27, %v8325_v31  ;;  %v6056_v60 = vadd.f32 %v6055_v0, %v6054_v11  ;;  %v4755_v31 = vsel %vm7379_vm2, %v8385_v45, %v8387_v5  ;;  %v4831_v45 = vrot.slane %v4829_v4, 4 }
 0x3ca   : > { %v6138_v20 = vpop.f32.mrb[97].mxu1  ;;  %v4834_v5 = vrot.slane %v4832_v7, 5  ;;  %v4859_v39 = vor.u32 %v4858_v8, %v4855_v24  ;;  %v4802_v24 = vrot.slane %v4800_v16, 5  ;;  %v8436_v56 = vunpack.c.l.bf16 %v4755_v31 }
 0x3cb   : > { %v8391_v49 = vadd.f32 %v6138_v20, %v6137_v2  ;;  %v6140_v21 = vpop.f32.mrb[98].mxu1  ;;  %v6488_v18 = vadd.f32 %v6056_v60, %v8327_v14  ;;  %v8408_v3 = vadd.f32 %v6482_v1, %v8365_v46  ;;  %v8410_v2 = vunpack.c.l.bf16 %v4779_v36 }
 0x3cc   : > { %v6141_v48 = vpop.f32.mrb[99].mxu1  ;;  %v4787_v20 = vor.u32 %v4786_v25, %v4783_v17  ;;  %v4821_v14 = vor.u32 %v4820_v32, %v8396_v47  ;;  %v4842_v17 = vshrl.u32 %v5528_v40, 16  ;;  %v5532_v25 = vld [vmem:[%s7367_s16 + $0x5c] sm:$0x1]  ;;  %v4835_v4 = vor.u32 %v4834_v5, %v4831_v45 }
 0x3cd   : > { %v8399_v63 = vadd.f32 %v6141_v48, %v6140_v21  ;;  %v6057_v19 = vpop.f32.mrb[152].mxu0  ;;  %v8419_v46 = vadd.f32 %v6488_v18, %v8369_v58  ;;  %v4826_v48 = vrot.slane %v4824_v26, 5  ;;  %v4838_v58 = vshll.u32 %v5528_v40, 16 }
 0x3ce   : > { %v6058_v21 = vpop.f32.mrb[153].mxu0  ;;  %v4788_v32 = vrot.slane %v4787_v20, 4  ;;  %v4822_v57 = vrot.slane %v4821_v14, 4  ;;  %v4817_v26 = vsel %vm7379_vm2, %v4812_v29, %v8396_v47  ;;  %v4860_v8 = vrot.slane %v4859_v39, 4  ;;  %v5536_v14 = vld [vmem:[%s7367_s16 + $0x6c] sm:$0xf] }
 0x3cf   : > { %v6059_v9 = vadd.f32 %v6058_v21, %v6057_v19  ;;  %v6060_v27 = vpop.f32.mrb[154].mxu0  ;;  %v4872_v42 = vshll.u32 %v5532_v25, 16  ;;  %v4840_v19 = vrot.slane %v4838_v58, 5  ;;  %v4844_v20 = vrot.slane %v4842_v17, 4 }
 0x3d0   : > { %v6061_v15 = vpop.f32.mrb[155].mxu0  ;;  %v8439_v16 = vunpack.c.l.bf16 %v4817_v26  ;;  %v4803_v10 = vsel %vm7379_vm2, %v4798_v33, %v4802_v24  ;;  %v4836_v45 = vrot.slane %v4835_v4, 4 }
 0x3d1   : > { %v6143_v30 = vpop.f32.mrb[100].mxu1  ;;  %v6479_v1 = vadd.f32 %v6059_v9, %v8329_v50  ;;  %v6062_v60 = vadd.f32 %v6061_v15, %v6060_v27  ;;  %v8454_v9 = vld [vmem:[%s7367_s16 + $0x70] sm:$0xf]  ;;  %v8458_v39 = vrot.slane %v4872_v42, 5  ;;  %v8461_v15 = vld [vmem:[%s7367_s16 + $0x60] sm:$0xf] }
 0x3d2   : > { %v6144_v23 = vpop.f32.mrb[101].mxu1  ;;  %v4841_v33 = vsel %vm7379_vm2, %v4836_v45, %v4840_v19  ;;  %v4910_v24 = vshll.u32 %v8454_v9, 16  ;;  %v4877_v4 = vshrl.u32 %v8461_v15, 16 }
 0x3d3   : > { %v8421_v36 = vadd.f32 %v6144_v23, %v6143_v30  ;;  %v6146_v41 = vpop.f32.mrb[102].mxu1  ;;  %v6485_v7 = vadd.f32 %v6062_v60, %v8331_v54  ;;  %v8433_v18 = vadd.f32 %v6479_v1, %v8391_v49  ;;  %v5529_v30 = vld [vmem:[%s7367_s16 + $0x50] sm:$0x1]  ;;  %v4869_v23 = vor.u32 %v4868_v52, %v4864_v28 }
 0x3d4   : > { %v6147_v11 = vpop.f32.mrb[103].mxu1  ;;  %v4793_v54 = vsel %vm7379_vm2, %v4788_v32, %v8401_v12  ;;  %v4827_v49 = vsel %vm7379_vm2, %v4822_v57, %v4826_v48  ;;  %v4848_v5 = vshll.u32 %v5529_v30, 16  ;;  %v4865_v48 = vsel %vm7379_vm2, %v4860_v8, %v4864_v28 }
 0x3d5   : > { %v8424_v0 = vadd.f32 %v6147_v11, %v6146_v41  ;;  %v6063_v47 = vpop.f32.mrb[156].mxu0  ;;  %v8447_v31 = vadd.f32 %v6485_v7, %v8399_v63  ;;  %v4901_v63 = vshrl.u32 %v5536_v14, 16  ;;  %v8465_v25 = vrot.slane %v4869_v23, 4 }
 0x3d6   : > { %v6064_v40 = vpop.f32.mrb[157].mxu0  ;;  %v4845_v52 = vor.u32 %v4844_v20, %v4840_v19  ;;  %v4904_v1 = vshll.u32 %v5536_v14, 16  ;;  %v8468_v57 = vunpack.c.l.bf16 %v4793_v54  ;;  %v8470_v26 = vunpack.c.l.bf16 %v4827_v49  ;;  %v8498_v14 = vld [vmem:[%s7367_s16 + $0x64] sm:$0xf] }
 0x3d7   : > { %v6065_v27 = vadd.f32 %v6064_v40, %v6063_v47  ;;  %v6066_v12 = vpop.f32.mrb[158].mxu0  ;;  %v8472_v28 = vunpack.c.l.bf16 %v4803_v10  ;;  %v8484_v8 = vunpack.c.l.bf16 %v4865_v48  ;;  %v8486_v42 = vrot.slane %v4848_v5, 5 }
 0x3d8   : > { %v6067_v58 = vpop.f32.mrb[159].mxu0  ;;  %v4875_v19 = vsel %vm7379_vm2, %v8465_v25, %v8458_v39  ;;  %v8495_v23 = vrot.slane %v4845_v52, 4  ;;  %v4906_v20 = vrot.slane %v4904_v1, 5  ;;  %v8506_v49 = vunpack.c.l.bf16 %v4841_v33 }
 0x3d9   : > { %v6149_v50 = vpop.f32.mrb[104].mxu1  ;;  %v6494_v60 = vadd.f32 %v6065_v27, %v8333_v37  ;;  %v6068_v32 = vadd.f32 %v6067_v58, %v6066_v12  ;;  %v8482_v37 = vld [vmem:[%s8699_s5] ss:$0 sm:$0xff]  ;;  %v4914_v40 = vshrl.u32 %v8454_v9, 16  ;;  %v8513_v27 = vrot.slane %v4910_v24, 5 }
 0x3da   : > { %v6150_v29 = vpop.f32.mrb[105].mxu1  ;;  %v4880_v12 = vshll.u32 %v8461_v15, 16  ;;  %v4851_v15 = vsel %vm7379_vm2, %v8495_v23, %v8486_v42 }
 0x3db   : > { %v8449_v21 = vadd.f32 %v6150_v29, %v6149_v50  ;;  %v6152_v41 = vpop.f32.mrb[106].mxu1  ;;  %v6500_v7 = vadd.f32 %v6068_v32, %v8335_v61  ;;  %v8489_v30 = vadd.f32 %v6494_v60, %v8421_v36  ;;  %v4903_v61 = vrot.slane %v4901_v63, 4  ;;  %v8504_v36 = vld [vmem:[%s8754_s17] ss:$0 sm:$0xff]  ;;  %s6949_s17 = scalar_lea.vmem %s6948_s1, 2048 }
 0x3dc   : > { %v6153_v11 = vpop.f32.mrb[107].mxu1  ;;  %p6951_p5 = scmp.lt.s32.totalorder %s6949_s17, %s6943_s6 }
 0x3dd   : > { %v8463_v17 = vadd.f32 %v6153_v11, %v6152_v41  ;;  %v6069_v47 = vpop.f32.mrb[160].mxu0  ;;  %v8510_v41 = vadd.f32 %v6500_v7, %v8424_v0  ;;  %v4886_v0 = vshll.u32 %v8498_v14, 16  ;;  %v4907_v60 = vor.u32 %v4906_v20, %v4903_v61 }
 0x3de   : > { %v6070_v10 = vpop.f32.mrb[161].mxu0  ;;  %p6952_p8 = por %p6951_p5, %p6950_p0 }
 0x3df   : > { %v6071_v11 = vadd.f32 %v6070_v10, %v6069_v47  ;;  %v6072_v48 = vpop.f32.mrb[162].mxu0  ;;  %v4916_v47 = vrot.slane %v4914_v40, 4  ;;  %v4882_v10 = vrot.slane %v4880_v12, 5 }
 0x3e0   : > { %v6073_v52 = vpop.f32.mrb[163].mxu0  ;;  %p6953_p12 = pnand %p6952_p8, %p6946_p11 }
 0x3e1   : > { %v6361_v50 = vpop.f32.mrb[60].mxu1  ;;  %v6491_v32 = vadd.f32 %v6071_v11, %v8337_v13  ;;  %v6074_v33 = vadd.f32 %v6073_v52, %v6072_v48  ;;  %v8551_v48 = vrot.slane %v4907_v60, 4  ;;  %v4917_v12 = vor.u32 %v4916_v47, %v8513_v27  ;;  %v5535_v60 = vld [vmem:[%s7367_s16 + $0x68] sm:$0x1] }
 0x3e2   : > { %v6457_v29 = vadd.f32 %v8350_v55, %v6361_v50  ;;  %v4625_v54 = vpop.f32.mrb[61].mxu1  ;;  %v8515_v55 = vrot.slane %v4877_v4, 4  ;;  %v4890_v50 = vshrl.u32 %v8498_v14, 16 }
 0x3e3   : > { %v6460_v45 = vadd.f32 %v8342_v53, %v4625_v54  ;;  %v6362_v5 = vpop.f32.mrb[62].mxu1  ;;  %v8538_v13 = vadd.f32 %v6491_v32, %v8449_v21  ;;  %v4913_v39 = vsel %vm7379_vm2, %v8551_v48, %v8513_v27  ;;  %v4918_v25 = vrot.slane %v4917_v12, 4 }
 0x3e4   : > { %v4949_v63 = vmul.f32 %v6457_v29, %v8482_v37  ;;  %v6463_v9 = vadd.f32 %v8354_v38, %v6362_v5  ;;  %v4628_v58 = vpop.f32.mrb[63].mxu1  ;;  %v6497_v29 = vadd.f32 %v6074_v33, %v8339_v6  ;;  %v4892_v32 = vrot.slane %v4890_v50, 4 }
 0x3e5   : > { %v4947_v53 = vmul.f32 %v6460_v45, %v8482_v37  ;;  %v6466_v1 = vadd.f32 %v8345_v35, %v4628_v58  ;;  %v5538_v35 = vld [vmem:[%s7367_s16 + $0x74] sm:$0x1]  ;;  %v8542_v45 = vrot.slane %v4886_v0, 5  ;;  %s5561_s16 = sshll.u32 %s5128_s19, 6 }
 0x3e6   : > { %v4972_v24 = vadd.f32 %v8504_v36, %v4949_v63  ;;  %v4950_v38 = vmul.f32 %v6463_v9, %v8482_v37  ;;  %v4920_v5 = vshll.u32 %v5538_v35, 16  ;;  %v4995_v35 = vunpack.c.l.bf16 %v4851_v15  ;;  %s8627_s27 = scalar_lea.hbm %s8757_s15, %s5561_s16 }
 0x3e7   : > { %v4970_v4 = vadd.f32 %v8504_v36, %v4947_v53  ;;  %v4948_v7 = vmul.f32 %v6466_v1, %v8482_v37 }
 0x3e8   : > { %v5004_v42 = vadd.f32 %v8377_v62, %v4972_v24  ;;  %v4973_v23 = vadd.f32 %v8504_v36, %v4950_v38  ;;  %v8547_v62 = vadd.f32 %v6497_v29, %v8463_v17  ;;  %v4883_v38 = vor.u32 %v4882_v10, %v8515_v55 }
 0x3e9   : > { %v5002_v61 = vadd.f32 %v8383_v59, %v4970_v4  ;;  %v4971_v20 = vadd.f32 %v8504_v36, %v4948_v7  ;;  %v6365_v54 = vpop.f32.mrb[64].mxu1  ;;  %v4896_v55 = vshll.u32 %v5535_v60, 16 }
 0x3ea   : > { %v5005_v14 = vadd.f32 %v8410_v2, %v4973_v23  ;;  %v6469_v40 = vadd.f32 %v8380_v44, %v6365_v54  ;;  %v4641_v6 = vpop.f32.mrb[65].mxu1  ;;  %v5020_v63 = vmax.f32 %v5004_v42, 0.0  ;;  %v4922_v42 = vrot.slane %v4920_v5, 5 }
 0x3eb   : > { %v5003_v21 = vadd.f32 %v8436_v56, %v4971_v20  ;;  %v6472_v11 = vadd.f32 %v8360_v43, %v4641_v6  ;;  %v6366_v59 = vpop.f32.mrb[66].mxu1  ;;  %v5018_v58 = vmax.f32 %v5002_v61, 0.0  ;;  %v4884_v20 = vrot.slane %v4883_v38, 4 }
 0x3ec   : > { %v5021_v9 = vmax.f32 %v5005_v14, 0.0  ;;  %v4953_v2 = vmul.f32 %v6469_v40, %v8482_v37  ;;  %v6475_v44 = vadd.f32 %v8389_v22, %v6366_v59  ;;  %v4644_v17 = vpop.f32.mrb[67].mxu1  ;;  %v4893_v54 = vor.u32 %v4892_v32, %v8542_v45 }
 0x3ed   : > { %v5019_v0 = vmax.f32 %v5003_v21, 0.0  ;;  %v4951_v56 = vmul.f32 %v6472_v11, %v8482_v37  ;;  %v6478_v43 = vadd.f32 %v8363_v34, %v4644_v17  ;;  %v4997_v34 = vunpack.c.l.bf16 %v4875_v19 }
 0x3ee   : > { %v5610_v52 = vpack.c.bf16 %v5021_v9, %v5020_v63  ;;  %v4976_v53 = vadd.f32 %v8504_v36, %v4953_v2  ;;  %v4954_v1 = vmul.f32 %v6475_v44, %v8482_v37  ;;  %v4898_v59 = vrot.slane %v4896_v55, 5 }
 0x3ef   : > { %v5605_v33 = vpack.c.bf16 %v5019_v0, %v5018_v58  ;;  %v4974_v24 = vadd.f32 %v8504_v36, %v4951_v56  ;;  %v4952_v22 = vmul.f32 %v6478_v43, %v8482_v37  ;;  %v5000_v43 = vunpack.c.l.bf16 %v4913_v39 }
 0x3f0   : > { %5642 = vst [vmem:[%s8107_s20 + $0x8] sm:$0xff] %v5610_v52   ;;  %v5008_v4 = vadd.f32 %v8439_v16, %v4976_v53  ;;  %v4977_v7 = vadd.f32 %v8504_v36, %v4954_v1 }
 0x3f1   : > { %5606 = vst [vmem:[%s8107_s20] sm:$0xff] %v5605_v33   ;;  %v5006_v50 = vadd.f32 %v8468_v57, %v4974_v24  ;;  %v4975_v47 = vadd.f32 %v8504_v36, %v4952_v22  ;;  %v6369_v29 = vpop.f32.mrb[68].mxu1 }
 0x3f2   : > { %v5009_v23 = vadd.f32 %v8470_v26, %v4977_v7  ;;  %v6481_v16 = vadd.f32 %v8433_v18, %v6369_v29  ;;  %v4657_v61 = vpop.f32.mrb[69].mxu1  ;;  %v5024_v10 = vmax.f32 %v5008_v4, 0.0 }
 0x3f3   : > { %v5007_v19 = vadd.f32 %v8472_v28, %v4975_v47  ;;  %v6484_v57 = vadd.f32 %v8408_v3, %v4657_v61  ;;  %v6370_v15 = vpop.f32.mrb[70].mxu1  ;;  %v5022_v6 = vmax.f32 %v5006_v50, 0.0 }
 0x3f4   : > { %v5025_v14 = vmax.f32 %v5009_v23, 0.0  ;;  %v4957_v18 = vmul.f32 %v6481_v16, %v8482_v37  ;;  %v6487_v26 = vadd.f32 %v8447_v31, %v6370_v15  ;;  %v4660_v40 = vpop.f32.mrb[71].mxu1  ;;  %v4894_v31 = vrot.slane %v4893_v54, 4 }
 0x3f5   : > { %v5023_v27 = vmax.f32 %v5007_v19, 0.0  ;;  %v4955_v5 = vmul.f32 %v6484_v57, %v8482_v37  ;;  %v6490_v28 = vadd.f32 %v8419_v46, %v4660_v40  ;;  %v4889_v46 = vsel %vm7379_vm2, %v4884_v20, %v8542_v45 }
 0x3f6   : > { %v5620_v3 = vpack.c.bf16 %v5025_v14, %v5024_v10  ;;  %v4980_v21 = vadd.f32 %v8504_v36, %v4957_v18  ;;  %v4958_v11 = vmul.f32 %v6487_v26, %v8482_v37  ;;  %v4998_v60 = vunpack.c.l.bf16 %v4889_v46 }
 0x3f7   : > { %v5615_v48 = vpack.c.bf16 %v5023_v27, %v5022_v6  ;;  %v4978_v12 = vadd.f32 %v8504_v36, %v4955_v5  ;;  %v4956_v63 = vmul.f32 %v6490_v28, %v8482_v37 }
 0x3f8   : > { %5644 = vst [vmem:[%s8107_s20 + $0x18] sm:$0xff] %v5620_v3   ;;  %v5012_v9 = vadd.f32 %v8484_v8, %v4980_v21  ;;  %v4981_v2 = vadd.f32 %v8504_v36, %v4958_v11  ;;  %v4923_v8 = vsel %vm7379_vm2, %v4918_v25, %v4922_v42 }
 0x3f9   : > { %5643 = vst [vmem:[%s8107_s20 + $0x10] sm:$0xff] %v5615_v48   ;;  %v5010_v44 = vadd.f32 %v8506_v49, %v4978_v12  ;;  %v4979_v17 = vadd.f32 %v8504_v36, %v4956_v63  ;;  %v6373_v58 = vpop.f32.mrb[72].mxu1  ;;  %v4899_v49 = vsel %vm7379_vm2, %v4894_v31, %v4898_v59  ;;  %v5001_v50 = vunpack.c.l.bf16 %v4923_v8 }
 0x3fa   : > { %v5013_v0 = vadd.f32 %v4997_v34, %v4981_v2  ;;  %v6493_v56 = vadd.f32 %v8538_v13, %v6373_v58  ;;  %v4673_v52 = vpop.f32.mrb[73].mxu1  ;;  %v5028_v32 = vmax.f32 %v5012_v9, 0.0  ;;  %v4999_v42 = vunpack.c.l.bf16 %v4899_v49 }
 0x3fb   : > { %v5011_v53 = vadd.f32 %v4995_v35, %v4979_v17  ;;  %v6496_v1 = vadd.f32 %v8489_v30, %v4673_v52  ;;  %v6374_v45 = vpop.f32.mrb[74].mxu1  ;;  %v5026_v38 = vmax.f32 %v5010_v44, 0.0 }
 0x3fc   : > { %v5029_v33 = vmax.f32 %v5013_v0, 0.0  ;;  %v4961_v24 = vmul.f32 %v6493_v56, %v8482_v37  ;;  %v6499_v13 = vadd.f32 %v8547_v62, %v6374_v45  ;;  %v4676_v22 = vpop.f32.mrb[75].mxu1 }
 0x3fd   : > { %v5027_v4 = vmax.f32 %v5011_v53, 0.0  ;;  %v4959_v30 = vmul.f32 %v6496_v1, %v8482_v37  ;;  %v6502_v7 = vadd.f32 %v8510_v41, %v4676_v22 }
 0x3fe   : > { %v5630_v34 = vpack.c.bf16 %v5029_v33, %v5028_v32  ;;  %v4984_v51 = vadd.f32 %v8504_v36, %v4961_v24  ;;  %v4962_v35 = vmul.f32 %v6499_v13, %v8482_v37 }
 0x3ff   : > { %v5625_v47 = vpack.c.bf16 %v5027_v4, %v5026_v38  ;;  %v4982_v62 = vadd.f32 %v8504_v36, %v4959_v30  ;;  %v4960_v29 = vmul.f32 %v6502_v7, %v8482_v37 }
 0x400   : > { %5646 = vst [vmem:[%s8107_s20 + $0x28] sm:$0xff] %v5630_v34   ;;  %v5016_v55 = vadd.f32 %v5000_v43, %v4984_v51  ;;  %v4985_v23 = vadd.f32 %v8504_v36, %v4962_v35 }
 0x401   : > { %5645 = vst [vmem:[%s8107_s20 + $0x20] sm:$0xff] %v5625_v47   ;;  %v5014_v41 = vadd.f32 %v4998_v60, %v4982_v62  ;;  %v4983_v16 = vadd.f32 %v8504_v36, %v4960_v29 }
 0x402   : > { %v5017_v61 = vadd.f32 %v5001_v50, %v4985_v23  ;;  %v5032_v25 = vmax.f32 %v5016_v55, 0.0 }
 0x403   : > { %v5015_v39 = vadd.f32 %v4999_v42, %v4983_v16  ;;  %v5030_v37 = vmax.f32 %v5014_v41, 0.0 }
 0x404   : > { %v5033_v19 = vmax.f32 %v5017_v61, 0.0 }
 0x405   : > { %v5031_v57 = vmax.f32 %v5015_v39, 0.0 }
 0x406   : > { %v5640_v15 = vpack.c.bf16 %v5033_v19, %v5032_v25 }
 0x407   : > { %v5635_v20 = vpack.c.bf16 %v5031_v57, %v5030_v37 }
 0x408   : > { %5648 = vst [vmem:[%s8107_s20 + $0x38] sm:$0xff] %v5640_v15  }
 0x409   : > { %5647 = vst [vmem:[%s8107_s20 + $0x30] sm:$0xff] %v5635_v20  }
 0x40a   : > { %6956 = shalt.err (!%p6953_p12)
}
 0x40b   : > { %s6957_s9 = scalar_lea.hbm %s8627_s27, 1024  ;;  %s6961_s24 = scalar_lea.hbm %s8757_s15, 4096 }
 0x40c   : > { %p6958_p2 = scmp.ne.s32.totalorder %s8627_s27, %s6957_s9  ;;  %p6962_p1 = scmp.lt.u32.totalorder %s8627_s27, %s8757_s15 }
 0x40d   : > { %p6963_p4 = scmp.lt.u32.totalorder %s6961_s24, %s6957_s9  ;;  %p6965_p7 = scmp.lt.u32.totalorder %s6957_s9, %s8627_s27 }
 0x40e   : > { %p6959_p6 = pnand %p6958_p2, %p8758_p13 }
 0x40f   : > { %p6964_p3 = por %p6963_p4, %p6962_p1 }
 0x410   : > { %p6960_p10 = pneg %p6959_p6 }
 0x411   : > { %p6966_p9 = por %p6965_p7, %p6964_p3 }
 0x413   : > { %p6967_p11 = pnand %p6966_p9, %p6960_p10 }
 0x415   : > { %6970 = shalt.err (!%p6967_p11)
}
 0x416   : > { %s7079_s16 = smov 64   ;;  %s7080_s8 = smov 4  }
 0x417   : > { %6568 = dma.vmem_to_hbm [thread:$0]  (%p8758_p13), %s8622_s14, 1024, %s8627_s27, %s8633_s23, %s7079_s16, %s7079_s16, %s7080_s8  }
 0x418 PF: > { %s8759_s21 = sld [smem:[#allocation14_spill]]  ;;  %s8760_s6 = sld [smem:[#allocation18_spill]] }
 0x419   : > { %p6590_p0 = scmp.ge.s32.totalorder %s7069_s11, 2 }
 0x41e   : > { %s5146_s18 = sand.u32 1, %s8759_s21   ;;  %p8761_p5 = scmp.ne.s32.totalorder %s8760_s6, 0 }
 0x41f   : > { %s5147_s1 = scalar_lea.sflag [#allocation6], %s5146_s18 }
 0x420   : > { %p6582_p8 = pnand %p6590_p0, %p8761_p5 }
 0x422   : > { %7024 = dma.done.wait (!%p6582_p8), %s5147_s1, 1024  }
 0x423   : > { %7026 = vsyncadd (!%p6582_p8), %s5147_s1, 4294966272  ;;  %s24_s11 = sadd.s32 1, %s7069_s11   ;;  %s8762_s30 = sld [smem:[#allocation16_spill]] }
 0x424   : > { %p21_p12 = scmp.ge.s32.totalorder %s24_s11, 6   ;;  %s8763_s9 = sld [smem:[#allocation19_spill]] }
 0x425   : > { %s8764_s24 = smov %s7033_s25  ;;  %s8765_s25 = smov %s7037_s26 }
 0x426   : > { %s8766_s26 = smov %s7302_s2  ;;  %s8767_s27 = smov %s7045_s28 }
 0x427   : > { %s8768_s28 = smov %s7049_s29  ;;  %s8769_s29 = smov %s7297_s12 }
 0x428   : > { %s8770_s8 = smov %s7065_s10  ;;  %s8771_s10 = smov %s8777_s22 }
 0x429   :  { %23 = sbr.rel (!%p21_p12) target bundleno = 15 (0xf), region = 116 }
 0x430   :  { %5152 = vsyncpa [#allocation5], 1 }
 0x431   :  { %5154 = vsyncpa [#allocation5 + $0x1], 1 }
 0x432   :  { %5155 = vsyncpa [#allocation8], 1 }
 0x433   :  { %5156 = vsyncpa [#allocation6], 1 }
 0x434   :  { %5158 = vsyncpa [#allocation6 + $0x1], 1 }

</bundles_post_ra>
